<compile_context>
chip_gen: v7x
topology: tpu7x:2x2x1
jax: 0.10.0
libtpu: 0.0.40
codegen_flags: <defaults>
</compile_context>

<pallas_src>
import functools

import jax
import jax.numpy as jnp
from jax.experimental import pallas as pl
from jax.experimental.pallas import tpu as pltpu


def _transition_kernel(z_ref, gamma_ref, beta_ref, w1_ref, b1_ref,
                       w2_ref, b2_ref, o_ref, *, eps):
    """LayerNorm -> Linear(E,H) -> ReLU -> Linear(H,E) on one row tile."""
    # ---- LayerNorm, single-pass f32 statistics: var = E[z^2] - mean^2 ----
    z = z_ref[...].astype(jnp.float32)
    mean = jnp.mean(z, axis=-1, keepdims=True)
    mean_sq = jnp.mean(z * z, axis=-1, keepdims=True)
    var = jnp.maximum(mean_sq - mean * mean, 0.0)
    zn = (z - mean) * jax.lax.rsqrt(var + eps)
    zn = zn * gamma_ref[...].astype(jnp.float32) + beta_ref[...].astype(jnp.float32)

    # ---- Linear1 + ReLU (bf16 MXU operands, f32 accumulation) ----
    w1 = w1_ref[...]                      # already in compute dtype (bf16)
    h = jnp.dot(zn.astype(w1.dtype), w1, preferred_element_type=jnp.float32)
    h = jnp.maximum(h + b1_ref[...].astype(jnp.float32), 0.0)

    # ---- Linear2 ----
    w2 = w2_ref[...]
    out = jnp.dot(h.astype(w2.dtype), w2, preferred_element_type=jnp.float32)
    out = out + b2_ref[...].astype(jnp.float32)

    o_ref[...] = out.astype(o_ref.dtype)


def _vmem_capacity_bytes():
    try:
        return int(pltpu.get_tpu_info().vmem_capacity_bytes)
    except Exception:
        return 64 * 1024 * 1024   # conservative (v7x per-TensorCore VMEM)


def _pick_row_tile(R, tm_cap):
    """Largest power-of-two tile <= tm_cap that still yields >= 4 row blocks
    (>= 2 per TensorCore on v7x) when R allows it; floor at 128 rows."""
    tm = tm_cap
    while tm > 128 and pl.cdiv(R, tm) < 4:
        tm //= 2
    return tm


def transition_forward(z, gamma, beta, w1, b1, w2, b2, *, eps=1e-5,
                       compute_dtype=jnp.bfloat16):
    """z: [..., E] (any float dtype; bf16 recommended on v6e/v7x);
    w1: (E, H), w2: (H, E); gamma/beta: (E,) or (1, E); b1: (1, H); b2: (1, E).
    Output dtype matches z."""
    orig_shape = z.shape
    E = orig_shape[-1]
    H = w1.shape[1]
    z2d = z.reshape(-1, E)
    R = z2d.shape[0]

    # ---- per-generation tiling / VMEM budget ----
    vmem_cap = _vmem_capacity_bytes()
    small_vmem = vmem_cap <= 64 * 1024 * 1024      # v7x: 64 MiB per TC
    tm_cap = 1024 if small_vmem else 2048          # v5e/v6e: 128 MiB
    tm = _pick_row_tile(R, tm_cap)
    tm = min(tm, max(8, -(-R // 8) * 8))           # never exceed rounded-up R
    n_blocks = pl.cdiv(R, tm)                      # ragged tail masked by Pallas

    # MXU fast path: bf16 weights; LN affine / biases stay f32.
    w1c = w1.astype(compute_dtype)
    w2c = w2.astype(compute_dtype)
    gamma32 = gamma.reshape(1, E).astype(jnp.float32)
    beta32 = beta.reshape(1, E).astype(jnp.float32)
    b1_32 = b1.reshape(1, H).astype(jnp.float32)
    b2_32 = b2.reshape(1, E).astype(jnp.float32)

    io_bytes = jnp.dtype(z.dtype).itemsize
    w_bytes = jnp.dtype(compute_dtype).itemsize
    vmem_needed = (
        2 * tm * E * io_bytes          # z tile, double-buffered
        + 2 * tm * E * io_bytes        # out tile, double-buffered
        + 2 * E * H * w_bytes          # w1 + w2, single-buffered (resident)
        + (3 * E + H) * 4              # gamma, beta, b1, b2 (f32)
        + tm * E * (4 + w_bytes)       # f32 zn + bf16 cast
        + tm * H * (4 + w_bytes)       # f32 hidden + bf16 cast
        + tm * E * 4                   # f32 out temporary
    )
    limit_cap = (48 if small_vmem else 96) * 1024 * 1024
    vmem_limit = int(min(vmem_needed + max(vmem_needed // 2, 8 * 1024 * 1024),
                         limit_cap))

    const = pl.Buffered(1)   # constant index_map -> one VMEM buffer suffices
    # TODO(synk): for much larger E/H (e.g. E>=1024, H>=4096) add an
    # "arbitrary" grid axis blocking w1/w2 over H instead of keeping both
    # weights fully resident, to stay inside v7x's 64 MiB VMEM.

    out = pl.pallas_call(
        functools.partial(_transition_kernel, eps=eps),
        out_shape=jax.ShapeDtypeStruct((R, E), z.dtype),
        grid_spec=pltpu.PrefetchScalarGridSpec(
            num_scalar_prefetch=0,
            grid=(n_blocks,),
            in_specs=[
                pl.BlockSpec((tm, E), lambda i: (i, 0)),                      # z rows
                pl.BlockSpec((1, E), lambda i: (0, 0), pipeline_mode=const),  # gamma
                pl.BlockSpec((1, E), lambda i: (0, 0), pipeline_mode=const),  # beta
                pl.BlockSpec((E, H), lambda i: (0, 0), pipeline_mode=const),  # w1
                pl.BlockSpec((1, H), lambda i: (0, 0), pipeline_mode=const),  # b1
                pl.BlockSpec((H, E), lambda i: (0, 0), pipeline_mode=const),  # w2
                pl.BlockSpec((1, E), lambda i: (0, 0), pipeline_mode=const),  # b2
            ],
            out_specs=pl.BlockSpec((tm, E), lambda i: (i, 0)),
        ),
        compiler_params=pltpu.CompilerParams(
            dimension_semantics=("parallel",),
            vmem_limit_bytes=vmem_limit),
    )(z2d, gamma32, beta32, w1c, b1_32, w2c, b2_32)

    return out.reshape(orig_shape)


def _reference(z, gamma, beta, w1, b1, w2, b2, eps=1e-5,
               compute_dtype=jnp.bfloat16):
    # Same precision recipe as the kernel (bf16 matmul operands, f32 acc),
    # but two-pass LayerNorm variance as the ground truth.
    zf = z.astype(jnp.float32)
    mean = jnp.mean(zf, axis=-1, keepdims=True)
    var = jnp.mean((zf - mean) ** 2, axis=-1, keepdims=True)
    zn = (zf - mean) * jax.lax.rsqrt(var + eps)
    zn = zn * gamma.reshape(1, 1, -1).astype(jnp.float32) \
        + beta.reshape(1, 1, -1).astype(jnp.float32)
    h = jnp.dot(zn.astype(compute_dtype), w1.astype(compute_dtype),
                preferred_element_type=jnp.float32)
    h = jnp.maximum(h + b1.reshape(1, 1, -1).astype(jnp.float32), 0.0)
    out = jnp.dot(h.astype(compute_dtype), w2.astype(compute_dtype),
                  preferred_element_type=jnp.float32)
    out = out + b2.reshape(1, 1, -1).astype(jnp.float32)
    return out.astype(z.dtype)


if __name__ == "__main__":
    # Module defaults: embedding_channels=256, n=4 -> H=1024.
    # S is a non-multiple of the row tile to exercise the masked ragged tail.
    B, S, E, n = 2, 200, 256, 4
    H = n * E

    key = jax.random.PRNGKey(0)
    k_z, k_w1, k_b1, k_w2, k_b2 = jax.random.split(key, 5)

    # bf16 activations (producer-side cast) per the v6e/v7x review; LN stats,
    # biases and MXU accumulation stay f32 inside the kernel.
    z = jax.random.normal(k_z, (B, S, E), dtype=jnp.float32).astype(jnp.bfloat16)

    # Deterministic synthetic parameters (LayerNorm init: gamma=1, beta=0).
    gamma = jnp.ones((1, E), dtype=jnp.float32)
    beta = jnp.zeros((1, E), dtype=jnp.float32)
    w1 = jax.random.normal(k_w1, (E, H), dtype=jnp.float32) * 0.05
    b1 = jax.random.normal(k_b1, (1, H), dtype=jnp.float32) * 0.01
    w2 = jax.random.normal(k_w2, (H, E), dtype=jnp.float32) * 0.05
    b2 = jax.random.normal(k_b2, (1, E), dtype=jnp.float32) * 0.01

    out = transition_forward(z, gamma, beta, w1, b1, w2, b2)
    out = jax.block_until_ready(out)

    ref = _reference(z, gamma, beta, w1, b1, w2, b2)
    assert out.shape == z.shape
    assert out.dtype == z.dtype
    assert jnp.allclose(out.astype(jnp.float32), ref.astype(jnp.float32),
                        atol=5e-2, rtol=5e-2), "mismatch vs reference"

    print("KERNEL_OK")
</pallas_src>

<mosaic_0001>
module attributes {stable_mosaic.version = 11 : i64} {
  func.func @_transition_kernel(%arg0: i32, %arg1: memref<128x256xbf16, #tpu.memory_space<vmem>>, %arg2: memref<1x256xf32, #tpu.memory_space<vmem>>, %arg3: memref<1x256xf32, #tpu.memory_space<vmem>>, %arg4: memref<256x1024xbf16, #tpu.memory_space<vmem>>, %arg5: memref<1x1024xf32, #tpu.memory_space<vmem>>, %arg6: memref<1024x256xbf16, #tpu.memory_space<vmem>>, %arg7: memref<1x256xf32, #tpu.memory_space<vmem>>, %arg8: memref<128x256xbf16, #tpu.memory_space<vmem>>) attributes {dimension_semantics = [#tpu.dimension_semantics<parallel>], iteration_bounds = array<i64: 4>, scalar_prefetch = 0 : i64, scratch_operands = 0 : i64, tpu.core_type = #tpu.core_type<tc>, window_params = [{transform_indices = @transform_0, window_bounds = array<i64: 128, 256>}, {pipeline_mode = #tpu.pipeline_mode<synchronous>, transform_indices = @transform_1, window_bounds = array<i64: 1, 256>}, {pipeline_mode = #tpu.pipeline_mode<synchronous>, transform_indices = @transform_2, window_bounds = array<i64: 1, 256>}, {pipeline_mode = #tpu.pipeline_mode<synchronous>, transform_indices = @transform_3, window_bounds = array<i64: 256, 1024>}, {pipeline_mode = #tpu.pipeline_mode<synchronous>, transform_indices = @transform_4, window_bounds = array<i64: 1, 1024>}, {pipeline_mode = #tpu.pipeline_mode<synchronous>, transform_indices = @transform_5, window_bounds = array<i64: 1024, 256>}, {pipeline_mode = #tpu.pipeline_mode<synchronous>, transform_indices = @transform_6, window_bounds = array<i64: 1, 256>}, {transform_indices = @transform_7, window_bounds = array<i64: 128, 256>}]} {
    %c0 = arith.constant 0 : index
    %c0_0 = arith.constant 0 : index
    %0 = vector.load %arg1[%c0, %c0_0] : memref<128x256xbf16, #tpu.memory_space<vmem>>, vector<128x256xbf16>
    %1 = arith.extf %0 : vector<128x256xbf16> to vector<128x256xf32>
    %cst = arith.constant dense<0.000000e+00> : vector<128xf32>
    %2 = vector.multi_reduction <add>, %1, %cst [1] : vector<128x256xf32> to vector<128xf32>
    %3 = vector.shape_cast %2 : vector<128xf32> to vector<128x1xf32>
    %cst_1 = arith.constant 2.560000e+02 : f32
    %4 = vector.broadcast %cst_1 : f32 to vector<128x1xf32>
    %5 = arith.divf %3, %4 : vector<128x1xf32>
    %6 = arith.mulf %1, %1 : vector<128x256xf32>
    %cst_2 = arith.constant dense<0.000000e+00> : vector<128xf32>
    %7 = vector.multi_reduction <add>, %6, %cst_2 [1] : vector<128x256xf32> to vector<128xf32>
    %8 = vector.shape_cast %7 : vector<128xf32> to vector<128x1xf32>
    %cst_3 = arith.constant 2.560000e+02 : f32
    %9 = vector.broadcast %cst_3 : f32 to vector<128x1xf32>
    %10 = arith.divf %8, %9 : vector<128x1xf32>
    %11 = arith.mulf %5, %5 : vector<128x1xf32>
    %12 = arith.subf %10, %11 : vector<128x1xf32>
    %cst_4 = arith.constant 0.000000e+00 : f32
    %13 = vector.broadcast %cst_4 : f32 to vector<128x1xf32>
    %14 = arith.maximumf %12, %13 : vector<128x1xf32>
    %15 = vector.broadcast %5 : vector<128x1xf32> to vector<128x256xf32>
    %16 = arith.subf %1, %15 : vector<128x256xf32>
    %cst_5 = arith.constant 9.99999974E-6 : f32
    %17 = vector.broadcast %cst_5 : f32 to vector<128x1xf32>
    %18 = arith.addf %14, %17 : vector<128x1xf32>
    %19 = math.rsqrt %18 : vector<128x1xf32>
    %20 = vector.broadcast %19 : vector<128x1xf32> to vector<128x256xf32>
    %21 = arith.mulf %16, %20 : vector<128x256xf32>
    %c0_6 = arith.constant 0 : index
    %c0_7 = arith.constant 0 : index
    %22 = vector.load %arg2[%c0_6, %c0_7] : memref<1x256xf32, #tpu.memory_space<vmem>>, vector<1x256xf32>
    %23 = vector.broadcast %22 : vector<1x256xf32> to vector<128x256xf32>
    %24 = arith.mulf %21, %23 : vector<128x256xf32>
    %c0_8 = arith.constant 0 : index
    %c0_9 = arith.constant 0 : index
    %25 = vector.load %arg3[%c0_8, %c0_9] : memref<1x256xf32, #tpu.memory_space<vmem>>, vector<1x256xf32>
    %26 = vector.broadcast %25 : vector<1x256xf32> to vector<128x256xf32>
    %27 = arith.addf %24, %26 : vector<128x256xf32>
    %c0_10 = arith.constant 0 : index
    %c0_11 = arith.constant 0 : index
    %28 = vector.load %arg4[%c0_10, %c0_11] : memref<256x1024xbf16, #tpu.memory_space<vmem>>, vector<256x1024xbf16>
    %29 = arith.truncf %27 : vector<128x256xf32> to vector<128x256xbf16>
    %cst_12 = arith.constant dense<0.000000e+00> : vector<128x1024xf32>
    %30 = tpu.matmul %29, %28, %cst_12 {dimension_numbers = #tpu.dot_dimension_numbers<[1], [0], [0], [1], [0, 0, 1, 1], [], []>} : vector<128x256xbf16>, vector<256x1024xbf16>, vector<128x1024xf32> -> vector<128x1024xf32>
    %c0_13 = arith.constant 0 : index
    %c0_14 = arith.constant 0 : index
    %31 = vector.load %arg5[%c0_13, %c0_14] : memref<1x1024xf32, #tpu.memory_space<vmem>>, vector<1x1024xf32>
    %32 = vector.broadcast %31 : vector<1x1024xf32> to vector<128x1024xf32>
    %33 = arith.addf %30, %32 : vector<128x1024xf32>
    %cst_15 = arith.constant 0.000000e+00 : f32
    %34 = vector.broadcast %cst_15 : f32 to vector<128x1024xf32>
    %35 = arith.maximumf %33, %34 : vector<128x1024xf32>
    %c0_16 = arith.constant 0 : index
    %c0_17 = arith.constant 0 : index
    %36 = vector.load %arg6[%c0_16, %c0_17] : memref<1024x256xbf16, #tpu.memory_space<vmem>>, vector<1024x256xbf16>
    %37 = arith.truncf %35 : vector<128x1024xf32> to vector<128x1024xbf16>
    %cst_18 = arith.constant dense<0.000000e+00> : vector<128x256xf32>
    %38 = tpu.matmul %37, %36, %cst_18 {dimension_numbers = #tpu.dot_dimension_numbers<[1], [0], [0], [1], [0, 0, 1, 1], [], []>} : vector<128x1024xbf16>, vector<1024x256xbf16>, vector<128x256xf32> -> vector<128x256xf32>
    %c0_19 = arith.constant 0 : index
    %c0_20 = arith.constant 0 : index
    %39 = vector.load %arg7[%c0_19, %c0_20] : memref<1x256xf32, #tpu.memory_space<vmem>>, vector<1x256xf32>
    %40 = vector.broadcast %39 : vector<1x256xf32> to vector<128x256xf32>
    %41 = arith.addf %38, %40 : vector<128x256xf32>
    %42 = arith.truncf %41 : vector<128x256xf32> to vector<128x256xbf16>
    %c0_21 = arith.constant 0 : index
    %c0_22 = arith.constant 0 : index
    %43 = vector.load %arg8[%c0_21, %c0_22] : memref<128x256xbf16, #tpu.memory_space<vmem>>, vector<128x256xbf16>
    tpu.vector_store %arg8[%c0_21, %c0_22], %42 {strides = array<i32>} : memref<128x256xbf16, #tpu.memory_space<vmem>>, vector<128x256xbf16>,
    return
  }
  func.func @transform_0(%arg0: i32) -> (i32, i32) {
    %c0_i32 = arith.constant 0 : i32
    %c0_i32_0 = arith.constant 0 : i32
    return %arg0, %c0_i32 : i32, i32
  }
  func.func @transform_1(%arg0: i32) -> (i32, i32) {
    %c0_i32 = arith.constant 0 : i32
    %c0_i32_0 = arith.constant 0 : i32
    %c0_i32_1 = arith.constant 0 : i32
    return %c0_i32, %c0_i32_0 : i32, i32
  }
  func.func @transform_2(%arg0: i32) -> (i32, i32) {
    %c0_i32 = arith.constant 0 : i32
    %c0_i32_0 = arith.constant 0 : i32
    %c0_i32_1 = arith.constant 0 : i32
    return %c0_i32, %c0_i32_0 : i32, i32
  }
  func.func @transform_3(%arg0: i32) -> (i32, i32) {
    %c0_i32 = arith.constant 0 : i32
    %c0_i32_0 = arith.constant 0 : i32
    %c0_i32_1 = arith.constant 0 : i32
    return %c0_i32, %c0_i32_0 : i32, i32
  }
  func.func @transform_4(%arg0: i32) -> (i32, i32) {
    %c0_i32 = arith.constant 0 : i32
    %c0_i32_0 = arith.constant 0 : i32
    %c0_i32_1 = arith.constant 0 : i32
    return %c0_i32, %c0_i32_0 : i32, i32
  }
  func.func @transform_5(%arg0: i32) -> (i32, i32) {
    %c0_i32 = arith.constant 0 : i32
    %c0_i32_0 = arith.constant 0 : i32
    %c0_i32_1 = arith.constant 0 : i32
    return %c0_i32, %c0_i32_0 : i32, i32
  }
  func.func @transform_6(%arg0: i32) -> (i32, i32) {
    %c0_i32 = arith.constant 0 : i32
    %c0_i32_0 = arith.constant 0 : i32
    %c0_i32_1 = arith.constant 0 : i32
    return %c0_i32, %c0_i32_0 : i32, i32
  }
  func.func @transform_7(%arg0: i32) -> (i32, i32) {
    %c0_i32 = arith.constant 0 : i32
    %c0_i32_0 = arith.constant 0 : i32
    return %arg0, %c0_i32 : i32, i32
  }
}

</mosaic_0001>

<bundles_post_ra>
// kernel: tpu_custom_call.1
= control target key start
LH: loop header
LB: loop body
LE: loop exit
PB: predicated region body
PF: predicated region fallthrough
CT: control target
= control target key end

     0   :  { %12 = vsyncpa [#allocation3], 0  ;;  %s5761_s0 = inlined_call_operand.hbm [shape: bf16[400,256], index: 0, kind: input, shape index: {}]   ;;  %s5762_s1 = inlined_call_operand.vmem [shape: f32[1,256], index: 1, kind: input, shape index: {}]   ;;  %s5763_s2 = inlined_call_operand.vmem [shape: f32[1,256], index: 2, kind: input, shape index: {}]   ;;  %s5764_s3 = inlined_call_operand.hbm [shape: bf16[256,1024], index: 3, kind: input, shape index: {}]   ;;  %s5765_s4 = inlined_call_operand.vmem [shape: f32[1,1024], index: 4, kind: input, shape index: {}]   ;;  %s5766_s5 = inlined_call_operand.hbm [shape: bf16[1024,256], index: 5, kind: input, shape index: {}]   ;;  %s5767_s6 = inlined_call_operand.vmem [shape: f32[1,256], index: 6, kind: input, shape index: {}]   ;;  %s5768_s7 = inlined_call_operand.hbm [shape: bf16[400,256], index: 7, kind: output, shape index: {}]  }
   0x1   :  { %14 = vsyncpa [#allocation3 + $0x1], 0 }
   0x2   :  { %15 = vsyncpa [#allocation6], 0 }
   0x3   :  { %16 = vsyncpa [#allocation4], 0 }
   0x4   :  { %18 = vsyncpa [#allocation4 + $0x1], 0  ;;  %s4668_s24 = smov 0   ;;  %s4670_s25 = smov 0  }
   0x5   :  { %s4672_s26 = smov 0   ;;  %s4674_s27 = smov 0  }
   0x6 LB: > { %s4689_s28 = sadd.s32 4294967295, %s4614_s27   ;;  %s3715_s29 = sadd.s32 4294967294, %s4614_s27   ;;  %s4614_s27 = sphi %s4674_s27, %s5866_s27   ;;  %s4610_s26 = sphi %s4672_s26, %s5870_s26   ;;  %s4606_s25 = sphi %s4670_s25, %s5869_s25   ;;  %s4602_s24 = sphi %s4668_s24, %s5868_s24  }
   0x7   : > { %s4693_s30 = sadd.s32 1, %s4614_s27   ;;  %s31_s8 = sadd.s32 1, %s4610_s26 }
   0x8   : > { %5798 = sst [smem:[#allocation12_spill]] %s4693_s30  ;;  %s28_s9 = ssub.s32 %s4614_s27, %s4693_s30 }
   0x9   : > { %p38_p0 = scmp.ne.s32.totalorder %s4610_s26, %s4606_s25  ;;  %p29_p1 = scmp.eq.s32.totalorder %s28_s9, 0 }
   0xa   : > { %p39_p2 = scmp.eq.s32.totalorder %s4614_s27, 0  ;;  %p44_p3 = scmp.ne.s32.totalorder %s4606_s25, %s4602_s24 }
   0xb   : > { %p5769_p4 = scmp.eq.s32.totalorder %s4689_s28, 0  ;;  %p194_p7 = scmp.eq.s32.totalorder %s4689_s28, 3 }
   0xc   : > { %s4705_s10 = scalar_select %p29_p1, %s4610_s26, %s31_s8  }
   0xd   : > { %p4707_p5 = por %p39_p2, %p38_p0  ;;  %p4713_p6 = por %p5769_p4, %p44_p3 }
   0xe   : > { %5799 = sst [smem:[#allocation13_spill]] %s4705_s10  ;;  %p200_p8 = scmp.eq.s32.totalorder %s3715_s29, 3 }
   0xf   : > { %s5800_s11 = scalar_select %p4707_p5, 1, 0 }
  0x10   : > { %s5801_s12 = scalar_select %p4713_p6, 1, 0 }
  0x11   : > { %p3716_p9 = scmp.ge.s32.totalorder %s4614_s27, 1  ;;  %p207_p10 = scmp.lt.s32.totalorder %s4614_s27, 5 }
  0x12   : > { %p4720_p11 = por %p194_p7, %p38_p0  ;;  %p4724_p12 = por %p200_p8, %p44_p3 }
  0x13   : > { %p4728_p13 = pnand %p3716_p9, %p207_p10  ;;  %s4616_s16 = smov [#allocation5]  }
  0x14   : > { %s5802_s13 = scalar_select %p4720_p11, 1, 0 }
  0x15   : > { %s5803_s14 = scalar_select %p4724_p12, 1, 0 }
  0x16   : > { %s5805_s15 = scalar_select %p4728_p13, 1, 0 }
  0x17   : > { %5804 = sst [smem:[#allocation14_spill]] %s5803_s14  ;;  %p4177_p1 = pneg %p4728_p13 }
  0x18   : > { %s225_s17 = sshll.u32 %s4616_s16, 4  ;;  %s4617_s19 = smov [#allocation7]   ;;  %s226_s17 = int_to_ptr.vmem [resolvable:$true] %s225_s17 }
  0x19   : > { %p4736_p2 = pnand %p4177_p1, %p5769_p4  ;;  %s241_s20 = sshll.u32 %s4617_s19, 4  ;;  %s4740_s20 = int_to_ptr.vmem [resolvable:$true] %s241_s20 }
  0x1a   : > { %s4460_s23 = scalar_lea.hbm %s5764_s3, 16384 }
  0x1b   : > { %p4461_p0 = scmp.ne.s32.totalorder %s5764_s3, %s4460_s23  ;;  %p4462_p3 = pneg %p4736_p2 }
  0x1c   : > { %p4467_p9 = scmp.lt.u32.totalorder %s4460_s23, %s5764_s3 }
  0x1d   : > { %p4463_p7 = pnand %p4462_p3, %p4461_p0 }
  0x1f   : > { %p4464_p8 = pneg %p4463_p7 }
  0x21   : > { %p4469_p10 = pnand %p4467_p9, %p4464_p8 }
  0x23   : > { %4472 = shalt.err (!%p4469_p10)
}
  0x24   : > { %s4473_s19 = scalar_lea.vmem %s226_s17, 16384  ;;  %p4481_p11 = scmp.lt.s32.totalorder %s226_s17, %s226_s17 }
  0x25   : > { %p4474_p1 = scmp.ne.s32.totalorder %s226_s17, %s4473_s19  ;;  %p4482_p6 = scmp.lt.s32.totalorder %s4473_s19, %s4473_s19 }
  0x27   : > { %p4476_p4 = pnand %p4474_p1, %p4462_p3  ;;  %p4483_p13 = por %p4482_p6, %p4481_p11 }
  0x29   : > { %p4477_p12 = pneg %p4476_p4 }
  0x2b   : > { %p4484_p5 = pnand %p4483_p13, %p4477_p12 }
  0x2d   : > { %4487 = shalt.err (!%p4484_p5)
}
  0x2e   : > { %s4618_s21 = smov 512   ;;  %s4619_s22 = smov 32  }
  0x2f   : > { %4180 = dma.hbm_to_vmem [thread:$0]  (!%p4736_p2), %s5764_s3, 16384, %s226_s17, [#allocation6], %s4618_s21, %s4618_s21, %s4619_s22  }
  0x30   : > { %s4488_s16 = scalar_lea.hbm %s5766_s5, 16384 }
  0x31   : > { %p4489_p4 = scmp.ne.s32.totalorder %s5766_s5, %s4488_s16  ;;  %p4495_p11 = scmp.lt.u32.totalorder %s4488_s16, %s5766_s5 }
  0x33   : > { %p4491_p5 = pnand %p4489_p4, %p4462_p3 }
  0x35   : > { %p4492_p6 = pneg %p4491_p5 }
  0x37   : > { %p4497_p12 = pnand %p4495_p11, %p4492_p6 }
  0x39   : > { %4500 = shalt.err (!%p4497_p12)
}
  0x3a   : > { %s4501_s17 = scalar_lea.vmem %s4740_s20, 16384  ;;  %p4509_p8 = scmp.lt.s32.totalorder %s4740_s20, %s4740_s20 }
  0x3b   : > { %p4502_p13 = scmp.ne.s32.totalorder %s4740_s20, %s4501_s17  ;;  %p4510_p9 = scmp.lt.s32.totalorder %s4501_s17, %s4501_s17 }
  0x3d   : > { %p4504_p0 = pnand %p4502_p13, %p4462_p3  ;;  %p4511_p10 = por %p4510_p9, %p4509_p8 }
  0x3f   : > { %p4505_p7 = pneg %p4504_p0 }
  0x41   : > { %p4512_p1 = pnand %p4511_p10, %p4505_p7 }
  0x43   : > { %4515 = shalt.err (!%p4512_p1)
}
  0x44   : > { %s4620_s30 = smov 128   ;;  %s4621_s10 = smov 8  }
  0x45   : > { %4183 = dma.hbm_to_vmem [thread:$0]  (!%p4736_p2), %s5766_s5, 16384, %s4740_s20, [#allocation6], %s4620_s30, %s4620_s30, %s4621_s10  }
  0x46   : > { %p3719_p4 = scmp.ge.s32.totalorder %s4614_s27, 4 }
  0x47   : > { %p5807_p3 = scmp.ne.s32.totalorder (!%p3719_p4), %s5800_s11, 0 }
  0x48   : > { %254 = sbr.rel (%p3719_p4) target bundleno = 114 (0x72), region = 40 }
  0x4f   : > { %257 = sbr.rel (!%p5807_p3) target bundleno = 114 (0x72), region = 44  ;;  %s258_s22 = sand.u32 (%p5807_p3), 1, %s4610_s26  }
  0x50   : > { %s3721_s23 = sshll.u32 (%p5807_p3), %s4614_s27, 4  ;;  %s3720_s29 = sshll.u32 (%p5807_p3), %s258_s22, 7 }
  0x51   : > { %s264_s8 = ssub.s32 (%p5807_p3), 50, %s3721_s23  ;;  %s4797_s16 = scalar_lea.sflag (%p5807_p3), [#allocation3], %s258_s22 }
  0x52   : > { %p265_p5 = scmp.lt.s32.totalorder (%p5807_p3), %s264_s8, 16  ;;  %s262_s20 = scalar_lea.vmem (%p5807_p3), [#allocation2], %s3720_s29 }
  0x56   : > { %s5872_s8 = smov (!%p265_p5, %s264_s8), 16 }
  0x57   : > { %s4794_s9 = sshll.u32 %s5872_s8, 7 }
  0x58   : > { %s270_s18 = ssub.s32 2048, %s4794_s9 }
  0x59   : > { %271 = vsyncadd %s4797_s16, %s270_s18  ;;  %p3724_p2 = scmp.ne.s32.totalorder %s4794_s9, 0  ;;  %s4019_s11 = sshll.u32 %s4614_s27, 11 }
  0x5a   : > { %s4805_s30 = scalar_lea.hbm %s5761_s0, %s4019_s11  ;;  %s277_s10 = sshll.u32 %s262_s20, 4  ;;  %s4807_s10 = int_to_ptr.vmem [resolvable:$true] %s277_s10 }
  0x5b   : > { %s4516_s14 = scalar_lea.hbm %s4805_s30, %s4794_s9  ;;  %s4520_s23 = scalar_lea.hbm %s5761_s0, 6400 }
  0x5c   : > { %p4517_p6 = scmp.ne.s32.totalorder %s4805_s30, %s4516_s14  ;;  %p4521_p13 = scmp.lt.u32.totalorder %s4805_s30, %s5761_s0 }
  0x5d   : > { %p4522_p0 = scmp.lt.u32.totalorder %s4520_s23, %s4516_s14  ;;  %p4524_p8 = scmp.lt.u32.totalorder %s4516_s14, %s4805_s30 }
  0x5e   : > { %p4518_p11 = pnand %p4517_p6, %p3724_p2 }
  0x5f   : > { %p4523_p7 = por %p4522_p0, %p4521_p13 }
  0x60   : > { %p4519_p12 = pneg %p4518_p11 }
  0x61   : > { %p4525_p9 = por %p4524_p8, %p4523_p7 }
  0x63   : > { %p4526_p10 = pnand %p4525_p9, %p4519_p12 }
  0x65   : > { %4529 = shalt.err (!%p4526_p10)
}
  0x66   : > { %s4530_s18 = scalar_lea.vmem %s4807_s10, %s4794_s9  ;;  %s4622_s20 = smov [#allocation2]  }
  0x67   : > { %p4531_p1 = scmp.ne.s32.totalorder %s4807_s10, %s4530_s18  ;;  %s4534_s11 = sshll.u32 %s4622_s20, 4  ;;  %s4535_s11 = int_to_ptr.vmem [resolvable:$false] %s4534_s11 }
  0x68   : > { %s4536_s19 = scalar_lea.vmem %s4535_s11, 4096  ;;  %p4537_p5 = scmp.lt.s32.totalorder %s4807_s10, %s4535_s11 }
  0x69   : > { %p4532_p4 = pnand %p4531_p1, %p3724_p2  ;;  %p4538_p6 = scmp.lt.s32.totalorder %s4536_s19, %s4530_s18 }
  0x6b   : > { %p4533_p3 = pneg %p4532_p4  ;;  %p4539_p11 = por %p4538_p6, %p4537_p5 }
  0x6d   : > { %p4540_p13 = pnand %p4539_p11, %p4533_p3 }
  0x6f   : > { %4543 = shalt.err (!%p4540_p13)
}
  0x70   : > { %s4623_s17 = smov 128   ;;  %s4624_s14 = smov 8  }
  0x71   : > { %283 = dma.hbm_to_vmem [thread:$0]  (%p3724_p2), %s4805_s30, %s4794_s9, %s4807_s10, %s4797_s16, %s4623_s17, %s4623_s17, %s4624_s14  }
  0x72 PF: > { %p5808_p12 = scmp.ne.s32.totalorder %s5805_s15, 0 }
  0x74   : > { %289 = sbr.rel (%p5808_p12) target bundleno = 1036 (0x40c), region = 48 }
  0x7b   : > { %s4837_s21 = sand.u32 1, %s4606_s25   ;;  %p5809_p0 = scmp.ne.s32.totalorder %s5801_s12, 0 }
  0x7c   : > { %s3730_s22 = sshll.u32 %s4837_s21, 7  ;;  %s292_s23 = scalar_lea.sflag [#allocation3], %s4837_s21 }
  0x7d   : > { %s4843_s29 = scalar_lea.vmem [#allocation2], %s3730_s22 }
  0x7e   : > { %4589 = dma.done.wait (%p5809_p0), %s292_s23, 2048  }
  0x7f   : > { %4591 = vsyncadd (%p5809_p0), %s292_s23, 4294965248  ;;  %p5810_p2 = scmp.eq.s32.totalorder %s4689_s28, 0 }
  0x81   : > { %4593 = dma.done.wait (%p5810_p2), [#allocation6], 32768   ;;  %p5811_p7 = pmov %p5810_p2 }
  0x82   : > { %v346_v0 = vld [vmem:[%s4843_s29] sm:$0xff]  ;;  %v347_v1 = vld [vmem:[%s4843_s29 + $0x8] sm:$0xff]  ;;  %v348_v6 = vld [vmem:[%s4843_s29 + $0x10] sm:$0xff]  ;;  %s5653_s19 = scalar_lea.vmem [#allocation8], %s3730_s22  ;;  %s3602_s17 = scalar_lea.sflag [#allocation4], %s4837_s21 }
  0x83   : > { %4595 = vsyncadd (%p5811_p7), [#allocation6], 4294934528  ;;  %v4855_v2 = vunpack.c.l.bf16 %v346_v0  ;;  %v4857_v3 = vunpack.c.h.bf16 %v346_v0  ;;  %v4859_v4 = vunpack.c.l.bf16 %v347_v1  ;;  %v4861_v5 = vunpack.c.h.bf16 %v347_v1  ;;  %v349_v12 = vld [vmem:[%s4843_s29 + $0x18] sm:$0xff]  ;;  %v350_v23 = vld [vmem:[%s4843_s29 + $0x20] sm:$0xff]  ;;  %p5863_p8 = scmp.ne.s32.totalorder %s5802_s13, 0 }
  0x84   : > { %v4877_v15 = vunpack.c.l.bf16 %v348_v6  ;;  %v4879_v16 = vunpack.c.h.bf16 %v348_v6  ;;  %v4881_v18 = vunpack.c.l.bf16 %v349_v12  ;;  %v4883_v19 = vunpack.c.h.bf16 %v349_v12  ;;  %v351_v24 = vld [vmem:[%s4843_s29 + $0x28] sm:$0xff]  ;;  %v352_v34 = vld [vmem:[%s4843_s29 + $0x30] sm:$0xff]  ;;  %v353_v38 = vld [vmem:[%s4843_s29 + $0x38] sm:$0xff]  ;;  %s4007_s14 = sshll.u32 (%p5863_p8), %s4689_s28, 4 }
  0x85   : > { %v394_v7 = vadd.f32 %v4857_v3, %v4855_v2  ;;  %v459_v8 = vmul.f32 %v4855_v2, %v4855_v2  ;;  %v460_v9 = vmul.f32 %v4857_v3, %v4857_v3  ;;  %v461_v10 = vmul.f32 %v4859_v4, %v4859_v4  ;;  %v787_v39 = vld [vmem:[#allocation5] sm:$0xff]  ;;  %v355_v60 = vld [vmem:[%s4843_s29 + $0x48] sm:$0xff]  ;;  %s3610_s22 = ssub.s32 (%p5863_p8), 50, %s4007_s14 }
  0x86   : > { %v462_v11 = vmul.f32 %v4861_v5, %v4861_v5  ;;  %v397_v14 = vadd.f32 %v4861_v5, %v4859_v4  ;;  %v400_v20 = vadd.f32 %v4879_v16, %v4877_v15  ;;  %v463_v21 = vmul.f32 %v4877_v15, %v4877_v15  ;;  %v791_v40 = vld [vmem:[#allocation5 + $0x20] sm:$0xff]  ;;  %p3611_p9 = scmp.lt.s32.totalorder (%p5863_p8), %s3610_s22, 16 }
  0x87   : > { %395 = vadd.xlane.f32.xlu0 %v394_v7  ;;  %v491_v13 = vadd.f32 %v460_v9, %v459_v8  ;;  %v464_v22 = vmul.f32 %v4879_v16, %v4879_v16  ;;  %v403_v25 = vadd.f32 %v4883_v19, %v4881_v18  ;;  %v465_v26 = vmul.f32 %v4881_v18, %v4881_v18  ;;  %v795_v44 = vld [vmem:[#allocation5 + $0x40] sm:$0xff] }
  0x88   : > { %v494_v17 = vadd.f32 %v462_v11, %v461_v10  ;;  %v466_v27 = vmul.f32 %v4883_v19, %v4883_v19  ;;  %v4899_v29 = vunpack.c.l.bf16 %v350_v23  ;;  %v4901_v30 = vunpack.c.h.bf16 %v350_v23  ;;  %v799_v45 = vld [vmem:[#allocation5 + $0x60] sm:$0xff]  ;;  %v356_v23 = vld [vmem:[%s4843_s29 + $0x50] sm:$0xff] }
  0x89   : > { %492 = vadd.xlane.f32.xlu1 %v491_v13  ;;  %v497_v28 = vadd.f32 %v464_v22, %v463_v21  ;;  %v4903_v32 = vunpack.c.l.bf16 %v351_v24  ;;  %v4905_v33 = vunpack.c.h.bf16 %v351_v24  ;;  %v4921_v47 = vunpack.c.l.bf16 %v352_v34  ;;  %v803_v51 = vld [vmem:[#allocation5 + $0x80] sm:$0xff] }
  0x8a   : > { %v500_v31 = vadd.f32 %v466_v27, %v465_v26  ;;  %v406_v35 = vadd.f32 %v4901_v30, %v4899_v29  ;;  %v467_v36 = vmul.f32 %v4899_v29, %v4899_v29  ;;  %v468_v37 = vmul.f32 %v4901_v30, %v4901_v30  ;;  %v807_v52 = vld [vmem:[#allocation5 + $0xa0] sm:$0xff]  ;;  %v357_v27 = vld [vmem:[%s4843_s29 + $0x58] sm:$0xff] }
  0x8b   : > { %398 = vadd.xlane.f32.xlu0 %v397_v14  ;;  %v409_v41 = vadd.f32 %v4905_v33, %v4903_v32  ;;  %v469_v42 = vmul.f32 %v4903_v32, %v4903_v32  ;;  %v470_v43 = vmul.f32 %v4905_v33, %v4905_v33  ;;  %v4923_v48 = vunpack.c.h.bf16 %v352_v34  ;;  %v354_v56 = vld [vmem:[%s4843_s29 + $0x40] sm:$0xff] }
  0x8c   : > { %v503_v46 = vadd.f32 %v468_v37, %v467_v36  ;;  %v4925_v49 = vunpack.c.l.bf16 %v353_v38  ;;  %v4927_v50 = vunpack.c.h.bf16 %v353_v38  ;;  %v3735_v54 = vcombine.high %v787_v39, %v791_v40  ;;  %v811_v7 = vld [vmem:[#allocation5 + $0xc0] sm:$0xff] }
  0x8d   : > { %495 = vadd.xlane.f32.xlu1 %v494_v17  ;;  %v506_v53 = vadd.f32 %v470_v43, %v469_v42  ;;  %v471_v55 = vmul.f32 %v4921_v47, %v4921_v47  ;;  %v3734_v57 = vcombine.low %v787_v39, %v791_v40  ;;  %v412_v58 = vadd.f32 %v4923_v48, %v4921_v47  ;;  %v815_v8 = vld [vmem:[#allocation5 + $0xe0] sm:$0xff] }
  0x8e   : > { %v472_v59 = vmul.f32 %v4923_v48, %v4923_v48  ;;  %1613 = vmatprep.subr.bf16.mxu1 %v3735_v54  ;;  %v3743_v61 = vcombine.high %v795_v44, %v799_v45  ;;  %v415_v62 = vadd.f32 %v4927_v50, %v4925_v49  ;;  %v3742_v63 = vcombine.low %v795_v44, %v799_v45  ;;  %v819_v21 = vld [vmem:[#allocation5 + $0x100] sm:$0xff] }
  0x8f   : > { %401 = vadd.xlane.f32.xlu0 %v400_v20  ;;  %1614 = vmatpush1.bf16.msra.mxu1 %v3734_v57  ;;  %v473_v0 = vmul.f32 %v4925_v49, %v4925_v49  ;;  %v474_v1 = vmul.f32 %v4927_v50, %v4927_v50  ;;  %v3751_v6 = vcombine.high %v803_v51, %v807_v52  ;;  %v4943_v10 = vunpack.c.l.bf16 %v354_v56  ;;  %v823_v22 = vld [vmem:[#allocation5 + $0x120] sm:$0xff] }
  0x90   : > { %1615 = vmatprep.subr.bf16.mxu1 %v3743_v61  ;;  %v509_v9 = vadd.f32 %v472_v59, %v471_v55  ;;  %v4945_v11 = vunpack.c.h.bf16 %v354_v56  ;;  %v4947_v12 = vunpack.c.l.bf16 %v355_v60  ;;  %v4949_v13 = vunpack.c.h.bf16 %v355_v60  ;;  %v827_v37 = vld [vmem:[#allocation5 + $0x140] sm:$0xff]  ;;  %v359_v61 = vld [vmem:[%s4843_s29 + $0x68] sm:$0xff] }
  0x91   : > { %404 = vadd.xlane.f32.xlu1 %v403_v25  ;;  %v3750_v14 = vcombine.low %v803_v51, %v807_v52  ;;  %v512_v17 = vadd.f32 %v474_v1, %v473_v0  ;;  %v3759_v20 = vcombine.high %v811_v7, %v815_v8  ;;  %v475_v25 = vmul.f32 %v4943_v10, %v4943_v10  ;;  %v831_v38 = vld [vmem:[#allocation5 + $0x160] sm:$0xff] }
  0x92   : > { %v418_v24 = vadd.f32 %v4945_v11, %v4943_v10  ;;  %v476_v26 = vmul.f32 %v4945_v11, %v4945_v11  ;;  %v477_v34 = vmul.f32 %v4947_v12, %v4947_v12  ;;  %v3767_v36 = vcombine.high %v819_v21, %v823_v22  ;;  %v835_v51 = vld [vmem:[#allocation5 + $0x180] sm:$0xff] }
  0x93   : > { %498 = vadd.xlane.f32.xlu0 %v497_v28  ;;  %1616 = vmatpush1.bf16.msra.mxu1 %v3742_v63  ;;  %v421_v28 = vadd.f32 %v4949_v13, %v4947_v12  ;;  %v4965_v40 = vunpack.c.l.bf16 %v356_v23  ;;  %v4969_v42 = vunpack.c.l.bf16 %v357_v27  ;;  %v4971_v43 = vunpack.c.h.bf16 %v357_v27  ;;  %v839_v52 = vld [vmem:[#allocation5 + $0x1a0] sm:$0xff]  ;;  %v361_v27 = vld [vmem:[%s4843_s29 + $0x78] sm:$0xff] }
  0x94   : > { %1617 = vmatprep.subr.bf16.mxu1 %v3751_v6  ;;  %v515_v39 = vadd.f32 %v476_v26, %v475_v25  ;;  %v3766_v44 = vcombine.low %v819_v21, %v823_v22  ;;  %v358_v56 = vld [vmem:[%s4843_s29 + $0x60] sm:$0xff] }
  0x95   : > { %501 = vadd.xlane.f32.xlu1 %v500_v31  ;;  %v3758_v31 = vcombine.low %v811_v7, %v815_v8  ;;  %5813 = vst [vmem:[#allocation16_spill] sm:$0xff] %v4969_v42  ;;  %5814 = vst [vmem:[#allocation17_spill] sm:$0xff] %v4971_v43  ;;  %v479_v54 = vmul.f32 %v4965_v40, %v4965_v40  ;;  %v427_v57 = vadd.f32 %v4971_v43, %v4969_v42  ;;  %v843_v63 = vld [vmem:[#allocation5 + $0x1c0] sm:$0xff] }
  0x96   : > { %v481_v59 = vmul.f32 %v4969_v42, %v4969_v42  ;;  %v482_v60 = vmul.f32 %v4971_v43, %v4971_v43  ;;  %v847_v0 = vld [vmem:[#allocation5 + $0x1e0] sm:$0xff]  ;;  %v4987_v6 = vunpack.c.l.bf16 %v358_v56  ;;  %v4989_v7 = vunpack.c.h.bf16 %v358_v56 }
  0x97   : > { %407 = vadd.xlane.f32.xlu0 %v406_v35  ;;  %1618 = vmatpush1.bf16.msra.mxu1 %v3750_v14  ;;  %v478_v35 = vmul.f32 %v4949_v13, %v4949_v13  ;;  %v4991_v8 = vunpack.c.l.bf16 %v359_v61  ;;  %v3782_v14 = vcombine.low %v835_v51, %v839_v52  ;;  %v851_v21 = vld [vmem:[#allocation5 + $0x200] sm:$0xff] }
  0x98   : > { %1619 = vmatprep.subr.bf16.mxu1 %v3759_v20  ;;  %5815 = vst [vmem:[#allocation18_spill] sm:$0xff] %v4987_v6  ;;  %5816 = vst [vmem:[#allocation19_spill] sm:$0xff] %v4989_v7  ;;  %v3791_v20 = vcombine.high %v843_v63, %v847_v0  ;;  %v855_v22 = vld [vmem:[#allocation5 + $0x220] sm:$0xff]  ;;  %v483_v25 = vmul.f32 %v4987_v6, %v4987_v6  ;;  %v484_v26 = vmul.f32 %v4989_v7, %v4989_v7 }
  0x99   : > { %410 = vadd.xlane.f32.xlu1 %v409_v41  ;;  %v4967_v41 = vunpack.c.h.bf16 %v356_v23  ;;  %v518_v45 = vadd.f32 %v478_v35, %v477_v34  ;;  %5817 = vst [vmem:[#allocation20_spill] sm:$0xff] %v4991_v8  ;;  %v360_v23 = vld [vmem:[%s4843_s29 + $0x70] sm:$0xff]  ;;  %v859_v34 = vld [vmem:[#allocation5 + $0x240] sm:$0xff] }
  0x9a   : > { %v863_v35 = vld [vmem:[#allocation5 + $0x260] sm:$0xff] }
  0x9b   : > { %504 = vadd.xlane.f32.xlu0 %v503_v46  ;;  %5812 = vst [vmem:[#allocation15_spill] sm:$0xff] %v4967_v41  ;;  %1620 = vmatpush1.bf16.msra.mxu1 %v3758_v31  ;;  %v3775_v46 = vcombine.high %v827_v37, %v831_v38  ;;  %v480_v55 = vmul.f32 %v4967_v41, %v4967_v41  ;;  %v867_v56 = vld [vmem:[#allocation5 + $0x280] sm:$0xff] }
  0x9c   : > { %1621 = vmatprep.subr.bf16.mxu1 %v3767_v36  ;;  %v3790_v31 = vcombine.low %v843_v63, %v847_v0  ;;  %v485_v36 = vmul.f32 %v4991_v8, %v4991_v8  ;;  %v3806_v0 = vcombine.low %v859_v34, %v863_v35 }
  0x9d   : > { %507 = vadd.xlane.f32.xlu1 %v506_v53  ;;  %v424_v53 = vadd.f32 %v4967_v41, %v4965_v40  ;;  %v521_v1 = vadd.f32 %v480_v55, %v479_v54  ;;  %v5021_v54 = vunpack.c.h.bf16 %v361_v27  ;;  %v3798_v55 = vcombine.low %v851_v21, %v855_v22 }
  0x9f   : > { %413 = vadd.xlane.f32.xlu0 %v412_v58  ;;  %1622 = vmatpush1.bf16.msra.mxu1 %v3766_v44  ;;  %v3774_v58 = vcombine.low %v827_v37, %v831_v38  ;;  %v3799_v38 = vcombine.high %v851_v21, %v855_v22  ;;  %v5011_v44 = vld [vmem:[#allocation5 + $0x28] sm:$0xff]  ;;  %5822 = vst [vmem:[#allocation25_spill] sm:$0xff] %v5021_v54  ;;  %v879_v21 = vld [vmem:[#allocation5 + $0x2e0] sm:$0xff] }
  0xa0   : > { %1623 = vmatprep.subr.bf16.mxu1 %v3775_v46  ;;  %v5013_v46 = vunpack.c.l.bf16 %v360_v23 }
  0xa1   : > { %416 = vadd.xlane.f32.xlu1 %v415_v62  ;;  %v3783_v62 = vcombine.high %v835_v51, %v839_v52  ;;  %v5015_v51 = vunpack.c.h.bf16 %v360_v23  ;;  %v5099_v52 = vld [vmem:[#allocation5 + $0x148] sm:$0xff] }
  0xa2   : > { %5819 = vst [vmem:[#allocation22_spill] sm:$0xff] %v5013_v46 }
  0xa3   : > { %510 = vadd.xlane.f32.xlu0 %v509_v9  ;;  %v4993_v9 = vunpack.c.h.bf16 %v359_v61  ;;  %1624 = vmatpush1.bf16.msra.mxu1 %v3774_v58  ;;  %5820 = vst [vmem:[#allocation23_spill] sm:$0xff] %v5015_v51  ;;  %v487_v61 = vmul.f32 %v5013_v46, %v5013_v46 }
  0xa4   : > { %1625 = vmatprep.subr.bf16.mxu1 %v3783_v62  ;;  %v488_v62 = vmul.f32 %v5015_v51, %v5015_v51 }
  0xa5   : > { %513 = vadd.xlane.f32.xlu1 %v512_v17  ;;  %5818 = vst [vmem:[#allocation21_spill] sm:$0xff] %v4993_v9  ;;  %v524_v17 = vadd.f32 %v482_v60, %v481_v59  ;;  %v486_v37 = vmul.f32 %v4993_v9, %v4993_v9  ;;  %v3807_v59 = vcombine.high %v859_v34, %v863_v35  ;;  %v891_v34 = vld [vmem:[#allocation5 + $0x340] sm:$0xff] }
  0xa6   : > { %v436_v60 = vadd.f32 %v5015_v51, %v5013_v46  ;;  %v533_v22 = vadd.f32 %v488_v62, %v487_v61  ;;  %v895_v35 = vld [vmem:[#allocation5 + $0x360] sm:$0xff]  ;;  %v5131_v46 = vld [vmem:[#allocation5 + $0x1e8] sm:$0xff] }
  0xa7   : > { %419 = vadd.xlane.f32.xlu0 %v418_v24  ;;  %v430_v24 = vadd.f32 %v4989_v7, %v4987_v6  ;;  %1626 = vmatpush1.bf16.msra.mxu1 %v3782_v14  ;;  %v530_v58 = vadd.f32 %v486_v37, %v485_v36  ;;  %v3839_v37 = vcombine.high %v891_v34, %v895_v35 }
  0xa8   : > { %1627 = vmatprep.subr.bf16.mxu1 %v3791_v20  ;;  %5826 = vst [vmem:[#allocation29_spill] sm:$0xff] %v5131_v46 }
  0xa9   : > { %422 = vadd.xlane.f32.xlu1 %v421_v28  ;;  %v433_v28 = vadd.f32 %v4993_v9, %v4991_v8  ;;  %v5133_v9 = vld [vmem:[#allocation5 + $0x208] sm:$0xff] }
  0xaa   : > { %5827 = vst [vmem:[#allocation30_spill] sm:$0xff] %v5133_v9  ;;  %v5135_v8 = vld [vmem:[#allocation5 + $0x228] sm:$0xff] }
  0xab   : > { %516 = vadd.xlane.f32.xlu0 %v515_v39  ;;  %v5009_v39 = vld [vmem:[#allocation5 + $0x8] sm:$0xff]  ;;  %1628 = vmatpush1.bf16.msra.mxu1 %v3790_v31  ;;  %5828 = vst [vmem:[#allocation31_spill] sm:$0xff] %v5135_v8 }
  0xac   : > { %1629 = vmatprep.subr.bf16.mxu1 %v3799_v38  ;;  %v899_v38 = vld [vmem:[#allocation5 + $0x380] sm:$0xff]  ;;  %v3737_v62 = vcombine.high %v5009_v39, %v5011_v44 }
  0xad   : > { %519 = vadd.xlane.f32.xlu1 %v518_v45  ;;  %v527_v45 = vadd.f32 %v484_v26, %v483_v25  ;;  %v883_v26 = vld [vmem:[#allocation5 + $0x300] sm:$0xff] }
  0xaf   : > { %425 = vadd.xlane.f32.xlu0 %v424_v53  ;;  %v5019_v53 = vunpack.c.l.bf16 %v361_v27  ;;  %1630 = vmatpush1.bf16.msra.mxu1 %v3798_v55  ;;  %v887_v27 = vld [vmem:[#allocation5 + $0x320] sm:$0xff]  ;;  %v3838_v55 = vcombine.low %v891_v34, %v895_v35 }
  0xb0   : > { %1631 = vmatprep.subr.bf16.mxu1 %v3807_v59  ;;  %v3831_v31 = vcombine.high %v883_v26, %v887_v27  ;;  %v3830_v36 = vcombine.low %v883_v26, %v887_v27 }
  0xb1   : > { %428 = vadd.xlane.f32.xlu1 %v427_v57  ;;  %5821 = vst [vmem:[#allocation24_spill] sm:$0xff] %v5019_v53  ;;  %v871_v57 = vld [vmem:[#allocation5 + $0x2a0] sm:$0xff]  ;;  %v439_v63 = vadd.f32 %v5021_v54, %v5019_v53  ;;  %v489_v14 = vmul.f32 %v5019_v53, %v5019_v53 }
  0xb2   : > { %v3815_v20 = vcombine.high %v867_v56, %v871_v57  ;;  %v3814_v23 = vcombine.low %v867_v56, %v871_v57  ;;  %v907_v57 = vld [vmem:[#allocation5 + $0x3c0] sm:$0xff] }
  0xb3   : > { %522 = vadd.xlane.f32.xlu0 %v521_v1  ;;  %v875_v1 = vld [vmem:[#allocation5 + $0x2c0] sm:$0xff]  ;;  %1632 = vmatpush1.bf16.msra.mxu1 %v3806_v0 }
  0xb4   : > { %1633 = vmatprep.subr.bf16.mxu1 %v3815_v20  ;;  %v3823_v25 = vcombine.high %v875_v1, %v879_v21  ;;  %v701_v20 = vlaneseq }
  0xb5   : > { %525 = vadd.xlane.f32.xlu1 %v524_v17  ;;  %v490_v17 = vmul.f32 %v5021_v54, %v5021_v54  ;;  %v5115_v54 = vld [vmem:[#allocation5 + $0x188] sm:$0xff] }
  0xb6   : > { %v5043_v27 = vshrl.u32 %v701_v20, 7 }
  0xb7   : > { %431 = vadd.xlane.f32.xlu0 %v430_v24  ;;  %v536_v24 = vadd.f32 %v490_v17, %v489_v14  ;;  %1634 = vmatpush1.bf16.msra.mxu1 %v3814_v23 }
  0xb8   : > { %1635 = vmatprep.subr.bf16.mxu1 %v3823_v25  ;;  %5823 = vst [vmem:[#allocation26_spill] sm:$0xff] %v5043_v27 }
  0xb9   : > { %434 = vadd.xlane.f32.xlu1 %v433_v28  ;;  %v3822_v28 = vcombine.low %v875_v1, %v879_v21 }
  0xbb   : > { %528 = vadd.xlane.f32.xlu0 %v527_v45  ;;  %1636 = vmatpush1.bf16.msra.mxu1 %v3822_v28  ;;  %v903_v45 = vld [vmem:[#allocation5 + $0x3a0] sm:$0xff] }
  0xbc   : > { %1637 = vmatprep.subr.bf16.mxu1 %v3831_v31  ;;  %v3847_v56 = vcombine.high %v899_v38, %v903_v45  ;;  %v3846_v59 = vcombine.low %v899_v38, %v903_v45  ;;  %v5052_v45 = vsub.s32 1, %v5043_v27 }
  0xbd   : > { %531 = vadd.xlane.f32.xlu1 %v530_v58  ;;  %v911_v58 = vld [vmem:[#allocation5 + $0x3e0] sm:$0xff] }
  0xbe   : > { %v3854_v61 = vcombine.low %v907_v57, %v911_v58  ;;  %5824 = vst [vmem:[#allocation27_spill] sm:$0xff] %v5052_v45 }
  0xbf   : > { %437 = vadd.xlane.f32.xlu0 %v436_v60  ;;  %1638 = vmatpush1.bf16.msra.mxu1 %v3830_v36  ;;  %v3855_v60 = vcombine.high %v907_v57, %v911_v58  ;;  %v699_v58 = vld [vmem:[%s5762_s1] sm:$0x3] }
  0xc0   : > { %1639 = vmatprep.subr.bf16.mxu1 %v3839_v37 }
  0xc1   : > { %440 = vadd.xlane.f32.xlu1 %v439_v63 }
  0xc3   : > { %534 = vadd.xlane.f32.xlu0 %v533_v22  ;;  %1640 = vmatpush1.bf16.msra.mxu1 %v3838_v55 }
  0xc4   : > { %1641 = vmatprep.subr.bf16.mxu1 %v3847_v56 }
  0xc5   : > { %537 = vadd.xlane.f32.xlu1 %v536_v24 }
  0xc7   : > { %1642 = vmatpush1.bf16.msra.mxu1 %v3846_v59  ;;  %v5060_v59 = vsub.s32 0, %v5043_v27  ;;  %v5101_v27 = vld [vmem:[#allocation5 + $0x168] sm:$0xff] }
  0xc8   : > { %1643 = vmatprep.subr.bf16.mxu1 %v3855_v60 }
  0xc9   : > { %5825 = vst [vmem:[#allocation28_spill] sm:$0xff] %v5060_v59 }
  0xcb   : > { %1644 = vmatpush1.bf16.msra.mxu1 %v3854_v61  ;;  %v743_v61 = vld [vmem:[%s5763_s2] sm:$0x3] }
  0xcc   : > { %1726 = vmatprep.subr.bf16.mxu1 %v3737_v62 }
 0x114   : > { %v396_v63 = vpop.xlane.xlu0 %395 }
 0x115   : > { %v5037_v0 = vmul.f32 0.00390625, %v396_v63 }
 0x116   : > { %v493_v1 = vpop.xlane.xlu1 %492 }
 0x117   : > { %v539_v14 = vmul.f32 0.00390625, %v493_v1  ;;  %v555_v17 = vmul.f32 %v5037_v0, %v5037_v0  ;;  %v5065_v1 = vld [vmem:[#allocation5 + $0x48] sm:$0xff]  ;;  %v603_v43 = vsub.f32 %v4855_v2, %v5037_v0 }
 0x118   : > { %v399_v21 = vpop.xlane.xlu0 %398 }
 0x119   : > { %v571_v22 = vsub.f32 %v539_v14, %v555_v17  ;;  %v5041_v23 = vmul.f32 0.00390625, %v399_v21  ;;  %v5067_v14 = vld [vmem:[#allocation5 + $0x68] sm:$0xff] }
 0x11a   : > { %v496_v24 = vpop.xlane.xlu1 %495  ;;  %v5069_v17 = vld [vmem:[#allocation5 + $0x88] sm:$0xff] }
 0x11b   : > { %v587_v25 = vmax.f32 %v571_v22, 0.0  ;;  %v540_v26 = vmul.f32 0.00390625, %v496_v24  ;;  %v556_v28 = vmul.f32 %v5041_v23, %v5041_v23  ;;  %v5074_v24 = vrot.slane %v699_v58, %v5052_v45 }
 0x11c   : > { %v402_v31 = vpop.xlane.xlu0 %401  ;;  %v606_v2 = vsub.f32 %v4861_v5, %v5041_v23 }
 0x11d   : > { %v635_v34 = vadd.f32 1e-05, %v587_v25  ;;  %v5047_v35 = vmul.f32 0.00390625, %v402_v31  ;;  %v572_v36 = vsub.f32 %v540_v26, %v556_v28  ;;  %v5076_v25 = vld [vmem:[#allocation5 + $0xa8] sm:$0xff] }
 0x11e   : > { %v405_v37 = vpop.xlane.xlu1 %404  ;;  %v5078_v26 = vld [vmem:[#allocation5 + $0xc8] sm:$0xff] }
 0x11f   : > { %4427 = vrsqrt.f32 %v635_v34  ;;  %v5049_v38 = vmul.f32 0.00390625, %v405_v37  ;;  %v588_v55 = vmax.f32 %v572_v36, 0.0  ;;  %v557_v56 = vmul.f32 %v5047_v35, %v5047_v35  ;;  %v5080_v28 = vld [vmem:[#allocation5 + $0xe8] sm:$0xff] }
 0x120   : > { %v499_v57 = vpop.xlane.xlu0 %498  ;;  %v5083_v34 = vrot.slane %v743_v61, %v5052_v45  ;;  %v5086_v36 = vrot.slane %v699_v58, %v5060_v59  ;;  %v5089_v37 = vrot.slane %v743_v61, %v5060_v59  ;;  %v5117_v61 = vld [vmem:[#allocation5 + $0x1a8] sm:$0xff]  ;;  %v604_v59 = vsub.f32 %v4857_v3, %v5037_v0 }
 0x121   : > { %v541_v60 = vmul.f32 0.00390625, %v499_v57  ;;  %v636_v62 = vadd.f32 1e-05, %v588_v55  ;;  %v558_v21 = vmul.f32 %v5049_v38, %v5049_v38  ;;  %v5091_v55 = vld [vmem:[#allocation5 + $0x108] sm:$0xff]  ;;  %v605_v3 = vsub.f32 %v4859_v4, %v5041_v23 }
 0x122   : > { %v502_v63 = vpop.xlane.xlu1 %501  ;;  %v607_v0 = vsub.f32 %v4877_v15, %v5047_v35  ;;  %v609_v6 = vsub.f32 %v4881_v18, %v5049_v38 }
 0x123   : > { %v573_v20 = vsub.f32 %v541_v60, %v557_v56  ;;  %v542_v22 = vmul.f32 0.00390625, %v502_v63  ;;  %4429 = vrsqrt.f32 %v636_v62  ;;  %v5093_v56 = vld [vmem:[#allocation5 + $0x128] sm:$0xff] }
 0x124   : > { %v408_v31 = vpop.xlane.xlu0 %407  ;;  %v5127_v62 = vld [vmem:[#allocation5 + $0x1c8] sm:$0xff] }
 0x125   : > { %v589_v57 = vmax.f32 %v573_v20, 0.0  ;;  %v574_v60 = vsub.f32 %v542_v22, %v558_v21  ;;  %v5095_v63 = vmul.f32 0.00390625, %v408_v31 }
 0x126   : > { %v411_v58 = vpop.xlane.xlu1 %410 }
 0x127   : > { %v637_v22 = vadd.f32 1e-05, %v589_v57  ;;  %v590_v31 = vmax.f32 %v574_v60, 0.0  ;;  %v5119_v53 = vmul.f32 0.00390625, %v411_v58  ;;  %v559_v45 = vmul.f32 %v5095_v63, %v5095_v63 }
 0x128   : > { %v505_v20 = vpop.xlane.xlu0 %504 }
 0x129   : > { %v4428_v21 = vpop.eup %4427  ;;  %4431 = vrsqrt.f32 %v637_v22  ;;  %v638_v51 = vadd.f32 1e-05, %v590_v31  ;;  %v543_v58 = vmul.f32 0.00390625, %v505_v20  ;;  %v560_v57 = vmul.f32 %v5119_v53, %v5119_v53 }
 0x12a   : > { %v508_v7 = vpop.xlane.xlu1 %507  ;;  %v668_v31 = vmul.f32 %v4428_v21, %v604_v59  ;;  %v667_v60 = vmul.f32 %v4428_v21, %v603_v43 }
 0x12b   : > { %4433 = vrsqrt.f32 %v638_v51  ;;  %v575_v20 = vsub.f32 %v543_v58, %v559_v45  ;;  %v544_v22 = vmul.f32 0.00390625, %v508_v7  ;;  %v608_v58 = vsub.f32 %v4879_v16, %v5047_v35 }
 0x12c   : > { %v414_v42 = vpop.xlane.xlu0 %413  ;;  %v610_v16 = vsub.f32 %v4883_v19, %v5049_v38  ;;  %v612_v38 = vsub.f32 %v4901_v30, %v5095_v63 }
 0x12d   : > { %v591_v51 = vmax.f32 %v575_v20, 0.0  ;;  %v576_v45 = vsub.f32 %v544_v22, %v560_v57  ;;  %v5155_v7 = vmul.f32 0.00390625, %v414_v42  ;;  %v4430_v59 = vpop.eup %4429  ;;  %v712_v42 = vmul.f32 %v5074_v24, %v668_v31 }
 0x12e   : > { %v417_v41 = vpop.xlane.xlu1 %416  ;;  %v670_v22 = vmul.f32 %v4430_v59, %v606_v2  ;;  %v669_v15 = vmul.f32 %v4430_v59, %v605_v3 }
 0x12f   : > { %v639_v4 = vadd.f32 1e-05, %v591_v51  ;;  %v592_v20 = vmax.f32 %v576_v45, 0.0  ;;  %v5166_v57 = vmul.f32 0.00390625, %v417_v41  ;;  %v561_v5 = vmul.f32 %v5155_v7, %v5155_v7 }
 0x130   : > { %v511_v23 = vpop.xlane.xlu0 %510  ;;  %v714_v31 = vmul.f32 %v5074_v24, %v670_v22  ;;  %v711_v51 = vmul.f32 %v5086_v36, %v667_v60  ;;  %v713_v19 = vmul.f32 %v5086_v36, %v669_v15 }
 0x131   : > { %4435 = vrsqrt.f32 %v639_v4  ;;  %v640_v43 = vadd.f32 1e-05, %v592_v20  ;;  %v545_v35 = vmul.f32 0.00390625, %v511_v23  ;;  %v562_v21 = vmul.f32 %v5166_v57, %v5166_v57 }
 0x132   : > { %v514_v41 = vpop.xlane.xlu1 %513  ;;  %v756_v4 = vadd.f32 %v5083_v34, %v712_v42  ;;  %v758_v20 = vadd.f32 %v5083_v34, %v714_v31  ;;  %v757_v60 = vadd.f32 %v5089_v37, %v713_v19  ;;  %v755_v15 = vadd.f32 %v5089_v37, %v711_v51 }
 0x133   : > { %v4432_v45 = vpop.eup %4431  ;;  %4437 = vrsqrt.f32 %v640_v43  ;;  %v577_v3 = vsub.f32 %v545_v35, %v561_v5  ;;  %v546_v59 = vmul.f32 0.00390625, %v514_v41 }
 0x134   : > { %v420_v2 = vpop.xlane.xlu0 %419  ;;  %v672_v23 = vmul.f32 %v4432_v45, %v608_v58  ;;  %v5186_v43 = vpack.c.bf16 %v758_v20, %v756_v4  ;;  %v671_v46 = vmul.f32 %v4432_v45, %v607_v0 }
 0x135   : > { %v4434_v18 = vpop.eup %4433  ;;  %v593_v9 = vmax.f32 %v577_v3, 0.0  ;;  %v578_v22 = vsub.f32 %v546_v59, %v562_v21  ;;  %v5183_v8 = vmul.f32 0.00390625, %v420_v2  ;;  %v5193_v21 = vpack.c.bf16 %v757_v60, %v755_v15 }
 0x136   : > { %v423_v5 = vpop.xlane.xlu1 %422  ;;  %v674_v35 = vmul.f32 %v4434_v18, %v610_v16  ;;  %v716_v30 = vmul.f32 %v5074_v24, %v672_v23  ;;  %v673_v31 = vmul.f32 %v4434_v18, %v609_v6  ;;  %1645 = vmatprep.mubr.bf16.mxu1 %v5186_v43  ;;  %v613_v16 = vsub.f32 %v4903_v32, %v5119_v53 }
 0x137   : > { %v641_v41 = vadd.f32 1e-05, %v593_v9  ;;  %v594_v42 = vmax.f32 %v578_v22, 0.0  ;;  %v5190_v58 = vmul.f32 0.00390625, %v423_v5  ;;  %v563_v3 = vmul.f32 %v5183_v8, %v5183_v8  ;;  %1646 = vmatmul.mubr.bf16.vlgmr.msra.gmra.mrb[0].mxu1 %v5193_v21 }
 0x138   : > { %v517_v59 = vpop.xlane.xlu0 %516  ;;  %v718_v19 = vmul.f32 %v5074_v24, %v674_v35  ;;  %v614_v6 = vsub.f32 %v4905_v33, %v5119_v53  ;;  %v760_v45 = vadd.f32 %v5083_v34, %v716_v30  ;;  %v5829_v32 = vcombine.low %v5009_v39, %v5011_v44 }
 0x139   : > { %4439 = vrsqrt.f32 %v641_v41  ;;  %v642_v9 = vadd.f32 1e-05, %v594_v42  ;;  %v547_v51 = vmul.f32 0.00390625, %v517_v59  ;;  %v564_v0 = vmul.f32 %v5190_v58, %v5190_v58 }
 0x13a   : > { %v520_v18 = vpop.xlane.xlu1 %519  ;;  %v762_v2 = vadd.f32 %v5083_v34, %v718_v19  ;;  %1727 = vmatpush1.bf16.msra.mxu1 %v5829_v32  ;;  %v715_v33 = vmul.f32 %v5086_v36, %v671_v46  ;;  %v615_v53 = vsub.f32 %v4921_v47, %v5155_v7  ;;  %v5830_v22 = vcombine.high %v5065_v1, %v5067_v14 }
 0x13b   : > { %v4436_v4 = vpop.eup %4435  ;;  %4441 = vrsqrt.f32 %v642_v9  ;;  %v579_v20 = vsub.f32 %v547_v51, %v563_v3  ;;  %v548_v23 = vmul.f32 0.00390625, %v520_v18  ;;  %v717_v15 = vmul.f32 %v5086_v36, %v673_v31 }
 0x13c   : > { %1728 = vmatprep.subr.bf16.mxu1 %v5830_v22  ;;  %v426_v60 = vpop.xlane.xlu0 %425  ;;  %v5216_v5 = vpack.c.bf16 %v762_v2, %v760_v45  ;;  %v676_v35 = vmul.f32 %v4436_v4, %v612_v38  ;;  %v616_v39 = vsub.f32 %v4923_v48, %v5155_v7  ;;  %v759_v3 = vadd.f32 %v5089_v37, %v715_v33 }
 0x13d   : > { %v4438_v30 = vpop.eup %4437  ;;  %v595_v44 = vmax.f32 %v579_v20, 0.0  ;;  %v580_v41 = vsub.f32 %v548_v23, %v564_v0  ;;  %v5221_v46 = vmul.f32 0.00390625, %v426_v60  ;;  %v761_v59 = vadd.f32 %v5089_v37, %v717_v15 }
 0x13e   : > { %v429_v42 = vpop.xlane.xlu1 %428  ;;  %1655 = vmatprep.mubr.bf16.mxu1 %v5216_v5  ;;  %v678_v19 = vmul.f32 %v4438_v30, %v614_v6  ;;  %v720_v9 = vmul.f32 %v5074_v24, %v676_v35  ;;  %v5831_v51 = vcombine.low %v5065_v1, %v5067_v14  ;;  %v5832_v48 = vsub.f32 %v4899_v29, %v5095_v63 }
 0x13f   : > { %v643_v31 = vadd.f32 1e-05, %v595_v44  ;;  %v596_v38 = vmax.f32 %v580_v41, 0.0  ;;  %v677_v18 = vmul.f32 %v4438_v30, %v613_v16  ;;  %v5233_v45 = vmul.f32 0.00390625, %v429_v42 }
 0x140   : > { %1729 = vmatpush1.bf16.msra.mxu1 %v5831_v51  ;;  %v675_v0 = vmul.f32 %v4436_v4, %v5832_v48  ;;  %v5833_v2 = vcombine.high %v5069_v17, %v5076_v25  ;;  %v5238_v6 = vpack.c.bf16 %v761_v59, %v759_v3  ;;  %v565_v32 = vmul.f32 %v5221_v46, %v5221_v46  ;;  %v523_v20 = vpop.xlane.xlu0 %522 }
 0x141   : > { %v722_v1 = vmul.f32 %v5074_v24, %v678_v19  ;;  %v617_v14 = vsub.f32 %v4925_v49, %v5166_v57  ;;  %4443 = vrsqrt.f32 %v643_v31  ;;  %v644_v29 = vadd.f32 1e-05, %v596_v38 }
 0x142   : > { %1730 = vmatprep.subr.bf16.mxu1 %v5833_v2  ;;  %v549_v63 = vmul.f32 0.00390625, %v523_v20  ;;  %v618_v16 = vsub.f32 %v4927_v50, %v5166_v57  ;;  %1656 = vmatmul.mubr.bf16.gmra.mrb[4].mxu1 %v5238_v6  ;;  %v566_v4 = vmul.f32 %v5233_v45, %v5233_v45  ;;  %v526_v23 = vpop.xlane.xlu1 %525  ;;  %v764_v33 = vadd.f32 %v5083_v34, %v720_v9 }
 0x143   : > { %v766_v22 = vadd.f32 %v5083_v34, %v722_v1  ;;  %v4440_v60 = vpop.eup %4439  ;;  %4445 = vrsqrt.f32 %v644_v29  ;;  %v5834_v49 = vcombine.low %v5069_v17, %v5076_v25  ;;  %v550_v35 = vmul.f32 0.00390625, %v526_v23 }
 0x144   : > { %v581_v15 = vsub.f32 %v549_v63, %v565_v32  ;;  %v719_v50 = vmul.f32 %v5086_v36, %v675_v0  ;;  %v619_v57 = vsub.f32 %v4943_v10, %v5183_v8  ;;  %v5835_v30 = vcombine.high %v5078_v26, %v5080_v28  ;;  %v432_v44 = vpop.xlane.xlu0 %431 }
 0x145   : > { %1731 = vmatpush1.bf16.msra.mxu1 %v5834_v49  ;;  %v5261_v41 = vpack.c.bf16 %v766_v22, %v764_v33  ;;  %v721_v42 = vmul.f32 %v5086_v36, %v677_v18  ;;  %v680_v3 = vmul.f32 %v4440_v60, %v616_v39  ;;  %v4442_v59 = vpop.eup %4441  ;;  %v620_v17 = vsub.f32 %v4945_v11, %v5183_v8 }
 0x146   : > { %1732 = vmatprep.subr.bf16.mxu1 %v5835_v30  ;;  %v597_v25 = vmax.f32 %v581_v15, 0.0  ;;  %v582_v19 = vsub.f32 %v550_v35, %v566_v4  ;;  %v5266_v9 = vmul.f32 0.00390625, %v432_v44  ;;  %v435_v31 = vpop.xlane.xlu1 %434  ;;  %v763_v38 = vadd.f32 %v5089_v37, %v719_v50 }
 0x147   : > { %1665 = vmatprep.mubr.bf16.mxu1 %v5261_v41  ;;  %v765_v51 = vadd.f32 %v5089_v37, %v721_v42  ;;  %v682_v48 = vmul.f32 %v4442_v59, %v618_v16  ;;  %v724_v0 = vmul.f32 %v5074_v24, %v680_v3  ;;  %v5836_v2 = vcombine.low %v5078_v26, %v5080_v28 }
 0x148   : > { %v645_v18 = vadd.f32 1e-05, %v597_v25  ;;  %v598_v39 = vmax.f32 %v582_v19, 0.0  ;;  %v679_v11 = vmul.f32 %v4440_v60, %v615_v53  ;;  %v681_v32 = vmul.f32 %v4442_v59, %v617_v14  ;;  %v529_v16 = vpop.xlane.xlu0 %528 }
 0x149   : > { %1733 = vmatpush1.bf16.msra.mxu1 %v5836_v2  ;;  %v5278_v20 = vmul.f32 0.00390625, %v435_v31  ;;  %v5837_v1 = vcombine.high %v5091_v55, %v5093_v56  ;;  %v5283_v29 = vpack.c.bf16 %v765_v51, %v763_v38  ;;  %v567_v63 = vmul.f32 %v5266_v9, %v5266_v9 }
 0x14a   : > { %v726_v26 = vmul.f32 %v5074_v24, %v682_v48  ;;  %v621_v28 = vsub.f32 %v4947_v12, %v5190_v58  ;;  %4447 = vrsqrt.f32 %v645_v18  ;;  %v646_v47 = vadd.f32 1e-05, %v598_v39  ;;  %v532_v4 = vpop.xlane.xlu1 %531 }
 0x14b   : > { %1734 = vmatprep.subr.bf16.mxu1 %v5837_v1  ;;  %v551_v7 = vmul.f32 0.00390625, %v529_v16  ;;  %v622_v53 = vsub.f32 %v4949_v13, %v5190_v58  ;;  %1666 = vmatmul.mubr.bf16.gmra.mrb[8].mxu1 %v5283_v29  ;;  %v568_v14 = vmul.f32 %v5278_v20, %v5278_v20  ;;  %v768_v23 = vadd.f32 %v5083_v34, %v724_v0  ;;  %v4444_v22 = vpop.eup %4443 }
 0x14c   : > { %v770_v33 = vadd.f32 %v5083_v34, %v726_v26  ;;  %4449 = vrsqrt.f32 %v646_v47  ;;  %v5838_v12 = vcombine.low %v5091_v55, %v5093_v56  ;;  %v552_v49 = vmul.f32 0.00390625, %v532_v4  ;;  %v438_v35 = vpop.xlane.xlu0 %437  ;;  %v5840_v55 = vld [vmem:[#allocation15_spill] sm:$0xff] }
 0x14d   : > { %v583_v60 = vsub.f32 %v551_v7, %v567_v63  ;;  %v723_v13 = vmul.f32 %v5086_v36, %v679_v11  ;;  %v623_v58 = vsub.f32 %v4965_v40, %v5221_v46  ;;  %v5839_v15 = vcombine.high %v5099_v52, %v5101_v27  ;;  %v4446_v42 = vpop.eup %4445 }
 0x14e   : > { %1735 = vmatpush1.bf16.msra.mxu1 %v5838_v12  ;;  %v5306_v50 = vpack.c.bf16 %v770_v33, %v768_v23  ;;  %v725_v30 = vmul.f32 %v5086_v36, %v681_v32  ;;  %v684_v44 = vmul.f32 %v4444_v22, %v620_v17  ;;  %v624_v56 = vsub.f32 %v5840_v55, %v5221_v46  ;;  %v441_v19 = vpop.xlane.xlu1 %440  ;;  %v5846_v33 = vld [vmem:[#allocation29_spill] sm:$0xff] }
 0x14f   : > { %1736 = vmatprep.subr.bf16.mxu1 %v5839_v15  ;;  %v599_v3 = vmax.f32 %v583_v60, 0.0  ;;  %v584_v59 = vsub.f32 %v552_v49, %v568_v14  ;;  %v5311_v25 = vmul.f32 0.00390625, %v438_v35  ;;  %v767_v40 = vadd.f32 %v5089_v37, %v723_v13  ;;  %v860_v49 = vld [vmem:[#allocation5 + $0x248] sm:$0xff] }
 0x150   : > { %1675 = vmatprep.mubr.bf16.mxu1 %v5306_v50  ;;  %v769_v31 = vadd.f32 %v5089_v37, %v725_v30  ;;  %v686_v38 = vmul.f32 %v4446_v42, %v622_v53  ;;  %v728_v51 = vmul.f32 %v5074_v24, %v684_v44  ;;  %v5841_v0 = vcombine.low %v5099_v52, %v5101_v27  ;;  %v535_v1 = vpop.xlane.xlu0 %534  ;;  %v5843_v27 = vld [vmem:[#allocation16_spill] sm:$0xff] }
 0x151   : > { %v647_v48 = vadd.f32 1e-05, %v599_v3  ;;  %v600_v17 = vmax.f32 %v584_v59, 0.0  ;;  %v683_v46 = vmul.f32 %v4444_v22, %v619_v57  ;;  %v685_v18 = vmul.f32 %v4446_v42, %v621_v28  ;;  %v5844_v57 = vld [vmem:[#allocation17_spill] sm:$0xff]  ;;  %v864_v13 = vld [vmem:[#allocation5 + $0x268] sm:$0xff] }
 0x152   : > { %1737 = vmatpush1.bf16.msra.mxu1 %v5841_v0  ;;  %v5323_v39 = vmul.f32 0.00390625, %v441_v19  ;;  %v5842_v2 = vcombine.high %v5115_v54, %v5117_v61  ;;  %v5328_v11 = vpack.c.bf16 %v769_v31, %v767_v40  ;;  %v569_v32 = vmul.f32 %v5311_v25, %v5311_v25  ;;  %v538_v28 = vpop.xlane.xlu1 %537 }
 0x153   : > { %v730_v52 = vmul.f32 %v5074_v24, %v686_v38  ;;  %v625_v63 = vsub.f32 %v5843_v27, %v5233_v45  ;;  %4451 = vrsqrt.f32 %v647_v48  ;;  %v648_v10 = vadd.f32 1e-05, %v600_v17  ;;  %v4235_v48 = vld [vmem:[#allocation7 + $0x4] ss:$8 sps:$4 sm:$0xff]  }
 0x154   : > { %1738 = vmatprep.subr.bf16.mxu1 %v5842_v2  ;;  %v553_v8 = vmul.f32 0.00390625, %v535_v1  ;;  %v626_v16 = vsub.f32 %v5844_v57, %v5233_v45  ;;  %1676 = vmatmul.mubr.bf16.gmra.mrb[12].mxu1 %v5328_v11  ;;  %v570_v26 = vmul.f32 %v5323_v39, %v5323_v39  ;;  %v772_v47 = vadd.f32 %v5083_v34, %v728_v51  ;;  %v4448_v53 = vpop.eup %4447  ;;  %v872_v2 = vld [vmem:[#allocation5 + $0x2a8] sm:$0xff] }
 0x155   : > { %v774_v7 = vadd.f32 %v5083_v34, %v730_v52  ;;  %4453 = vrsqrt.f32 %v648_v10  ;;  %v5845_v14 = vcombine.low %v5115_v54, %v5117_v61  ;;  %v554_v23 = vmul.f32 0.00390625, %v538_v28  ;;  %v4237_v1 = vld [vmem:[#allocation7] ss:$8 sps:$4 sm:$0xff]   ;;  %v5852_v52 = vld [vmem:[#allocation18_spill] sm:$0xff]  ;;  %3037 = vmatprep.subr.bf16.mxu0 %v4235_v48 }
 0x156   : > { %v585_v4 = vsub.f32 %v553_v8, %v569_v32  ;;  %v727_v45 = vmul.f32 %v5086_v36, %v683_v46  ;;  %v5847_v22 = vcombine.high %v5127_v62, %v5846_v33  ;;  %v729_v60 = vmul.f32 %v5086_v36, %v685_v18  ;;  %v4450_v30 = vpop.eup %4449  ;;  %v868_v18 = vld [vmem:[#allocation5 + $0x288] sm:$0xff]  ;;  %v5853_v8 = vld [vmem:[#allocation19_spill] sm:$0xff]  ;;  %3038 = vmatpush1.bf16.msra.mxu0 %v4237_v1 }
 0x157   : > { %1739 = vmatpush1.bf16.msra.mxu1 %v5845_v14  ;;  %v5349_v12 = vpack.c.bf16 %v774_v7, %v772_v47  ;;  %v688_v15 = vmul.f32 %v4448_v53, %v624_v56  ;;  %v687_v35 = vmul.f32 %v4448_v53, %v623_v58  ;;  %v586_v54 = vsub.f32 %v554_v23, %v570_v26  ;;  %v5849_v58 = vld [vmem:[#allocation31_spill] sm:$0xff]  ;;  %v5850_v56 = vld [vmem:[#allocation30_spill] sm:$0xff]  ;;  %v5854_v7 = vld [vmem:[#allocation20_spill] sm:$0xff] }
 0x158   : > { %1740 = vmatprep.subr.bf16.mxu1 %v5847_v22  ;;  %v601_v44 = vmax.f32 %v585_v4, 0.0  ;;  %v771_v61 = vadd.f32 %v5089_v37, %v727_v45  ;;  %v773_v42 = vadd.f32 %v5089_v37, %v729_v60  ;;  %v690_v55 = vmul.f32 %v4450_v30, %v626_v16  ;;  %v5855_v14 = vld [vmem:[#allocation21_spill] sm:$0xff]  ;;  %v5857_v48 = vld [vmem:[#allocation23_spill] sm:$0xff] }
 0x159   : > { %1685 = vmatprep.mubr.bf16.mxu1 %v5349_v12  ;;  %v732_v3 = vmul.f32 %v5074_v24, %v688_v15  ;;  %v689_v59 = vmul.f32 %v4450_v30, %v625_v63  ;;  %v602_v40 = vmax.f32 %v586_v54, 0.0  ;;  %v5848_v31 = vcombine.low %v5127_v62, %v5846_v33  ;;  %v880_v15 = vld [vmem:[#allocation5 + $0x2e8] sm:$0xff] }
 0x15a   : > { %v649_v19 = vadd.f32 1e-05, %v601_v44  ;;  %v3800_v38 = vcombine.low %v5850_v56, %v5849_v58  ;;  %v3809_v51 = vcombine.high %v860_v49, %v864_v13  ;;  %v5851_v17 = vcombine.high %v5850_v56, %v5849_v58  ;;  %v5856_v58 = vld [vmem:[#allocation22_spill] sm:$0xff] }
 0x15b   : > { %1741 = vmatpush1.bf16.msra.mxu1 %v5848_v31  ;;  %v5364_v0 = vpack.c.bf16 %v773_v42, %v771_v61  ;;  %v734_v46 = vmul.f32 %v5074_v24, %v690_v55  ;;  %v731_v32 = vmul.f32 %v5086_v36, %v687_v35  ;;  %v733_v62 = vmul.f32 %v5086_v36, %v689_v59  ;;  %v4240_v35 = vld [vmem:[#allocation7 + $0x10] ss:$8 sps:$4 sm:$0xff]   ;;  %v4241_v42 = vld [vmem:[#allocation7 + $0x24] ss:$8 sps:$4 sm:$0xff]  }
 0x15c   : > { %1742 = vmatprep.subr.bf16.mxu1 %v5851_v17  ;;  %v627_v27 = vsub.f32 %v5852_v52, %v5266_v9  ;;  %4455 = vrsqrt.f32 %v649_v19  ;;  %v650_v63 = vadd.f32 1e-05, %v602_v40  ;;  %v3808_v10 = vcombine.low %v860_v49, %v864_v13  ;;  %v876_v13 = vld [vmem:[#allocation5 + $0x2c8] sm:$0xff]  ;;  %v5859_v52 = vld [vmem:[#allocation25_spill] sm:$0xff] }
 0x15d   : > { %v628_v57 = vsub.f32 %v5853_v8, %v5266_v9  ;;  %1686 = vmatmul.mubr.bf16.gmra.mrb[16].mxu1 %v5364_v0  ;;  %v776_v16 = vadd.f32 %v5083_v34, %v732_v3  ;;  %v778_v26 = vadd.f32 %v5083_v34, %v734_v46  ;;  %v777_v28 = vadd.f32 %v5089_v37, %v733_v62  ;;  %v4452_v47 = vpop.eup %4451  ;;  %v4238_v9 = vld [vmem:[#allocation7 + $0x14] ss:$8 sps:$4 sm:$0xff]   ;;  %v884_v59 = vld [vmem:[#allocation5 + $0x308] sm:$0xff] }
 0x15e   : > { %v629_v53 = vsub.f32 %v5854_v7, %v5278_v20  ;;  %v630_v4 = vsub.f32 %v5855_v14, %v5278_v20  ;;  %4457 = vrsqrt.f32 %v650_v63  ;;  %v3817_v23 = vcombine.high %v868_v18, %v872_v2  ;;  %3039 = vmatprep.subr.bf16.mxu0 %v4238_v9  ;;  %v888_v19 = vld [vmem:[#allocation5 + $0x328] sm:$0xff]  ;;  %v4246_v7 = vld [vmem:[#allocation7 + $0x30] ss:$8 sps:$4 sm:$0xff]  }
 0x15f   : > { %1743 = vmatpush1.bf16.msra.mxu1 %v3800_v38  ;;  %v5381_v45 = vpack.c.bf16 %v778_v26, %v776_v16  ;;  %v775_v33 = vadd.f32 %v5089_v37, %v731_v32  ;;  %v692_v22 = vmul.f32 %v4452_v47, %v628_v57  ;;  %v691_v60 = vmul.f32 %v4452_v47, %v627_v27  ;;  %v4454_v49 = vpop.eup %4453  ;;  %v5858_v62 = vld [vmem:[#allocation24_spill] sm:$0xff] }
 0x160   : > { %1744 = vmatprep.subr.bf16.mxu1 %v3809_v51  ;;  %v694_v30 = vmul.f32 %v4454_v49, %v630_v4  ;;  %v693_v54 = vmul.f32 %v4454_v49, %v629_v53  ;;  %v3816_v61 = vcombine.low %v868_v18, %v872_v2  ;;  %v3825_v55 = vcombine.high %v876_v13, %v880_v15  ;;  %v4243_v51 = vld [vmem:[#allocation7 + $0x20] ss:$8 sps:$4 sm:$0xff]   ;;  %v4247_v9 = vld [vmem:[#allocation7 + $0x44] ss:$8 sps:$4 sm:$0xff]  }
 0x161   : > { %1695 = vmatprep.mubr.bf16.mxu1 %v5381_v45  ;;  %v5385_v20 = vpack.c.bf16 %v777_v28, %v775_v33  ;;  %v736_v44 = vmul.f32 %v5074_v24, %v692_v22  ;;  %v735_v40 = vmul.f32 %v5086_v36, %v691_v60  ;;  %v631_v56 = vsub.f32 %v5856_v58, %v5311_v25  ;;  %v892_v28 = vld [vmem:[#allocation5 + $0x348] sm:$0xff] }
 0x162   : > { %v738_v3 = vmul.f32 %v5074_v24, %v694_v30  ;;  %v737_v31 = vmul.f32 %v5086_v36, %v693_v54  ;;  %v3824_v38 = vcombine.low %v876_v13, %v880_v15  ;;  %3040 = vmatpush1.bf16.msra.mxu0 %v4240_v35  ;;  %v632_v17 = vsub.f32 %v5857_v48, %v5311_v25  ;;  %v896_v47 = vld [vmem:[#allocation5 + $0x368] sm:$0xff]  ;;  %v4256_v48 = vld [vmem:[#allocation7 + $0x74] ss:$8 sps:$4 sm:$0xff]  }
 0x163   : > { %1745 = vmatpush1.bf16.msra.mxu1 %v3808_v10  ;;  %v780_v46 = vadd.f32 %v5083_v34, %v736_v44  ;;  %v633_v1 = vsub.f32 %v5858_v62, %v5323_v39  ;;  %v634_v27 = vsub.f32 %v5859_v52, %v5323_v39  ;;  %v3833_v63 = vcombine.high %v884_v59, %v888_v19  ;;  %v4244_v10 = vld [vmem:[#allocation7 + $0x34] ss:$8 sps:$4 sm:$0xff]   ;;  %v900_v13 = vld [vmem:[#allocation5 + $0x388] sm:$0xff] }
 0x164   : > { %1746 = vmatprep.subr.bf16.mxu1 %v3817_v23  ;;  %v782_v18 = vadd.f32 %v5083_v34, %v738_v3  ;;  %v781_v2 = vadd.f32 %v5089_v37, %v737_v31  ;;  %3041 = vmatprep.subr.bf16.mxu0 %v4241_v42  ;;  %v779_v8 = vadd.f32 %v5089_v37, %v735_v40  ;;  %v904_v15 = vld [vmem:[#allocation5 + $0x3a8] sm:$0xff]  ;;  %v805_v52 = vld [vmem:[#allocation5 + $0x90] sm:$0xff] }
 0x165   : > { %1696 = vmatmul.mubr.bf16.gmra.mrb[20].mxu1 %v5385_v20  ;;  %v3832_v23 = vcombine.low %v884_v59, %v888_v19  ;;  %v3841_v33 = vcombine.high %v892_v28, %v896_v47  ;;  %v4249_v35 = vld [vmem:[#allocation7 + $0x40] ss:$8 sps:$4 sm:$0xff]   ;;  %v4252_v19 = vld [vmem:[#allocation7 + $0x50] ss:$8 sps:$4 sm:$0xff]   ;;  %v4253_v31 = vld [vmem:[#allocation7 + $0x64] ss:$8 sps:$4 sm:$0xff]  }
 0x166   : > { %v4456_v32 = vpop.eup %4455  ;;  %v5403_v25 = vpack.c.bf16 %v782_v18, %v780_v46  ;;  %3042 = vmatpush1.bf16.msra.mxu0 %v4243_v51  ;;  %v5407_v53 = vpack.c.bf16 %v781_v2, %v779_v8  ;;  %v908_v3 = vld [vmem:[#allocation5 + $0x3c8] sm:$0xff]  ;;  %v797_v46 = vld [vmem:[#allocation5 + $0x50] sm:$0xff] }
 0x167   : > { %1747 = vmatpush1.bf16.msra.mxu1 %v3816_v61  ;;  %v696_v57 = vmul.f32 %v4456_v32, %v632_v17  ;;  %v695_v16 = vmul.f32 %v4456_v32, %v631_v56  ;;  %3043 = vmatprep.subr.bf16.mxu0 %v4244_v10  ;;  %v3840_v61 = vcombine.low %v892_v28, %v896_v47  ;;  %v912_v59 = vld [vmem:[#allocation5 + $0x3e8] sm:$0xff]  ;;  %v789_v56 = vld [vmem:[#allocation5 + $0x10] sm:$0xff] }
 0x168   : > { %1748 = vmatprep.subr.bf16.mxu1 %v3825_v55  ;;  %v4458_v26 = vpop.eup %4457  ;;  %1705 = vmatprep.mubr.bf16.mxu1 %v5403_v25  ;;  %v3857_v58 = vcombine.high %v908_v3, %v912_v59  ;;  %v4255_v51 = vld [vmem:[#allocation7 + $0x60] ss:$8 sps:$4 sm:$0xff]   ;;  %v801_v18 = vld [vmem:[#allocation5 + $0x70] sm:$0xff]  ;;  %v4259_v62 = vld [vmem:[#allocation7 + $0x84] ss:$8 sps:$4 sm:$0xff]  }
 0x169   : > { %v698_v39 = vmul.f32 %v4458_v26, %v634_v27  ;;  %v740_v14 = vmul.f32 %v5074_v24, %v696_v57  ;;  %v697_v4 = vmul.f32 %v4458_v26, %v633_v1  ;;  %v739_v60 = vmul.f32 %v5086_v36, %v695_v16  ;;  %v4258_v2 = vld [vmem:[#allocation7 + $0x70] ss:$8 sps:$4 sm:$0xff]   ;;  %v4262_v8 = vld [vmem:[#allocation7 + $0x94] ss:$8 sps:$4 sm:$0xff]   ;;  %v4265_v47 = vld [vmem:[#allocation7 + $0xa4] ss:$8 sps:$4 sm:$0xff]  }
 0x16a   : > { %3044 = vmatpush1.bf16.msra.mxu0 %v4246_v7  ;;  %v3747_v1 = vcombine.high %v797_v46, %v801_v18  ;;  %v809_v27 = vld [vmem:[#allocation5 + $0xb0] sm:$0xff]  ;;  %v3746_v10 = vcombine.low %v797_v46, %v801_v18 }
 0x16b   : > { %1749 = vmatpush1.bf16.msra.mxu1 %v3824_v38  ;;  %v742_v22 = vmul.f32 %v5074_v24, %v698_v39  ;;  %v741_v49 = vmul.f32 %v5086_v36, %v697_v4  ;;  %v784_v30 = vadd.f32 %v5083_v34, %v740_v14  ;;  %3045 = vmatprep.subr.bf16.mxu0 %v4247_v9  ;;  %v4250_v24 = vld [vmem:[#allocation7 + $0x54] ss:$8 sps:$4 sm:$0xff]   ;;  %v4264_v28 = vld [vmem:[#allocation7 + $0x90] ss:$8 sps:$4 sm:$0xff]  }
 0x16c   : > { %1750 = vmatprep.subr.bf16.mxu1 %v3833_v63  ;;  %v3849_v36 = vcombine.high %v900_v13, %v904_v15  ;;  %v783_v55 = vadd.f32 %v5089_v37, %v739_v60  ;;  %v793_v38 = vld [vmem:[#allocation5 + $0x30] sm:$0xff]  ;;  %v4261_v63 = vld [vmem:[#allocation7 + $0x80] ss:$8 sps:$4 sm:$0xff]   ;;  %v3755_v57 = vcombine.high %v805_v52, %v809_v27  ;;  %v3754_v7 = vcombine.low %v805_v52, %v809_v27 }
 0x16d   : > { %1706 = vmatmul.mubr.bf16.gmra.mrb[24].mxu1 %v5407_v53  ;;  %v786_v44 = vadd.f32 %v5083_v34, %v742_v22  ;;  %v785_v54 = vadd.f32 %v5089_v37, %v741_v49  ;;  %v3848_v34 = vcombine.low %v900_v13, %v904_v15  ;;  %v3856_v37 = vcombine.low %v908_v3, %v912_v59  ;;  %v813_v16 = vld [vmem:[#allocation5 + $0xd0] sm:$0xff]  ;;  %v4271_v15 = vld [vmem:[#allocation7 + $0xc4] ss:$8 sps:$4 sm:$0xff]  }
 0x16e   : > { %3046 = vmatpush1.bf16.msra.mxu0 %v4249_v35  ;;  %v3739_v17 = vcombine.high %v789_v56, %v793_v38  ;;  %v3738_v32 = vcombine.low %v789_v56, %v793_v38  ;;  %v817_v26 = vld [vmem:[#allocation5 + $0xf0] sm:$0xff] }
 0x16f   : > { %1751 = vmatpush1.bf16.msra.mxu1 %v3832_v23  ;;  %v5417_v42 = vpack.c.bf16 %v786_v44, %v784_v30  ;;  %v5421_v40 = vpack.c.bf16 %v785_v54, %v783_v55  ;;  %3047 = vmatprep.subr.bf16.mxu0 %v4250_v24  ;;  %v3763_v39 = vcombine.high %v813_v16, %v817_v26  ;;  %v821_v14 = vld [vmem:[#allocation5 + $0x110] sm:$0xff]  ;;  %v4267_v23 = vld [vmem:[#allocation7 + $0xa0] ss:$8 sps:$4 sm:$0xff]  }
 0x170   : > { %1752 = vmatprep.subr.bf16.mxu1 %v3841_v33  ;;  %v825_v4 = vld [vmem:[#allocation5 + $0x130] sm:$0xff]  ;;  %v3762_v9 = vcombine.low %v813_v16, %v817_v26 }
 0x171   : > { %1715 = vmatprep.mubr.bf16.mxu1 %v5417_v42  ;;  %v4268_v33 = vld [vmem:[#allocation7 + $0xb4] ss:$8 sps:$4 sm:$0xff]   ;;  %v3771_v22 = vcombine.high %v821_v14, %v825_v4  ;;  %v4270_v13 = vld [vmem:[#allocation7 + $0xb0] ss:$8 sps:$4 sm:$0xff]   ;;  %v3770_v35 = vcombine.low %v821_v14, %v825_v4 }
 0x172   : > { %3048 = vmatpush1.bf16.msra.mxu0 %v4252_v19  ;;  %v829_v60 = vld [vmem:[#allocation5 + $0x150] sm:$0xff] }
 0x173   : > { %1753 = vmatpush1.bf16.msra.mxu1 %v3840_v61  ;;  %3049 = vmatprep.subr.bf16.mxu0 %v4253_v31  ;;  %v833_v49 = vld [vmem:[#allocation5 + $0x170] sm:$0xff]  ;;  %v4273_v61 = vld [vmem:[#allocation7 + $0xc0] ss:$8 sps:$4 sm:$0xff]  }
 0x174   : > { %1754 = vmatprep.subr.bf16.mxu1 %v3849_v36  ;;  %v3779_v30 = vcombine.high %v829_v60, %v833_v49  ;;  %v837_v44 = vld [vmem:[#allocation5 + $0x190] sm:$0xff]  ;;  %v3778_v24 = vcombine.low %v829_v60, %v833_v49 }
 0x175   : > { %1716 = vmatmul.mubr.bf16.gmra.mrb[28].mxu1 %v5421_v40  ;;  %v841_v54 = vld [vmem:[#allocation5 + $0x1b0] sm:$0xff] }
 0x176   : > { %1758 = vmatprep.mubr.bf16.mxu1 %v5186_v43  ;;  %3050 = vmatpush1.bf16.msra.mxu0 %v4255_v51  ;;  %v4274_v36 = vld [vmem:[#allocation7 + $0xd4] ss:$8 sps:$4 sm:$0xff]   ;;  %v3787_v55 = vcombine.high %v837_v44, %v841_v54  ;;  %v4276_v19 = vld [vmem:[#allocation7 + $0xd0] ss:$8 sps:$4 sm:$0xff]   ;;  %v4279_v51 = vld [vmem:[#allocation7 + $0xe0] ss:$8 sps:$4 sm:$0xff]  }
 0x177   : > { %1755 = vmatpush1.bf16.msra.mxu1 %v3848_v34  ;;  %3051 = vmatprep.subr.bf16.mxu0 %v4256_v48  ;;  %v845_v3 = vld [vmem:[#allocation5 + $0x1d0] sm:$0xff]  ;;  %v3786_v34 = vcombine.low %v837_v44, %v841_v54  ;;  %v790_v44 = vld [vmem:[#allocation5 + $0x18] sm:$0xff] }
 0x178   : > { %1756 = vmatprep.subr.bf16.mxu1 %v3857_v58  ;;  %v849_v59 = vld [vmem:[#allocation5 + $0x1f0] sm:$0xff]  ;;  %v4277_v58 = vld [vmem:[#allocation7 + $0xe4] ss:$8 sps:$4 sm:$0xff]   ;;  %v794_v54 = vld [vmem:[#allocation5 + $0x38] sm:$0xff] }
 0x179   : > { %v3795_v31 = vcombine.high %v845_v3, %v849_v59  ;;  %v853_v56 = vld [vmem:[#allocation5 + $0x210] sm:$0xff] }
 0x17a   : > { %3052 = vmatpush1.bf16.msra.mxu0 %v4258_v2  ;;  %v857_v38 = vld [vmem:[#allocation5 + $0x230] sm:$0xff] }
 0x17b   : > { %1757 = vmatpush1.bf16.msra.mxu1 %v3856_v37  ;;  %3053 = vmatprep.subr.bf16.mxu0 %v4259_v62  ;;  %v3794_v37 = vcombine.low %v845_v3, %v849_v59  ;;  %v3803_v48 = vcombine.high %v853_v56, %v857_v38  ;;  %v861_v46 = vld [vmem:[#allocation5 + $0x250] sm:$0xff]  ;;  %v3740_v3 = vcombine.low %v790_v44, %v794_v54 }
 0x17c   : > { %1839 = vmatprep.subr.bf16.mxu1 %v3739_v17  ;;  %v4280_v17 = vld [vmem:[#allocation7 + $0xf4] ss:$8 sps:$4 sm:$0xff]   ;;  %v4282_v2 = vld [vmem:[#allocation7 + $0xf0] ss:$8 sps:$4 sm:$0xff]  }
 0x17d   : > { %v865_v18 = vld [vmem:[#allocation5 + $0x270] sm:$0xff] }
 0x17e   : > { %1759 = vmatmul.mubr.bf16.vlgmr.msra.gmra.mrb[32].mxu1 %v5193_v21  ;;  %3054 = vmatpush1.bf16.msra.mxu0 %v4261_v63  ;;  %v3811_v62 = vcombine.high %v861_v46, %v865_v18  ;;  %v869_v52 = vld [vmem:[#allocation5 + $0x290] sm:$0xff]  ;;  %v3810_v63 = vcombine.low %v861_v46, %v865_v18 }
 0x17f   : > { %1840 = vmatpush1.bf16.msra.mxu1 %v3738_v32  ;;  %1768 = vmatprep.mubr.bf16.mxu1 %v5216_v5  ;;  %v3802_v32 = vcombine.low %v853_v56, %v857_v38  ;;  %v873_v27 = vld [vmem:[#allocation5 + $0x2b0] sm:$0xff]  ;;  %v814_v56 = vld [vmem:[#allocation5 + $0xd8] sm:$0xff] }
 0x180   : > { %1841 = vmatprep.subr.bf16.mxu1 %v3747_v1  ;;  %3055 = vmatprep.subr.bf16.mxu0 %v4262_v8  ;;  %v4285_v1 = vld [vmem:[#allocation7 + $0x104] ss:$8 sps:$4 sm:$0xff]   ;;  %v877_v8 = vld [vmem:[#allocation5 + $0x2d0] sm:$0xff]  ;;  %v3818_v16 = vcombine.low %v869_v52, %v873_v27  ;;  %v818_v38 = vld [vmem:[#allocation5 + $0xf8] sm:$0xff] }
 0x181   : > { %v893_v14 = vld [vmem:[#allocation5 + $0x350] sm:$0xff]  ;;  %v3764_v46 = vcombine.low %v814_v56, %v818_v38 }
 0x182   : > { %3056 = vmatpush1.bf16.msra.mxu0 %v4264_v28  ;;  %v885_v28 = vld [vmem:[#allocation5 + $0x310] sm:$0xff] }
 0x183   : > { %1842 = vmatpush1.bf16.msra.mxu1 %v3746_v10  ;;  %3057 = vmatprep.subr.bf16.mxu0 %v4265_v47  ;;  %v3819_v10 = vcombine.high %v869_v52, %v873_v27  ;;  %v889_v47 = vld [vmem:[#allocation5 + $0x330] sm:$0xff]  ;;  %v838_v52 = vld [vmem:[#allocation5 + $0x198] sm:$0xff] }
 0x184   : > { %1843 = vmatprep.subr.bf16.mxu1 %v3755_v57  ;;  %v881_v57 = vld [vmem:[#allocation5 + $0x2f0] sm:$0xff]  ;;  %v842_v27 = vld [vmem:[#allocation5 + $0x1b8] sm:$0xff] }
 0x185   : > { %v3827_v26 = vcombine.high %v877_v8, %v881_v57  ;;  %v897_v4 = vld [vmem:[#allocation5 + $0x370] sm:$0xff] }
 0x186   : > { %1769 = vmatmul.mubr.bf16.gmra.mrb[36].mxu1 %v5238_v6  ;;  %3058 = vmatpush1.bf16.msra.mxu0 %v4267_v23  ;;  %v3834_v23 = vcombine.low %v885_v28, %v889_v47  ;;  %v3842_v60 = vcombine.low %v893_v14, %v897_v4 }
 0x187   : > { %1844 = vmatpush1.bf16.msra.mxu1 %v3754_v7  ;;  %1778 = vmatprep.mubr.bf16.mxu1 %v5261_v41  ;;  %v3826_v7 = vcombine.low %v877_v8, %v881_v57  ;;  %v846_v8 = vld [vmem:[#allocation5 + $0x1d8] sm:$0xff] }
 0x188   : > { %1845 = vmatprep.subr.bf16.mxu1 %v3763_v39  ;;  %3059 = vmatprep.subr.bf16.mxu0 %v4268_v33  ;;  %v3835_v39 = vcombine.high %v885_v28, %v889_v47  ;;  %v901_v33 = vld [vmem:[#allocation5 + $0x390] sm:$0xff]  ;;  %v850_v57 = vld [vmem:[#allocation5 + $0x1f8] sm:$0xff] }
 0x189   : > { %v854_v28 = vld [vmem:[#allocation5 + $0x218] sm:$0xff] }
 0x18a   : > { %3060 = vmatpush1.bf16.msra.mxu0 %v4270_v13  ;;  %v909_v13 = vld [vmem:[#allocation5 + $0x3d0] sm:$0xff]  ;;  %v858_v47 = vld [vmem:[#allocation5 + $0x238] sm:$0xff] }
 0x18b   : > { %1846 = vmatpush1.bf16.msra.mxu1 %v3762_v9  ;;  %3061 = vmatprep.subr.bf16.mxu0 %v4271_v15  ;;  %v3843_v9 = vcombine.high %v893_v14, %v897_v4  ;;  %v913_v15 = vld [vmem:[#allocation5 + $0x3f0] sm:$0xff]  ;;  %v862_v14 = vld [vmem:[#allocation5 + $0x258] sm:$0xff] }
 0x18c   : > { %1847 = vmatprep.subr.bf16.mxu1 %v3771_v22  ;;  %v905_v22 = vld [vmem:[#allocation5 + $0x3b0] sm:$0xff]  ;;  %v866_v4 = vld [vmem:[#allocation5 + $0x278] sm:$0xff] }
 0x18d   : > { %v3851_v49 = vcombine.high %v901_v33, %v905_v22 }
 0x18e   : > { %1779 = vmatmul.mubr.bf16.gmra.mrb[40].mxu1 %v5283_v29  ;;  %3062 = vmatpush1.bf16.msra.mxu0 %v4273_v61  ;;  %v3858_v61 = vcombine.low %v909_v13, %v913_v15 }
 0x18f   : > { %1848 = vmatpush1.bf16.msra.mxu1 %v3770_v35  ;;  %1788 = vmatprep.mubr.bf16.mxu1 %v5306_v50  ;;  %v3850_v35 = vcombine.low %v901_v33, %v905_v22  ;;  %v870_v33 = vld [vmem:[#allocation5 + $0x298] sm:$0xff] }
 0x190   : > { %1849 = vmatprep.subr.bf16.mxu1 %v3779_v30  ;;  %3063 = vmatprep.subr.bf16.mxu0 %v4274_v36  ;;  %v3859_v30 = vcombine.high %v909_v13, %v913_v15  ;;  %v798_v36 = vld [vmem:[#allocation5 + $0x58] sm:$0xff] }
 0x191   : > { %v874_v22 = vld [vmem:[#allocation5 + $0x2b8] sm:$0xff] }
 0x192   : > { %3064 = vmatpush1.bf16.msra.mxu0 %v4276_v19  ;;  %v806_v19 = vld [vmem:[#allocation5 + $0x98] sm:$0xff] }
 0x193   : > { %1850 = vmatpush1.bf16.msra.mxu1 %v3778_v24  ;;  %3065 = vmatprep.subr.bf16.mxu0 %v4277_v58  ;;  %v3741_v24 = vcombine.high %v790_v44, %v794_v54  ;;  %v878_v13 = vld [vmem:[#allocation5 + $0x2d8] sm:$0xff] }
 0x194   : > { %1851 = vmatprep.subr.bf16.mxu1 %v3787_v55  ;;  %v802_v55 = vld [vmem:[#allocation5 + $0x78] sm:$0xff] }
 0x195   : > { %v3749_v59 = vcombine.high %v798_v36, %v802_v55  ;;  %v882_v15 = vld [vmem:[#allocation5 + $0x2f8] sm:$0xff] }
 0x196   : > { %1789 = vmatmul.mubr.bf16.gmra.mrb[44].mxu1 %v5328_v11  ;;  %3066 = vmatpush1.bf16.msra.mxu0 %v4279_v51  ;;  %v886_v44 = vld [vmem:[#allocation5 + $0x318] sm:$0xff] }
 0x197   : > { %1852 = vmatpush1.bf16.msra.mxu1 %v3786_v34  ;;  %1798 = vmatprep.mubr.bf16.mxu1 %v5349_v12  ;;  %v810_v34 = vld [vmem:[#allocation5 + $0xb8] sm:$0xff] }
 0x198   : > { %1853 = vmatprep.subr.bf16.mxu1 %v3795_v31  ;;  %3067 = vmatprep.subr.bf16.mxu0 %v4280_v17  ;;  %v3748_v31 = vcombine.low %v798_v36, %v802_v55  ;;  %v3757_v58 = vcombine.high %v806_v19, %v810_v34  ;;  %v3756_v51 = vcombine.low %v806_v19, %v810_v34  ;;  %v826_v17 = vld [vmem:[#allocation5 + $0x138] sm:$0xff] }
 0x199   : > { %v890_v54 = vld [vmem:[#allocation5 + $0x338] sm:$0xff] }
 0x19a   : > { %3068 = vmatpush1.bf16.msra.mxu0 %v4282_v2  ;;  %v830_v2 = vld [vmem:[#allocation5 + $0x158] sm:$0xff] }
 0x19b   : > { %1854 = vmatpush1.bf16.msra.mxu1 %v3794_v37  ;;  %3150 = vmatprep.subr.bf16.mxu0 %v4285_v1  ;;  %v3765_v37 = vcombine.high %v814_v56, %v818_v38  ;;  %v894_v36 = vld [vmem:[#allocation5 + $0x358] sm:$0xff] }
 0x19c   : > { %1855 = vmatprep.subr.bf16.mxu1 %v3803_v48  ;;  %v822_v48 = vld [vmem:[#allocation5 + $0x118] sm:$0xff] }
 0x19d   : > { %v3773_v18 = vcombine.high %v822_v48, %v826_v17  ;;  %v898_v55 = vld [vmem:[#allocation5 + $0x378] sm:$0xff] }
 0x19e   : > { %1799 = vmatmul.mubr.bf16.gmra.mrb[48].mxu1 %v5364_v0  ;;  %v902_v19 = vld [vmem:[#allocation5 + $0x398] sm:$0xff] }
 0x19f   : > { %1856 = vmatpush1.bf16.msra.mxu1 %v3802_v32  ;;  %1808 = vmatprep.mubr.bf16.mxu1 %v5381_v45  ;;  %v834_v32 = vld [vmem:[#allocation5 + $0x178] sm:$0xff] }
 0x1a0   : > { %1857 = vmatprep.subr.bf16.mxu1 %v3811_v62  ;;  %v3772_v62 = vcombine.low %v822_v48, %v826_v17  ;;  %v3781_v1 = vcombine.high %v830_v2, %v834_v32  ;;  %v906_v34 = vld [vmem:[#allocation5 + $0x3b8] sm:$0xff]  ;;  %v5464_v17 = vld [vmem:[%s5765_s4] sm:$0xff] }
 0x1a1   : > { %v910_v56 = vld [vmem:[#allocation5 + $0x3d8] sm:$0xff] }
 0x1a2   : > { %v914_v38 = vld [vmem:[#allocation5 + $0x3f8] sm:$0xff] }
 0x1a3   : > { %1858 = vmatpush1.bf16.msra.mxu1 %v3810_v63  ;;  %v3780_v63 = vcombine.low %v830_v2, %v834_v32  ;;  %v3860_v48 = vcombine.low %v910_v56, %v914_v38 }
 0x1a4   : > { %1859 = vmatprep.subr.bf16.mxu1 %v3819_v10  ;;  %v3789_v10 = vcombine.high %v838_v52, %v842_v27 }
 0x1a6   : > { %1809 = vmatmul.mubr.bf16.gmra.mrb[52].mxu1 %v5385_v20 }
 0x1a7   : > { %1860 = vmatpush1.bf16.msra.mxu1 %v3818_v16  ;;  %1818 = vmatprep.mubr.bf16.mxu1 %v5403_v25  ;;  %v3788_v16 = vcombine.low %v838_v52, %v842_v27 }
 0x1a8   : > { %1861 = vmatprep.subr.bf16.mxu1 %v3827_v26  ;;  %v3797_v26 = vcombine.high %v846_v8, %v850_v57 }
 0x1ab   : > { %1862 = vmatpush1.bf16.msra.mxu1 %v3826_v7  ;;  %v3796_v7 = vcombine.low %v846_v8, %v850_v57 }
 0x1ac   : > { %1863 = vmatprep.subr.bf16.mxu1 %v3835_v39  ;;  %v3805_v39 = vcombine.high %v854_v28, %v858_v47 }
 0x1ae   : > { %1819 = vmatmul.mubr.bf16.gmra.mrb[56].mxu1 %v5407_v53 }
 0x1af   : > { %1864 = vmatpush1.bf16.msra.mxu1 %v3834_v23  ;;  %1828 = vmatprep.mubr.bf16.mxu1 %v5417_v42  ;;  %v3804_v23 = vcombine.low %v854_v28, %v858_v47  ;;  %v4288_v47 = vld [vmem:[#allocation7 + $0x114] ss:$8 sps:$4 sm:$0xff]  }
 0x1b0   : > { %1865 = vmatprep.subr.bf16.mxu1 %v3843_v9  ;;  %v3813_v9 = vcombine.high %v862_v14, %v866_v4 }
 0x1b3   : > { %1866 = vmatpush1.bf16.msra.mxu1 %v3842_v60  ;;  %v3812_v60 = vcombine.low %v862_v14, %v866_v4 }
 0x1b4   : > { %1867 = vmatprep.subr.bf16.mxu1 %v3851_v49  ;;  %v3821_v49 = vcombine.high %v870_v33, %v874_v22 }
 0x1b6   : > { %1829 = vmatmul.mubr.bf16.gmra.mrb[60].mxu1 %v5421_v40 }
 0x1b7   : > { %1868 = vmatpush1.bf16.msra.mxu1 %v3850_v35  ;;  %1871 = vmatprep.mubr.bf16.mxu1 %v5186_v43  ;;  %v3820_v35 = vcombine.low %v870_v33, %v874_v22  ;;  %v4291_v33 = vld [vmem:[#allocation7 + $0x124] ss:$8 sps:$4 sm:$0xff]  }
 0x1b8   : > { %1869 = vmatprep.subr.bf16.mxu1 %v3859_v30  ;;  %v3829_v30 = vcombine.high %v878_v13, %v882_v15 }
 0x1bb   : > { %1870 = vmatpush1.bf16.msra.mxu1 %v3858_v61  ;;  %v3828_v61 = vcombine.low %v878_v13, %v882_v15 }
 0x1bc   : > { %1952 = vmatprep.subr.bf16.mxu1 %v3741_v24  ;;  %v3837_v24 = vcombine.high %v886_v44, %v890_v54 }
 0x1be   : > { %1872 = vmatmul.mubr.bf16.vlgmr.msra.gmra.mrb[64].mxu1 %v5193_v21 }
 0x1bf   : > { %1953 = vmatpush1.bf16.msra.mxu1 %v3740_v3  ;;  %1881 = vmatprep.mubr.bf16.mxu1 %v5216_v5  ;;  %v3836_v3 = vcombine.low %v886_v44, %v890_v54  ;;  %v4294_v54 = vld [vmem:[#allocation7 + $0x134] ss:$8 sps:$4 sm:$0xff]  }
 0x1c0   : > { %1954 = vmatprep.subr.bf16.mxu1 %v3749_v59  ;;  %v3845_v59 = vcombine.high %v894_v36, %v898_v55 }
 0x1c3   : > { %1955 = vmatpush1.bf16.msra.mxu1 %v3748_v31  ;;  %v3844_v31 = vcombine.low %v894_v36, %v898_v55  ;;  %v4292_v55 = vld [vmem:[#allocation7 + $0x130] ss:$8 sps:$4 sm:$0xff]  }
 0x1c4   : > { %1956 = vmatprep.subr.bf16.mxu1 %v3757_v58  ;;  %v3853_v58 = vcombine.high %v902_v19, %v906_v34 }
 0x1c6   : > { %1882 = vmatmul.mubr.bf16.gmra.mrb[68].mxu1 %v5238_v6 }
 0x1c7   : > { %1957 = vmatpush1.bf16.msra.mxu1 %v3756_v51  ;;  %1891 = vmatprep.mubr.bf16.mxu1 %v5261_v41  ;;  %v3852_v51 = vcombine.low %v902_v19, %v906_v34  ;;  %v4297_v19 = vld [vmem:[#allocation7 + $0x144] ss:$8 sps:$4 sm:$0xff]  }
 0x1c8   : > { %1958 = vmatprep.subr.bf16.mxu1 %v3765_v37  ;;  %v3861_v37 = vcombine.high %v910_v56, %v914_v38 }
 0x1cb   : > { %1959 = vmatpush1.bf16.msra.mxu1 %v3764_v46  ;;  %v5860_v46 = vld [vmem:[#allocation28_spill] sm:$0xff] }
 0x1cc   : > { %1960 = vmatprep.subr.bf16.mxu1 %v3773_v18 }
 0x1ce   : > { %1892 = vmatmul.mubr.bf16.gmra.mrb[72].mxu1 %v5283_v29 }
 0x1cf   : > { %1961 = vmatpush1.bf16.msra.mxu1 %v3772_v62  ;;  %1901 = vmatprep.mubr.bf16.mxu1 %v5306_v50 }
 0x1d0   : > { %1962 = vmatprep.subr.bf16.mxu1 %v3781_v1 }
 0x1d3   : > { %1963 = vmatpush1.bf16.msra.mxu1 %v3780_v63 }
 0x1d4   : > { %1964 = vmatprep.subr.bf16.mxu1 %v3789_v10 }
 0x1d6   : > { %1902 = vmatmul.mubr.bf16.gmra.mrb[76].mxu1 %v5328_v11 }
 0x1d7   : > { %1965 = vmatpush1.bf16.msra.mxu1 %v3788_v16  ;;  %1911 = vmatprep.mubr.bf16.mxu1 %v5349_v12  ;;  %v4283_v16 = vld [vmem:[#allocation7 + $0x100] ss:$8 sps:$4 sm:$0xff]  }
 0x1d8   : > { %1966 = vmatprep.subr.bf16.mxu1 %v3797_v26 }
 0x1db   : > { %1967 = vmatpush1.bf16.msra.mxu1 %v3796_v7 }
 0x1dc   : > { %1968 = vmatprep.subr.bf16.mxu1 %v3805_v39 }
 0x1de   : > { %1912 = vmatmul.mubr.bf16.gmra.mrb[80].mxu1 %v5364_v0 }
 0x1df   : > { %1969 = vmatpush1.bf16.msra.mxu1 %v3804_v23  ;;  %1921 = vmatprep.mubr.bf16.mxu1 %v5381_v45 }
 0x1e0   : > { %1970 = vmatprep.subr.bf16.mxu1 %v3813_v9 }
 0x1e3   : > { %1971 = vmatpush1.bf16.msra.mxu1 %v3812_v60 }
 0x1e4   : > { %1972 = vmatprep.subr.bf16.mxu1 %v3821_v49 }
 0x1e6   : > { %1922 = vmatmul.mubr.bf16.gmra.mrb[84].mxu1 %v5385_v20 }
 0x1e7   : > { %1973 = vmatpush1.bf16.msra.mxu1 %v3820_v35  ;;  %1931 = vmatprep.mubr.bf16.mxu1 %v5403_v25  ;;  %v4289_v35 = vld [vmem:[#allocation7 + $0x120] ss:$8 sps:$4 sm:$0xff]  }
 0x1e8   : > { %1974 = vmatprep.subr.bf16.mxu1 %v3829_v30 }
 0x1eb   : > { %1975 = vmatpush1.bf16.msra.mxu1 %v3828_v61 }
 0x1ec   : > { %1976 = vmatprep.subr.bf16.mxu1 %v3837_v24 }
 0x1ee   : > { %1932 = vmatmul.mubr.bf16.gmra.mrb[88].mxu1 %v5407_v53 }
 0x1ef   : > { %1977 = vmatpush1.bf16.msra.mxu1 %v3836_v3  ;;  %1941 = vmatprep.mubr.bf16.mxu1 %v5417_v42 }
 0x1f0   : > { %1978 = vmatprep.subr.bf16.mxu1 %v3845_v59 }
 0x1f3   : > { %1979 = vmatpush1.bf16.msra.mxu1 %v3844_v31 }
 0x1f4   : > { %1980 = vmatprep.subr.bf16.mxu1 %v3853_v58 }
 0x1f6   : > { %1942 = vmatmul.mubr.bf16.gmra.mrb[92].mxu1 %v5421_v40 }
 0x1f7   : > { %1981 = vmatpush1.bf16.msra.mxu1 %v3852_v51  ;;  %1984 = vmatprep.mubr.bf16.mxu1 %v5186_v43  ;;  %v5469_v43 = vrot.slane %v5464_v17, %v5860_v46  ;;  %v4295_v51 = vld [vmem:[#allocation7 + $0x140] ss:$8 sps:$4 sm:$0xff]  }
 0x1f8   : > { %1982 = vmatprep.subr.bf16.mxu1 %v3861_v37 }
 0x1fb   : > { %1983 = vmatpush1.bf16.msra.mxu1 %v3860_v48 }
 0x1fe   : > { %1985 = vmatmul.mubr.bf16.vlgmr.msra.gmra.mrb[96].mxu1 %v5193_v21  ;;  %v5861_v21 = vld [vmem:[#allocation27_spill] sm:$0xff] }
 0x1ff   : > { %1994 = vmatprep.mubr.bf16.mxu1 %v5216_v5  ;;  %v5474_v5 = vrot.slane %v5464_v17, %v5861_v21 }
 0x206   : > { %1995 = vmatmul.mubr.bf16.gmra.mrb[100].mxu1 %v5238_v6 }
 0x207   : > { %2004 = vmatprep.mubr.bf16.mxu1 %v5261_v41 }
 0x20a   : > { %v1647_v6 = vpop.f32.mrb[0].mxu1 }
 0x20b   : > { %v1648_v41 = vadd.f32 %v1647_v6, %v5469_v43  ;;  %v1649_v18 = vpop.f32.mrb[1].mxu1  ;;  %v4300_v6 = vld [vmem:[#allocation7 + $0x154] ss:$8 sps:$4 sm:$0xff]  }
 0x20c   : > { %v1650_v2 = vadd.f32 %v1649_v18, %v5474_v5  ;;  %v1651_v32 = vpop.f32.mrb[2].mxu1 }
 0x20d   : > { %v1652_v62 = vadd.f32 %v1651_v32, %v5469_v43  ;;  %v2065_v52 = vmax.f32 %v1648_v41, 0.0  ;;  %v4298_v32 = vld [vmem:[#allocation7 + $0x150] ss:$8 sps:$4 sm:$0xff]  }
 0x20e   : > { %2005 = vmatmul.mubr.bf16.gmra.mrb[104].mxu1 %v5283_v29  ;;  %v1653_v29 = vpop.f32.mrb[3].mxu1 }
 0x20f   : > { %2014 = vmatprep.mubr.bf16.mxu1 %v5306_v50  ;;  %v1654_v1 = vadd.f32 %v1653_v29, %v5474_v5  ;;  %v2073_v27 = vmax.f32 %v1652_v62, 0.0  ;;  %v2066_v50 = vmax.f32 %v1650_v2, 0.0 }
 0x211   : > { %v2074_v63 = vmax.f32 %v1654_v1, 0.0  ;;  %v2321_v10 = vpack.c.bf16 %v2073_v27, %v2065_v52  ;;  %v4303_v1 = vld [vmem:[#allocation7 + $0x164] ss:$8 sps:$4 sm:$0xff]  }
 0x213   : > { %v2322_v57 = vpack.c.bf16 %v2074_v63, %v2066_v50 }
 0x215   : > { %v1657_v8 = vpop.f32.mrb[4].mxu1  ;;  %3069 = vmatprep.mubr.bf16.mxu0 %v2322_v57 }
 0x216   : > { %2015 = vmatmul.mubr.bf16.gmra.mrb[108].mxu1 %v5328_v11  ;;  %v1658_v26 = vadd.f32 %v1657_v8, %v5469_v43  ;;  %v1659_v28 = vpop.f32.mrb[5].mxu1  ;;  %3070 = vmatmul.mubr.bf16.vlgmr.msra.gmra.mrb[0].mxu0 %v2321_v10  ;;  %v4301_v8 = vld [vmem:[#allocation7 + $0x160] ss:$8 sps:$4 sm:$0xff]  }
 0x217   : > { %2024 = vmatprep.mubr.bf16.mxu1 %v5349_v12  ;;  %v1660_v7 = vadd.f32 %v1659_v28, %v5474_v5  ;;  %v1661_v39 = vpop.f32.mrb[6].mxu1  ;;  %3151 = vmatpush1.bf16.msra.mxu0 %v4283_v16  ;;  %v4286_v12 = vld [vmem:[#allocation7 + $0x110] ss:$8 sps:$4 sm:$0xff]  }
 0x218   : > { %v1662_v14 = vadd.f32 %v1661_v39, %v5469_v43  ;;  %v1663_v4 = vpop.f32.mrb[7].mxu1  ;;  %v2081_v23 = vmax.f32 %v1658_v26, 0.0  ;;  %3152 = vmatprep.subr.bf16.mxu0 %v4288_v47  ;;  %v4306_v26 = vld [vmem:[#allocation7 + $0x174] ss:$8 sps:$4 sm:$0xff]   ;;  %v4304_v39 = vld [vmem:[#allocation7 + $0x170] ss:$8 sps:$4 sm:$0xff]  }
 0x219   : > { %v1664_v11 = vadd.f32 %v1663_v4, %v5474_v5  ;;  %v2082_v22 = vmax.f32 %v1660_v7, 0.0 }
 0x21a   : > { %v2089_v9 = vmax.f32 %v1662_v14, 0.0 }
 0x21b   : > { %v2090_v60 = vmax.f32 %v1664_v11, 0.0  ;;  %3153 = vmatpush1.bf16.msra.mxu0 %v4286_v12  ;;  %v4309_v11 = vld [vmem:[#allocation7 + $0x184] ss:$8 sps:$4 sm:$0xff]  }
 0x21c   : > { %v2329_v49 = vpack.c.bf16 %v2089_v9, %v2081_v23  ;;  %3154 = vmatprep.subr.bf16.mxu0 %v4291_v33 }
 0x21d   : > { %v2330_v13 = vpack.c.bf16 %v2090_v60, %v2082_v22  ;;  %v4307_v60 = vld [vmem:[#allocation7 + $0x180] ss:$8 sps:$4 sm:$0xff]  }
 0x21e   : > { %2025 = vmatmul.mubr.bf16.gmra.mrb[112].mxu1 %v5364_v0  ;;  %v1667_v15 = vpop.f32.mrb[8].mxu1 }
 0x21f   : > { %2034 = vmatprep.mubr.bf16.mxu1 %v5381_v45  ;;  %v1668_v30 = vadd.f32 %v1667_v15, %v5469_v43  ;;  %v1669_v44 = vpop.f32.mrb[9].mxu1  ;;  %3079 = vmatprep.mubr.bf16.mxu0 %v2330_v13  ;;  %v4312_v15 = vld [vmem:[#allocation7 + $0x194] ss:$8 sps:$4 sm:$0xff]  }
 0x220   : > { %v1670_v61 = vadd.f32 %v1669_v44, %v5474_v5  ;;  %v1671_v24 = vpop.f32.mrb[10].mxu1  ;;  %3080 = vmatmul.mubr.bf16.gmra.mrb[4].mxu0 %v2329_v49 }
 0x221   : > { %v1672_v0 = vadd.f32 %v1671_v24, %v5469_v43  ;;  %v1673_v36 = vpop.f32.mrb[11].mxu1  ;;  %3155 = vmatpush1.bf16.msra.mxu0 %v4289_v35  ;;  %v2097_v3 = vmax.f32 %v1668_v30, 0.0 }
 0x222   : > { %v1674_v45 = vadd.f32 %v1673_v36, %v5474_v5  ;;  %3156 = vmatprep.subr.bf16.mxu0 %v4294_v54  ;;  %v2098_v34 = vmax.f32 %v1670_v61, 0.0  ;;  %v4310_v61 = vld [vmem:[#allocation7 + $0x190] ss:$8 sps:$4 sm:$0xff]   ;;  %v4315_v36 = vld [vmem:[#allocation7 + $0x1a4] ss:$8 sps:$4 sm:$0xff]  }
 0x223   : > { %v2105_v59 = vmax.f32 %v1672_v0, 0.0 }
 0x224   : > { %v2106_v31 = vmax.f32 %v1674_v45, 0.0 }
 0x225   : > { %v2337_v58 = vpack.c.bf16 %v2105_v59, %v2097_v3  ;;  %3157 = vmatpush1.bf16.msra.mxu0 %v4292_v55 }
 0x226   : > { %2035 = vmatmul.mubr.bf16.gmra.mrb[116].mxu1 %v5385_v20  ;;  %v2338_v56 = vpack.c.bf16 %v2106_v31, %v2098_v34  ;;  %3158 = vmatprep.subr.bf16.mxu0 %v4297_v19  ;;  %v4313_v34 = vld [vmem:[#allocation7 + $0x1a0] ss:$8 sps:$4 sm:$0xff]  }
 0x227   : > { %2044 = vmatprep.mubr.bf16.mxu1 %v5403_v25  ;;  %v1677_v38 = vpop.f32.mrb[12].mxu1 }
 0x228   : > { %v1678_v37 = vadd.f32 %v1677_v38, %v5469_v43  ;;  %v1679_v48 = vpop.f32.mrb[13].mxu1  ;;  %3089 = vmatprep.mubr.bf16.mxu0 %v2338_v56  ;;  %v4318_v56 = vld [vmem:[#allocation7 + $0x1b4] ss:$8 sps:$4 sm:$0xff]  }
 0x229   : > { %v1680_v41 = vadd.f32 %v1679_v48, %v5474_v5  ;;  %v1681_v18 = vpop.f32.mrb[14].mxu1  ;;  %3090 = vmatmul.mubr.bf16.gmra.mrb[8].mxu0 %v2337_v58 }
 0x22a   : > { %v1682_v20 = vadd.f32 %v1681_v18, %v5469_v43  ;;  %v1683_v2 = vpop.f32.mrb[15].mxu1  ;;  %3159 = vmatpush1.bf16.msra.mxu0 %v4295_v51  ;;  %v2113_v62 = vmax.f32 %v1678_v37, 0.0 }
 0x22b   : > { %v1684_v25 = vadd.f32 %v1683_v2, %v5474_v5  ;;  %3160 = vmatprep.subr.bf16.mxu0 %v4300_v6  ;;  %v2114_v52 = vmax.f32 %v1680_v41, 0.0  ;;  %v4316_v41 = vld [vmem:[#allocation7 + $0x1b0] ss:$8 sps:$4 sm:$0xff]   ;;  %v4321_v2 = vld [vmem:[#allocation7 + $0x1c4] ss:$8 sps:$4 sm:$0xff]  }
 0x22c   : > { %v2121_v29 = vmax.f32 %v1682_v20, 0.0 }
 0x22d   : > { %v2122_v27 = vmax.f32 %v1684_v25, 0.0 }
 0x22e   : > { %2045 = vmatmul.mubr.bf16.gmra.mrb[120].mxu1 %v5407_v53  ;;  %v2345_v50 = vpack.c.bf16 %v2121_v29, %v2113_v62  ;;  %3161 = vmatpush1.bf16.msra.mxu0 %v4298_v32 }
 0x22f   : > { %2054 = vmatprep.mubr.bf16.mxu1 %v5417_v42  ;;  %v2346_v63 = vpack.c.bf16 %v2122_v27, %v2114_v52  ;;  %3162 = vmatprep.subr.bf16.mxu0 %v4303_v1  ;;  %v4319_v52 = vld [vmem:[#allocation7 + $0x1c0] ss:$8 sps:$4 sm:$0xff]  }
 0x230   : > { %v1687_v10 = vpop.f32.mrb[16].mxu1 }
 0x231   : > { %v1688_v57 = vadd.f32 %v1687_v10, %v5469_v43  ;;  %v1689_v16 = vpop.f32.mrb[17].mxu1  ;;  %3099 = vmatprep.mubr.bf16.mxu0 %v2346_v63  ;;  %v4324_v63 = vld [vmem:[#allocation7 + $0x1d4] ss:$8 sps:$4 sm:$0xff]  }
 0x232   : > { %v1690_v28 = vadd.f32 %v1689_v16, %v5474_v5  ;;  %v1691_v47 = vpop.f32.mrb[18].mxu1  ;;  %3100 = vmatmul.mubr.bf16.gmra.mrb[12].mxu0 %v2345_v50  ;;  %v5862_v10 = vld [vmem:[#allocation26_spill] sm:$0xff] }
 0x233   : > { %v1692_v53 = vadd.f32 %v1691_v47, %v5469_v43  ;;  %v1693_v7 = vpop.f32.mrb[19].mxu1  ;;  %3163 = vmatpush1.bf16.msra.mxu0 %v4301_v8  ;;  %v2129_v14 = vmax.f32 %v1688_v57, 0.0  ;;  %v943_v8 = vsub.s32 2, %v5862_v10 }
 0x234   : > { %v1694_v42 = vadd.f32 %v1693_v7, %v5474_v5  ;;  %3164 = vmatprep.subr.bf16.mxu0 %v4306_v26  ;;  %v2130_v12 = vmax.f32 %v1690_v28, 0.0  ;;  %v947_v26 = vsub.s32 3, %v5862_v10  ;;  %v4322_v7 = vld [vmem:[#allocation7 + $0x1d0] ss:$8 sps:$4 sm:$0xff]  }
 0x235   : > { %v2137_v4 = vmax.f32 %v1692_v53, 0.0 }
 0x236   : > { %2055 = vmatmul.mubr.bf16.gmra.mrb[124].mxu1 %v5421_v40  ;;  %v2138_v23 = vmax.f32 %v1694_v42, 0.0 }
 0x237   : > { %v2353_v9 = vpack.c.bf16 %v2137_v4, %v2129_v14  ;;  %3165 = vmatpush1.bf16.msra.mxu0 %v4304_v39  ;;  %v5520_v14 = vrot.slane %v5464_v17, %v943_v8  ;;  %v4327_v4 = vld [vmem:[#allocation7 + $0x1e4] ss:$8 sps:$4 sm:$0xff]  }
 0x238   : > { %v2354_v33 = vpack.c.bf16 %v2138_v23, %v2130_v12  ;;  %v1697_v22 = vpop.f32.mrb[20].mxu1  ;;  %3166 = vmatprep.subr.bf16.mxu0 %v4309_v11  ;;  %v5523_v23 = vrot.slane %v5464_v17, %v947_v26  ;;  %v4340_v26 = vld [vmem:[#allocation7 + $0x230] ss:$8 sps:$4 sm:$0xff]  }
 0x239   : > { %v1698_v49 = vadd.f32 %v1697_v22, %v5469_v43  ;;  %v1699_v13 = vpop.f32.mrb[21].mxu1  ;;  %v4325_v22 = vld [vmem:[#allocation7 + $0x1e0] ss:$8 sps:$4 sm:$0xff]  }
 0x23a   : > { %v1700_v35 = vadd.f32 %v1699_v13, %v5474_v5  ;;  %v1701_v30 = vpop.f32.mrb[22].mxu1  ;;  %3109 = vmatprep.mubr.bf16.mxu0 %v2354_v33 }
 0x23b   : > { %v1702_v40 = vadd.f32 %v1701_v30, %v5469_v43  ;;  %v1703_v44 = vpop.f32.mrb[23].mxu1  ;;  %3110 = vmatmul.mubr.bf16.gmra.mrb[16].mxu0 %v2353_v9  ;;  %v2145_v24 = vmax.f32 %v1698_v49, 0.0  ;;  %v4330_v49 = vld [vmem:[#allocation7 + $0x1f4] ss:$8 sps:$4 sm:$0xff]  }
 0x23c   : > { %v1704_v54 = vadd.f32 %v1703_v44, %v5474_v5  ;;  %3167 = vmatpush1.bf16.msra.mxu0 %v4307_v60  ;;  %v2146_v45 = vmax.f32 %v1700_v35, 0.0  ;;  %v4328_v44 = vld [vmem:[#allocation7 + $0x1f0] ss:$8 sps:$4 sm:$0xff]  }
 0x23d   : > { %v2153_v0 = vmax.f32 %v1702_v40, 0.0  ;;  %3168 = vmatprep.subr.bf16.mxu0 %v4312_v15 }
 0x23e   : > { %v2154_v55 = vmax.f32 %v1704_v54, 0.0 }
 0x23f   : > { %v2361_v3 = vpack.c.bf16 %v2153_v0, %v2145_v24  ;;  %v4333_v24 = vld [vmem:[#allocation7 + $0x204] ss:$8 sps:$4 sm:$0xff]  }
 0x240   : > { %v2362_v59 = vpack.c.bf16 %v2154_v55, %v2146_v45  ;;  %3169 = vmatpush1.bf16.msra.mxu0 %v4310_v61  ;;  %v1707_v19 = vpop.f32.mrb[24].mxu1 }
 0x241   : > { %v1708_v31 = vadd.f32 %v1707_v19, %v5469_v43  ;;  %v1709_v58 = vpop.f32.mrb[25].mxu1  ;;  %3170 = vmatprep.subr.bf16.mxu0 %v4315_v36 }
 0x242   : > { %v1710_v38 = vadd.f32 %v1709_v58, %v5474_v5  ;;  %v1711_v51 = vpop.f32.mrb[26].mxu1  ;;  %3119 = vmatprep.mubr.bf16.mxu0 %v2362_v59  ;;  %v4331_v59 = vld [vmem:[#allocation7 + $0x200] ss:$8 sps:$4 sm:$0xff]  }
 0x243   : > { %v1712_v37 = vadd.f32 %v1711_v51, %v5469_v43  ;;  %v1713_v48 = vpop.f32.mrb[27].mxu1  ;;  %3120 = vmatmul.mubr.bf16.gmra.mrb[20].mxu0 %v2361_v3  ;;  %v2161_v18 = vmax.f32 %v1708_v31, 0.0  ;;  %v4336_v31 = vld [vmem:[#allocation7 + $0x214] ss:$8 sps:$4 sm:$0xff]  }
 0x244   : > { %v1714_v6 = vadd.f32 %v1713_v48, %v5474_v5  ;;  %3171 = vmatpush1.bf16.msra.mxu0 %v4313_v34  ;;  %v2162_v25 = vmax.f32 %v1710_v38, 0.0  ;;  %v4334_v48 = vld [vmem:[#allocation7 + $0x210] ss:$8 sps:$4 sm:$0xff]  }
 0x245   : > { %v2169_v20 = vmax.f32 %v1712_v37, 0.0  ;;  %3172 = vmatprep.subr.bf16.mxu0 %v4318_v56 }
 0x246   : > { %v2170_v32 = vmax.f32 %v1714_v6, 0.0 }
 0x247   : > { %v2369_v62 = vpack.c.bf16 %v2169_v20, %v2161_v18  ;;  %v4339_v18 = vld [vmem:[#allocation7 + $0x224] ss:$8 sps:$4 sm:$0xff]  }
 0x248   : > { %v2370_v29 = vpack.c.bf16 %v2170_v32, %v2162_v25  ;;  %3173 = vmatpush1.bf16.msra.mxu0 %v4316_v41  ;;  %v1717_v1 = vpop.f32.mrb[28].mxu1 }
 0x249   : > { %v1718_v27 = vadd.f32 %v1717_v1, %v5469_v43  ;;  %v1719_v50 = vpop.f32.mrb[29].mxu1  ;;  %3174 = vmatprep.subr.bf16.mxu0 %v4321_v2 }
 0x24a   : > { %v1720_v57 = vadd.f32 %v1719_v50, %v5474_v5  ;;  %v1721_v16 = vpop.f32.mrb[30].mxu1  ;;  %3129 = vmatprep.mubr.bf16.mxu0 %v2370_v29  ;;  %v4337_v29 = vld [vmem:[#allocation7 + $0x220] ss:$8 sps:$4 sm:$0xff]  }
 0x24b   : > { %v1722_v28 = vadd.f32 %v1721_v16, %v5469_v43  ;;  %v1723_v47 = vpop.f32.mrb[31].mxu1  ;;  %3130 = vmatmul.mubr.bf16.gmra.mrb[24].mxu0 %v2369_v62  ;;  %v2177_v42 = vmax.f32 %v1718_v27, 0.0  ;;  %v4342_v27 = vld [vmem:[#allocation7 + $0x234] ss:$8 sps:$4 sm:$0xff]  }
 0x24c   : > { %v1724_v53 = vadd.f32 %v1723_v47, %v5474_v5  ;;  %3175 = vmatpush1.bf16.msra.mxu0 %v4319_v52  ;;  %v2178_v11 = vmax.f32 %v1720_v57, 0.0 }
 0x24d   : > { %v2185_v39 = vmax.f32 %v1722_v28, 0.0  ;;  %3176 = vmatprep.subr.bf16.mxu0 %v4324_v63 }
 0x24e   : > { %v2186_v12 = vmax.f32 %v1724_v53, 0.0  ;;  %v4345_v53 = vld [vmem:[#allocation7 + $0x244] ss:$8 sps:$4 sm:$0xff]  }
 0x24f   : > { %v2377_v9 = vpack.c.bf16 %v2185_v39, %v2177_v42 }
 0x250   : > { %v2378_v43 = vpack.c.bf16 %v2186_v12, %v2178_v11  ;;  %3177 = vmatpush1.bf16.msra.mxu0 %v4322_v7  ;;  %v4343_v12 = vld [vmem:[#allocation7 + $0x240] ss:$8 sps:$4 sm:$0xff]  }
 0x251   : > { %v1760_v33 = vpop.f32.mrb[32].mxu1  ;;  %3178 = vmatprep.subr.bf16.mxu0 %v4327_v4 }
 0x252   : > { %v1761_v5 = vadd.f32 %v1760_v33, %v5520_v14  ;;  %v1762_v60 = vpop.f32.mrb[33].mxu1  ;;  %3139 = vmatprep.mubr.bf16.mxu0 %v2378_v43  ;;  %v4348_v33 = vld [vmem:[#allocation7 + $0x254] ss:$8 sps:$4 sm:$0xff]  }
 0x253   : > { %v1763_v13 = vadd.f32 %v1762_v60, %v5523_v23  ;;  %v1764_v15 = vpop.f32.mrb[34].mxu1  ;;  %3140 = vmatmul.mubr.bf16.gmra.mrb[28].mxu0 %v2377_v9 }
 0x254   : > { %v1765_v35 = vadd.f32 %v1764_v15, %v5520_v14  ;;  %v1766_v30 = vpop.f32.mrb[35].mxu1  ;;  %3179 = vmatpush1.bf16.msra.mxu0 %v4325_v22  ;;  %v2067_v54 = vmax.f32 %v1761_v5, 0.0  ;;  %v4346_v15 = vld [vmem:[#allocation7 + $0x250] ss:$8 sps:$4 sm:$0xff]  }
 0x255   : > { %v1767_v40 = vadd.f32 %v1766_v30, %v5523_v23  ;;  %3180 = vmatprep.subr.bf16.mxu0 %v4330_v49  ;;  %v2068_v0 = vmax.f32 %v1763_v13, 0.0 }
 0x256   : > { %v2075_v61 = vmax.f32 %v1765_v35, 0.0 }
 0x257   : > { %v2076_v36 = vmax.f32 %v1767_v40, 0.0  ;;  %v4351_v40 = vld [vmem:[#allocation7 + $0x264] ss:$8 sps:$4 sm:$0xff]  }
 0x258   : > { %v2323_v45 = vpack.c.bf16 %v2075_v61, %v2067_v54  ;;  %3181 = vmatpush1.bf16.msra.mxu0 %v4328_v44 }
 0x259   : > { %v2324_v55 = vpack.c.bf16 %v2076_v36, %v2068_v0  ;;  %v1770_v3 = vpop.f32.mrb[36].mxu1  ;;  %3263 = vmatprep.subr.bf16.mxu0 %v4333_v24  ;;  %v4349_v36 = vld [vmem:[#allocation7 + $0x260] ss:$8 sps:$4 sm:$0xff]  }
 0x25a   : > { %v1771_v19 = vadd.f32 %v1770_v3, %v5520_v14  ;;  %v1772_v34 = vpop.f32.mrb[37].mxu1  ;;  %v4354_v3 = vld [vmem:[#allocation7 + $0x274] ss:$8 sps:$4 sm:$0xff]  }
 0x25b   : > { %v1773_v58 = vadd.f32 %v1772_v34, %v5523_v23  ;;  %v1774_v56 = vpop.f32.mrb[38].mxu1  ;;  %3182 = vmatprep.mubr.bf16.mxu0 %v2324_v55 }
 0x25c   : > { %v1775_v38 = vadd.f32 %v1774_v56, %v5520_v14  ;;  %v1776_v51 = vpop.f32.mrb[39].mxu1  ;;  %3183 = vmatmul.mubr.bf16.vlgmr.msra.gmra.mrb[0].mxu0 %v2323_v45  ;;  %v2083_v6 = vmax.f32 %v1771_v19, 0.0  ;;  %v4352_v56 = vld [vmem:[#allocation7 + $0x270] ss:$8 sps:$4 sm:$0xff]  }
 0x25d   : > { %v1777_v37 = vadd.f32 %v1776_v51, %v5523_v23  ;;  %3264 = vmatpush1.bf16.msra.mxu0 %v4331_v59  ;;  %v2084_v20 = vmax.f32 %v1773_v58, 0.0 }
 0x25e   : > { %v2091_v41 = vmax.f32 %v1775_v38, 0.0  ;;  %3265 = vmatprep.subr.bf16.mxu0 %v4336_v31 }
 0x25f   : > { %v2092_v2 = vmax.f32 %v1777_v37, 0.0  ;;  %v4357_v37 = vld [vmem:[#allocation7 + $0x284] ss:$8 sps:$4 sm:$0xff]  }
 0x260   : > { %v2331_v25 = vpack.c.bf16 %v2091_v41, %v2083_v6 }
 0x261   : > { %v2332_v32 = vpack.c.bf16 %v2092_v2, %v2084_v20  ;;  %3266 = vmatpush1.bf16.msra.mxu0 %v4334_v48  ;;  %v1780_v62 = vpop.f32.mrb[40].mxu1  ;;  %v4355_v2 = vld [vmem:[#allocation7 + $0x280] ss:$8 sps:$4 sm:$0xff]  }
 0x262   : > { %v1781_v1 = vadd.f32 %v1780_v62, %v5520_v14  ;;  %v1782_v52 = vpop.f32.mrb[41].mxu1  ;;  %3267 = vmatprep.subr.bf16.mxu0 %v4339_v18  ;;  %v4360_v62 = vld [vmem:[#allocation7 + $0x294] ss:$8 sps:$4 sm:$0xff]  }
 0x263   : > { %v1783_v50 = vadd.f32 %v1782_v52, %v5523_v23  ;;  %v1784_v63 = vpop.f32.mrb[42].mxu1  ;;  %3192 = vmatprep.mubr.bf16.mxu0 %v2332_v32 }
 0x264   : > { %v1785_v8 = vadd.f32 %v1784_v63, %v5520_v14  ;;  %v1786_v57 = vpop.f32.mrb[43].mxu1  ;;  %3193 = vmatmul.mubr.bf16.gmra.mrb[4].mxu0 %v2331_v25  ;;  %v2099_v28 = vmax.f32 %v1781_v1, 0.0  ;;  %v4358_v63 = vld [vmem:[#allocation7 + $0x290] ss:$8 sps:$4 sm:$0xff]  }
 0x265   : > { %v1787_v16 = vadd.f32 %v1786_v57, %v5523_v23  ;;  %3268 = vmatpush1.bf16.msra.mxu0 %v4337_v29  ;;  %v2100_v7 = vmax.f32 %v1783_v50, 0.0 }
 0x266   : > { %v2107_v47 = vmax.f32 %v1785_v8, 0.0  ;;  %3269 = vmatprep.subr.bf16.mxu0 %v4342_v27 }
 0x267   : > { %v2108_v42 = vmax.f32 %v1787_v16, 0.0  ;;  %v4363_v16 = vld [vmem:[#allocation7 + $0x2a4] ss:$8 sps:$4 sm:$0xff]  }
 0x268   : > { %v2339_v39 = vpack.c.bf16 %v2107_v47, %v2099_v28 }
 0x269   : > { %v2340_v4 = vpack.c.bf16 %v2108_v42, %v2100_v7  ;;  %3270 = vmatpush1.bf16.msra.mxu0 %v4340_v26  ;;  %v1790_v11 = vpop.f32.mrb[44].mxu1  ;;  %v4361_v42 = vld [vmem:[#allocation7 + $0x2a0] ss:$8 sps:$4 sm:$0xff]  }
 0x26a   : > { %v1791_v9 = vadd.f32 %v1790_v11, %v5520_v14  ;;  %v1792_v43 = vpop.f32.mrb[45].mxu1  ;;  %3271 = vmatprep.subr.bf16.mxu0 %v4345_v53  ;;  %v4366_v11 = vld [vmem:[#allocation7 + $0x2b4] ss:$8 sps:$4 sm:$0xff]  }
 0x26b   : > { %v1793_v22 = vadd.f32 %v1792_v43, %v5523_v23  ;;  %v1794_v5 = vpop.f32.mrb[46].mxu1  ;;  %3202 = vmatprep.mubr.bf16.mxu0 %v2340_v4 }
 0x26c   : > { %v1795_v60 = vadd.f32 %v1794_v5, %v5520_v14  ;;  %v1796_v49 = vpop.f32.mrb[47].mxu1  ;;  %3203 = vmatmul.mubr.bf16.gmra.mrb[8].mxu0 %v2339_v39  ;;  %v2115_v35 = vmax.f32 %v1791_v9, 0.0  ;;  %v4364_v5 = vld [vmem:[#allocation7 + $0x2b0] ss:$8 sps:$4 sm:$0xff]  }
 0x26d   : > { %v1797_v13 = vadd.f32 %v1796_v49, %v5523_v23  ;;  %3272 = vmatpush1.bf16.msra.mxu0 %v4343_v12  ;;  %v2116_v44 = vmax.f32 %v1793_v22, 0.0 }
 0x26e   : > { %v2123_v30 = vmax.f32 %v1795_v60, 0.0  ;;  %3273 = vmatprep.subr.bf16.mxu0 %v4348_v33 }
 0x26f   : > { %v2124_v54 = vmax.f32 %v1797_v13, 0.0  ;;  %v4369_v13 = vld [vmem:[#allocation7 + $0x2c4] ss:$8 sps:$4 sm:$0xff]  }
 0x270   : > { %v2347_v61 = vpack.c.bf16 %v2123_v30, %v2115_v35 }
 0x271   : > { %v2348_v24 = vpack.c.bf16 %v2124_v54, %v2116_v44  ;;  %3274 = vmatpush1.bf16.msra.mxu0 %v4346_v15  ;;  %v1800_v0 = vpop.f32.mrb[48].mxu1  ;;  %v4367_v54 = vld [vmem:[#allocation7 + $0x2c0] ss:$8 sps:$4 sm:$0xff]  }
 0x272   : > { %v1801_v45 = vadd.f32 %v1800_v0, %v5520_v14  ;;  %v1802_v55 = vpop.f32.mrb[49].mxu1  ;;  %3275 = vmatprep.subr.bf16.mxu0 %v4351_v40  ;;  %v4372_v0 = vld [vmem:[#allocation7 + $0x2d4] ss:$8 sps:$4 sm:$0xff]  }
 0x273   : > { %v1803_v59 = vadd.f32 %v1802_v55, %v5523_v23  ;;  %v1804_v19 = vpop.f32.mrb[50].mxu1  ;;  %3212 = vmatprep.mubr.bf16.mxu0 %v2348_v24 }
 0x274   : > { %v1805_v34 = vadd.f32 %v1804_v19, %v5520_v14  ;;  %v1806_v31 = vpop.f32.mrb[51].mxu1  ;;  %3213 = vmatmul.mubr.bf16.gmra.mrb[12].mxu0 %v2347_v61  ;;  %v2131_v38 = vmax.f32 %v1801_v45, 0.0 }
 0x275   : > { %v1807_v58 = vadd.f32 %v1806_v31, %v5523_v23  ;;  %3276 = vmatpush1.bf16.msra.mxu0 %v4349_v36  ;;  %v2132_v48 = vmax.f32 %v1803_v59, 0.0  ;;  %v951_v36 = vsub.s32 4, %v5862_v10  ;;  %v4370_v31 = vld [vmem:[#allocation7 + $0x2d0] ss:$8 sps:$4 sm:$0xff]  }
 0x276   : > { %v2139_v51 = vmax.f32 %v1805_v34, 0.0  ;;  %3277 = vmatprep.subr.bf16.mxu0 %v4354_v3  ;;  %v955_v3 = vsub.s32 5, %v5862_v10 }
 0x277   : > { %v2140_v6 = vmax.f32 %v1807_v58, 0.0 }
 0x278   : > { %v2355_v41 = vpack.c.bf16 %v2139_v51, %v2131_v38  ;;  %v5560_v38 = vrot.slane %v5464_v17, %v951_v36  ;;  %v4375_v51 = vld [vmem:[#allocation7 + $0x2e4] ss:$8 sps:$4 sm:$0xff]  }
 0x279   : > { %v2356_v18 = vpack.c.bf16 %v2140_v6, %v2132_v48  ;;  %3278 = vmatpush1.bf16.msra.mxu0 %v4352_v56  ;;  %v1810_v20 = vpop.f32.mrb[52].mxu1  ;;  %v5563_v6 = vrot.slane %v5464_v17, %v955_v3 }
 0x27a   : > { %v1811_v25 = vadd.f32 %v1810_v20, %v5520_v14  ;;  %v1812_v32 = vpop.f32.mrb[53].mxu1  ;;  %3279 = vmatprep.subr.bf16.mxu0 %v4357_v37  ;;  %v4373_v20 = vld [vmem:[#allocation7 + $0x2e0] ss:$8 sps:$4 sm:$0xff]  }
 0x27b   : > { %v1813_v29 = vadd.f32 %v1812_v32, %v5523_v23  ;;  %v1814_v1 = vpop.f32.mrb[54].mxu1  ;;  %3222 = vmatprep.mubr.bf16.mxu0 %v2356_v18 }
 0x27c   : > { %v1815_v52 = vadd.f32 %v1814_v1, %v5520_v14  ;;  %v1816_v27 = vpop.f32.mrb[55].mxu1  ;;  %3223 = vmatmul.mubr.bf16.gmra.mrb[16].mxu0 %v2355_v41  ;;  %v2147_v8 = vmax.f32 %v1811_v25, 0.0  ;;  %v4378_v25 = vld [vmem:[#allocation7 + $0x2f4] ss:$8 sps:$4 sm:$0xff]  }
 0x27d   : > { %v1817_v50 = vadd.f32 %v1816_v27, %v5523_v23  ;;  %3280 = vmatpush1.bf16.msra.mxu0 %v4355_v2  ;;  %v2148_v26 = vmax.f32 %v1813_v29, 0.0 }
 0x27e   : > { %v2155_v57 = vmax.f32 %v1815_v52, 0.0  ;;  %3281 = vmatprep.subr.bf16.mxu0 %v4360_v62  ;;  %v4376_v52 = vld [vmem:[#allocation7 + $0x2f0] ss:$8 sps:$4 sm:$0xff]  }
 0x27f   : > { %v2156_v28 = vmax.f32 %v1817_v50, 0.0 }
 0x280   : > { %v2363_v47 = vpack.c.bf16 %v2155_v57, %v2147_v8 }
 0x281   : > { %v2364_v53 = vpack.c.bf16 %v2156_v28, %v2148_v26  ;;  %3282 = vmatpush1.bf16.msra.mxu0 %v4358_v63  ;;  %v1820_v7 = vpop.f32.mrb[56].mxu1  ;;  %v4381_v63 = vld [vmem:[#allocation7 + $0x304] ss:$8 sps:$4 sm:$0xff]  }
 0x282   : > { %v1821_v39 = vadd.f32 %v1820_v7, %v5520_v14  ;;  %v1822_v4 = vpop.f32.mrb[57].mxu1  ;;  %3283 = vmatprep.subr.bf16.mxu0 %v4363_v16 }
 0x283   : > { %v1823_v12 = vadd.f32 %v1822_v4, %v5523_v23  ;;  %v1824_v9 = vpop.f32.mrb[58].mxu1  ;;  %3232 = vmatprep.mubr.bf16.mxu0 %v2364_v53 }
 0x284   : > { %v1825_v43 = vadd.f32 %v1824_v9, %v5520_v14  ;;  %v1826_v33 = vpop.f32.mrb[59].mxu1  ;;  %3233 = vmatmul.mubr.bf16.gmra.mrb[20].mxu0 %v2363_v47  ;;  %v2163_v60 = vmax.f32 %v1821_v39, 0.0  ;;  %v4379_v47 = vld [vmem:[#allocation7 + $0x300] ss:$8 sps:$4 sm:$0xff]  }
 0x285   : > { %v1827_v22 = vadd.f32 %v1826_v33, %v5523_v23  ;;  %3284 = vmatpush1.bf16.msra.mxu0 %v4361_v42  ;;  %v2164_v15 = vmax.f32 %v1823_v12, 0.0  ;;  %v4384_v42 = vld [vmem:[#allocation7 + $0x314] ss:$8 sps:$4 sm:$0xff]  }
 0x286   : > { %v2171_v49 = vmax.f32 %v1825_v43, 0.0  ;;  %3285 = vmatprep.subr.bf16.mxu0 %v4366_v11  ;;  %v4382_v43 = vld [vmem:[#allocation7 + $0x310] ss:$8 sps:$4 sm:$0xff]  }
 0x287   : > { %v2172_v35 = vmax.f32 %v1827_v22, 0.0 }
 0x288   : > { %v2371_v30 = vpack.c.bf16 %v2171_v49, %v2163_v60 }
 0x289   : > { %v2372_v40 = vpack.c.bf16 %v2172_v35, %v2164_v15  ;;  %3286 = vmatpush1.bf16.msra.mxu0 %v4364_v5  ;;  %v1830_v44 = vpop.f32.mrb[60].mxu1  ;;  %v4387_v5 = vld [vmem:[#allocation7 + $0x324] ss:$8 sps:$4 sm:$0xff]  }
 0x28a   : > { %v1831_v61 = vadd.f32 %v1830_v44, %v5520_v14  ;;  %v1832_v24 = vpop.f32.mrb[61].mxu1  ;;  %3287 = vmatprep.subr.bf16.mxu0 %v4369_v13 }
 0x28b   : > { %v1833_v45 = vadd.f32 %v1832_v24, %v5523_v23  ;;  %v1834_v55 = vpop.f32.mrb[62].mxu1  ;;  %3242 = vmatprep.mubr.bf16.mxu0 %v2372_v40 }
 0x28c   : > { %v1835_v59 = vadd.f32 %v1834_v55, %v5520_v14  ;;  %v1836_v19 = vpop.f32.mrb[63].mxu1  ;;  %3243 = vmatmul.mubr.bf16.gmra.mrb[24].mxu0 %v2371_v30  ;;  %v2179_v58 = vmax.f32 %v1831_v61, 0.0  ;;  %v4385_v30 = vld [vmem:[#allocation7 + $0x320] ss:$8 sps:$4 sm:$0xff]   ;;  %v4388_v55 = vld [vmem:[#allocation7 + $0x330] ss:$8 sps:$4 sm:$0xff]  }
 0x28d   : > { %v1837_v34 = vadd.f32 %v1836_v19, %v5523_v23  ;;  %3288 = vmatpush1.bf16.msra.mxu0 %v4367_v54  ;;  %v2180_v37 = vmax.f32 %v1833_v45, 0.0  ;;  %v4390_v54 = vld [vmem:[#allocation7 + $0x334] ss:$8 sps:$4 sm:$0xff]   ;;  %v4393_v19 = vld [vmem:[#allocation7 + $0x344] ss:$8 sps:$4 sm:$0xff]  }
 0x28e   : > { %v2187_v56 = vmax.f32 %v1835_v59, 0.0  ;;  %3289 = vmatprep.subr.bf16.mxu0 %v4372_v0 }
 0x28f   : > { %v2188_v48 = vmax.f32 %v1837_v34, 0.0 }
 0x290   : > { %v2379_v41 = vpack.c.bf16 %v2187_v56, %v2179_v58 }
 0x291   : > { %v2380_v14 = vpack.c.bf16 %v2188_v48, %v2180_v37  ;;  %3290 = vmatpush1.bf16.msra.mxu0 %v4370_v31  ;;  %v1873_v18 = vpop.f32.mrb[64].mxu1  ;;  %v4391_v37 = vld [vmem:[#allocation7 + $0x340] ss:$8 sps:$4 sm:$0xff]  }
 0x292   : > { %v1874_v23 = vadd.f32 %v1873_v18, %v5560_v38  ;;  %v1875_v2 = vpop.f32.mrb[65].mxu1  ;;  %3291 = vmatprep.subr.bf16.mxu0 %v4375_v51 }
 0x293   : > { %v1876_v32 = vadd.f32 %v1875_v2, %v5563_v6  ;;  %v1877_v62 = vpop.f32.mrb[66].mxu1  ;;  %3252 = vmatprep.mubr.bf16.mxu0 %v2380_v14  ;;  %v4396_v14 = vld [vmem:[#allocation7 + $0x354] ss:$8 sps:$4 sm:$0xff]  }
 0x294   : > { %v1878_v29 = vadd.f32 %v1877_v62, %v5560_v38  ;;  %v1879_v1 = vpop.f32.mrb[67].mxu1  ;;  %3253 = vmatmul.mubr.bf16.gmra.mrb[28].mxu0 %v2379_v41  ;;  %v2069_v27 = vmax.f32 %v1874_v23, 0.0 }
 0x295   : > { %v1880_v17 = vadd.f32 %v1879_v1, %v5563_v6  ;;  %3292 = vmatpush1.bf16.msra.mxu0 %v4373_v20  ;;  %v2070_v8 = vmax.f32 %v1876_v32, 0.0  ;;  %v4394_v32 = vld [vmem:[#allocation7 + $0x350] ss:$8 sps:$4 sm:$0xff]   ;;  %v4399_v1 = vld [vmem:[#allocation7 + $0x364] ss:$8 sps:$4 sm:$0xff]  }
 0x296   : > { %v2077_v50 = vmax.f32 %v1878_v29, 0.0  ;;  %3293 = vmatprep.subr.bf16.mxu0 %v4378_v25 }
 0x297   : > { %v2078_v57 = vmax.f32 %v1880_v17, 0.0 }
 0x298   : > { %v2325_v16 = vpack.c.bf16 %v2077_v50, %v2069_v27 }
 0x299   : > { %v2326_v26 = vpack.c.bf16 %v2078_v57, %v2070_v8  ;;  %3294 = vmatpush1.bf16.msra.mxu0 %v4376_v52  ;;  %v1883_v28 = vpop.f32.mrb[68].mxu1  ;;  %v4397_v8 = vld [vmem:[#allocation7 + $0x360] ss:$8 sps:$4 sm:$0xff]  }
 0x29a   : > { %v1884_v53 = vadd.f32 %v1883_v28, %v5560_v38  ;;  %v1885_v7 = vpop.f32.mrb[69].mxu1  ;;  %3376 = vmatprep.subr.bf16.mxu0 %v4381_v63 }
 0x29b   : > { %v1886_v39 = vadd.f32 %v1885_v7, %v5563_v6  ;;  %v1887_v4 = vpop.f32.mrb[70].mxu1  ;;  %3295 = vmatprep.mubr.bf16.mxu0 %v2326_v26  ;;  %v4402_v26 = vld [vmem:[#allocation7 + $0x374] ss:$8 sps:$4 sm:$0xff]  }
 0x29c   : > { %v1888_v11 = vadd.f32 %v1887_v4, %v5560_v38  ;;  %v1889_v12 = vpop.f32.mrb[71].mxu1  ;;  %3296 = vmatmul.mubr.bf16.vlgmr.msra.gmra.mrb[0].mxu0 %v2325_v16  ;;  %v2085_v33 = vmax.f32 %v1884_v53, 0.0 }
 0x29d   : > { %v1890_v9 = vadd.f32 %v1889_v12, %v5563_v6  ;;  %3377 = vmatpush1.bf16.msra.mxu0 %v4379_v47  ;;  %v2086_v60 = vmax.f32 %v1886_v39, 0.0  ;;  %v4400_v39 = vld [vmem:[#allocation7 + $0x370] ss:$8 sps:$4 sm:$0xff]   ;;  %v4405_v12 = vld [vmem:[#allocation7 + $0x384] ss:$8 sps:$4 sm:$0xff]  }
 0x29e   : > { %v2093_v22 = vmax.f32 %v1888_v11, 0.0  ;;  %3378 = vmatprep.subr.bf16.mxu0 %v4384_v42 }
 0x29f   : > { %v2094_v49 = vmax.f32 %v1890_v9, 0.0 }
 0x2a0   : > { %v2333_v13 = vpack.c.bf16 %v2093_v22, %v2085_v33 }
 0x2a1   : > { %v2334_v15 = vpack.c.bf16 %v2094_v49, %v2086_v60  ;;  %3379 = vmatpush1.bf16.msra.mxu0 %v4382_v43  ;;  %v1893_v35 = vpop.f32.mrb[72].mxu1  ;;  %v4403_v60 = vld [vmem:[#allocation7 + $0x380] ss:$8 sps:$4 sm:$0xff]  }
 0x2a2   : > { %v1894_v40 = vadd.f32 %v1893_v35, %v5560_v38  ;;  %v1895_v44 = vpop.f32.mrb[73].mxu1  ;;  %3380 = vmatprep.subr.bf16.mxu0 %v4387_v5 }
 0x2a3   : > { %v1896_v61 = vadd.f32 %v1895_v44, %v5563_v6  ;;  %v1897_v24 = vpop.f32.mrb[74].mxu1  ;;  %3305 = vmatprep.mubr.bf16.mxu0 %v2334_v15  ;;  %v4408_v15 = vld [vmem:[#allocation7 + $0x394] ss:$8 sps:$4 sm:$0xff]  }
 0x2a4   : > { %v1898_v0 = vadd.f32 %v1897_v24, %v5560_v38  ;;  %v1899_v36 = vpop.f32.mrb[75].mxu1  ;;  %3306 = vmatmul.mubr.bf16.gmra.mrb[4].mxu0 %v2333_v13  ;;  %v2101_v3 = vmax.f32 %v1894_v40, 0.0 }
 0x2a5   : > { %v1900_v45 = vadd.f32 %v1899_v36, %v5563_v6  ;;  %3381 = vmatpush1.bf16.msra.mxu0 %v4385_v30  ;;  %v2102_v34 = vmax.f32 %v1896_v61, 0.0  ;;  %v4406_v61 = vld [vmem:[#allocation7 + $0x390] ss:$8 sps:$4 sm:$0xff]   ;;  %v4411_v36 = vld [vmem:[#allocation7 + $0x3a4] ss:$8 sps:$4 sm:$0xff]  }
 0x2a6   : > { %v2109_v59 = vmax.f32 %v1898_v0, 0.0  ;;  %3382 = vmatprep.subr.bf16.mxu0 %v4390_v54 }
 0x2a7   : > { %v2110_v31 = vmax.f32 %v1900_v45, 0.0 }
 0x2a8   : > { %v2341_v58 = vpack.c.bf16 %v2109_v59, %v2101_v3 }
 0x2a9   : > { %v2342_v56 = vpack.c.bf16 %v2110_v31, %v2102_v34  ;;  %3383 = vmatpush1.bf16.msra.mxu0 %v4388_v55  ;;  %v1903_v51 = vpop.f32.mrb[76].mxu1  ;;  %v4409_v34 = vld [vmem:[#allocation7 + $0x3a0] ss:$8 sps:$4 sm:$0xff]  }
 0x2aa   : > { %v1904_v48 = vadd.f32 %v1903_v51, %v5560_v38  ;;  %v1905_v41 = vpop.f32.mrb[77].mxu1  ;;  %3384 = vmatprep.subr.bf16.mxu0 %v4393_v19 }
 0x2ab   : > { %v1906_v18 = vadd.f32 %v1905_v41, %v5563_v6  ;;  %v1907_v20 = vpop.f32.mrb[78].mxu1  ;;  %3315 = vmatprep.mubr.bf16.mxu0 %v2342_v56  ;;  %v4414_v56 = vld [vmem:[#allocation7 + $0x3b4] ss:$8 sps:$4 sm:$0xff]  }
 0x2ac   : > { %v1908_v23 = vadd.f32 %v1907_v20, %v5560_v38  ;;  %v1909_v2 = vpop.f32.mrb[79].mxu1  ;;  %3316 = vmatmul.mubr.bf16.gmra.mrb[8].mxu0 %v2341_v58  ;;  %v2117_v62 = vmax.f32 %v1904_v48, 0.0 }
 0x2ad   : > { %v1910_v25 = vadd.f32 %v1909_v2, %v5563_v6  ;;  %3385 = vmatpush1.bf16.msra.mxu0 %v4391_v37  ;;  %v2118_v17 = vmax.f32 %v1906_v18, 0.0  ;;  %v4412_v18 = vld [vmem:[#allocation7 + $0x3b0] ss:$8 sps:$4 sm:$0xff]   ;;  %v4417_v2 = vld [vmem:[#allocation7 + $0x3c4] ss:$8 sps:$4 sm:$0xff]  }
 0x2ae   : > { %v2125_v29 = vmax.f32 %v1908_v23, 0.0  ;;  %3386 = vmatprep.subr.bf16.mxu0 %v4396_v14 }
 0x2af   : > { %v2126_v52 = vmax.f32 %v1910_v25, 0.0 }
 0x2b0   : > { %v2349_v27 = vpack.c.bf16 %v2125_v29, %v2117_v62 }
 0x2b1   : > { %v2350_v50 = vpack.c.bf16 %v2126_v52, %v2118_v17  ;;  %3387 = vmatpush1.bf16.msra.mxu0 %v4394_v32  ;;  %v1913_v63 = vpop.f32.mrb[80].mxu1  ;;  %v4415_v17 = vld [vmem:[#allocation7 + $0x3c0] ss:$8 sps:$4 sm:$0xff]  }
 0x2b2   : > { %v1914_v57 = vadd.f32 %v1913_v63, %v5560_v38  ;;  %v1915_v16 = vpop.f32.mrb[81].mxu1  ;;  %3388 = vmatprep.subr.bf16.mxu0 %v4399_v1  ;;  %v959_v63 = vsub.s32 6, %v5862_v10 }
 0x2b3   : > { %v1916_v28 = vadd.f32 %v1915_v16, %v5563_v6  ;;  %v1917_v47 = vpop.f32.mrb[82].mxu1  ;;  %3325 = vmatprep.mubr.bf16.mxu0 %v2350_v50  ;;  %v4420_v50 = vld [vmem:[#allocation7 + $0x3d4] ss:$8 sps:$4 sm:$0xff]   ;;  %v963_v16 = vsub.s32 7, %v5862_v10 }
 0x2b4   : > { %v1918_v53 = vadd.f32 %v1917_v47, %v5560_v38  ;;  %v1919_v7 = vpop.f32.mrb[83].mxu1  ;;  %3326 = vmatmul.mubr.bf16.gmra.mrb[12].mxu0 %v2349_v27  ;;  %v2133_v4 = vmax.f32 %v1914_v57, 0.0 }
 0x2b5   : > { %v1920_v42 = vadd.f32 %v1919_v7, %v5563_v6  ;;  %3389 = vmatpush1.bf16.msra.mxu0 %v4397_v8  ;;  %v2134_v9 = vmax.f32 %v1916_v28, 0.0 }
 0x2b6   : > { %v2141_v11 = vmax.f32 %v1918_v53, 0.0  ;;  %3390 = vmatprep.subr.bf16.mxu0 %v4402_v26  ;;  %v4418_v53 = vld [vmem:[#allocation7 + $0x3d0] ss:$8 sps:$4 sm:$0xff]  }
 0x2b7   : > { %v2142_v43 = vmax.f32 %v1920_v42, 0.0 }
 0x2b8   : > { %v2357_v33 = vpack.c.bf16 %v2141_v11, %v2133_v4  ;;  %v4423_v11 = vld [vmem:[#allocation7 + $0x3e4] ss:$8 sps:$4 sm:$0xff]  }
 0x2b9   : > { %v2358_v22 = vpack.c.bf16 %v2142_v43, %v2134_v9  ;;  %3391 = vmatpush1.bf16.msra.mxu0 %v4400_v39  ;;  %v1923_v5 = vpop.f32.mrb[84].mxu1  ;;  %v4459_v39 = vld [vmem:[%s5765_s4] sm:$0xff] }
 0x2ba   : > { %v1924_v49 = vadd.f32 %v1923_v5, %v5560_v38  ;;  %v1925_v13 = vpop.f32.mrb[85].mxu1  ;;  %3392 = vmatprep.subr.bf16.mxu0 %v4405_v12  ;;  %v5602_v4 = vrot.slane %v4459_v39, %v959_v63  ;;  %v5604_v9 = vrot.slane %v4459_v39, %v963_v16 }
 0x2bb   : > { %v1926_v35 = vadd.f32 %v1925_v13, %v5563_v6  ;;  %v1927_v30 = vpop.f32.mrb[86].mxu1  ;;  %3335 = vmatprep.mubr.bf16.mxu0 %v2358_v22 }
 0x2bc   : > { %v1928_v40 = vadd.f32 %v1927_v30, %v5560_v38  ;;  %v1929_v44 = vpop.f32.mrb[87].mxu1  ;;  %3336 = vmatmul.mubr.bf16.gmra.mrb[16].mxu0 %v2357_v33  ;;  %v2149_v24 = vmax.f32 %v1924_v49, 0.0  ;;  %v4421_v33 = vld [vmem:[#allocation7 + $0x3e0] ss:$8 sps:$4 sm:$0xff]  }
 0x2bd   : > { %v1930_v54 = vadd.f32 %v1929_v44, %v5563_v6  ;;  %3393 = vmatpush1.bf16.msra.mxu0 %v4403_v60  ;;  %v2150_v45 = vmax.f32 %v1926_v35, 0.0  ;;  %v4426_v60 = vld [vmem:[#allocation7 + $0x3f4] ss:$8 sps:$4 sm:$0xff]  }
 0x2be   : > { %v2157_v0 = vmax.f32 %v1928_v40, 0.0  ;;  %3394 = vmatprep.subr.bf16.mxu0 %v4408_v15  ;;  %v4424_v40 = vld [vmem:[#allocation7 + $0x3f0] ss:$8 sps:$4 sm:$0xff]  }
 0x2bf   : > { %v2158_v55 = vmax.f32 %v1930_v54, 0.0 }
 0x2c0   : > { %v2365_v3 = vpack.c.bf16 %v2157_v0, %v2149_v24 }
 0x2c1   : > { %v2366_v59 = vpack.c.bf16 %v2158_v55, %v2150_v45  ;;  %3395 = vmatpush1.bf16.msra.mxu0 %v4406_v61  ;;  %v1933_v19 = vpop.f32.mrb[88].mxu1 }
 0x2c2   : > { %v1934_v31 = vadd.f32 %v1933_v19, %v5560_v38  ;;  %v1935_v58 = vpop.f32.mrb[89].mxu1  ;;  %3396 = vmatprep.subr.bf16.mxu0 %v4411_v36 }
 0x2c3   : > { %v1936_v51 = vadd.f32 %v1935_v58, %v5563_v6  ;;  %v1937_v37 = vpop.f32.mrb[90].mxu1  ;;  %3345 = vmatprep.mubr.bf16.mxu0 %v2366_v59 }
 0x2c4   : > { %v1938_v48 = vadd.f32 %v1937_v37, %v5560_v38  ;;  %v1939_v41 = vpop.f32.mrb[91].mxu1  ;;  %3346 = vmatmul.mubr.bf16.gmra.mrb[20].mxu0 %v2365_v3  ;;  %v2165_v20 = vmax.f32 %v1934_v31, 0.0 }
 0x2c5   : > { %v1940_v14 = vadd.f32 %v1939_v41, %v5563_v6  ;;  %3397 = vmatpush1.bf16.msra.mxu0 %v4409_v34  ;;  %v2166_v25 = vmax.f32 %v1936_v51, 0.0 }
 0x2c6   : > { %v2173_v23 = vmax.f32 %v1938_v48, 0.0  ;;  %3398 = vmatprep.subr.bf16.mxu0 %v4414_v56 }
 0x2c7   : > { %v2174_v32 = vmax.f32 %v1940_v14, 0.0 }
 0x2c8   : > { %v2373_v62 = vpack.c.bf16 %v2173_v23, %v2165_v20 }
 0x2c9   : > { %v2374_v29 = vpack.c.bf16 %v2174_v32, %v2166_v25  ;;  %3399 = vmatpush1.bf16.msra.mxu0 %v4412_v18  ;;  %v1943_v1 = vpop.f32.mrb[92].mxu1 }
 0x2ca   : > { %v1944_v52 = vadd.f32 %v1943_v1, %v5560_v38  ;;  %v1945_v27 = vpop.f32.mrb[93].mxu1  ;;  %3400 = vmatprep.subr.bf16.mxu0 %v4417_v2 }
 0x2cb   : > { %v1946_v8 = vadd.f32 %v1945_v27, %v5563_v6  ;;  %v1947_v57 = vpop.f32.mrb[94].mxu1  ;;  %3355 = vmatprep.mubr.bf16.mxu0 %v2374_v29 }
 0x2cc   : > { %v1948_v26 = vadd.f32 %v1947_v57, %v5560_v38  ;;  %v1949_v28 = vpop.f32.mrb[95].mxu1  ;;  %3356 = vmatmul.mubr.bf16.gmra.mrb[24].mxu0 %v2373_v62  ;;  %v2181_v7 = vmax.f32 %v1944_v52, 0.0 }
 0x2cd   : > { %v1950_v47 = vadd.f32 %v1949_v28, %v5563_v6  ;;  %3401 = vmatpush1.bf16.msra.mxu0 %v4415_v17  ;;  %v2182_v12 = vmax.f32 %v1946_v8, 0.0 }
 0x2ce   : > { %v2189_v42 = vmax.f32 %v1948_v26, 0.0  ;;  %3402 = vmatprep.subr.bf16.mxu0 %v4420_v50 }
 0x2cf   : > { %v2190_v10 = vmax.f32 %v1950_v47, 0.0 }
 0x2d0   : > { %v2381_v38 = vpack.c.bf16 %v2189_v42, %v2181_v7 }
 0x2d1   : > { %v2382_v43 = vpack.c.bf16 %v2190_v10, %v2182_v12  ;;  %3403 = vmatpush1.bf16.msra.mxu0 %v4418_v53  ;;  %v1986_v6 = vpop.f32.mrb[96].mxu1 }
 0x2d2   : > { %v1987_v22 = vadd.f32 %v1986_v6, %v5602_v4  ;;  %v1988_v5 = vpop.f32.mrb[97].mxu1  ;;  %3404 = vmatprep.subr.bf16.mxu0 %v4423_v11 }
 0x2d3   : > { %v1989_v49 = vadd.f32 %v1988_v5, %v5604_v9  ;;  %v1990_v13 = vpop.f32.mrb[98].mxu1  ;;  %3365 = vmatprep.mubr.bf16.mxu0 %v2382_v43 }
 0x2d4   : > { %v1991_v15 = vadd.f32 %v1990_v13, %v5602_v4  ;;  %v1992_v35 = vpop.f32.mrb[99].mxu1  ;;  %3366 = vmatmul.mubr.bf16.gmra.mrb[28].mxu0 %v2381_v38  ;;  %v2071_v44 = vmax.f32 %v1987_v22, 0.0 }
 0x2d5   : > { %v1993_v30 = vadd.f32 %v1992_v35, %v5604_v9  ;;  %3405 = vmatpush1.bf16.msra.mxu0 %v4421_v33  ;;  %v2072_v61 = vmax.f32 %v1989_v49, 0.0 }
 0x2d6   : > { %v2079_v54 = vmax.f32 %v1991_v15, 0.0  ;;  %3406 = vmatprep.subr.bf16.mxu0 %v4426_v60 }
 0x2d7   : > { %v2080_v24 = vmax.f32 %v1993_v30, 0.0 }
 0x2d8   : > { %v2327_v0 = vpack.c.bf16 %v2079_v54, %v2071_v44 }
 0x2d9   : > { %v2328_v36 = vpack.c.bf16 %v2080_v24, %v2072_v61  ;;  %3407 = vmatpush1.bf16.msra.mxu0 %v4424_v40  ;;  %v1996_v45 = vpop.f32.mrb[100].mxu1 }
 0x2da   : > { %v1997_v55 = vadd.f32 %v1996_v45, %v5602_v4  ;;  %v1998_v3 = vpop.f32.mrb[101].mxu1 }
 0x2db   : > { %v1999_v59 = vadd.f32 %v1998_v3, %v5604_v9  ;;  %v2000_v19 = vpop.f32.mrb[102].mxu1  ;;  %3408 = vmatprep.mubr.bf16.mxu0 %v2328_v36 }
 0x2dc   : > { %v2001_v34 = vadd.f32 %v2000_v19, %v5602_v4  ;;  %v2002_v31 = vpop.f32.mrb[103].mxu1  ;;  %3409 = vmatmul.mubr.bf16.vlgmr.msra.gmra.mrb[0].mxu0 %v2327_v0  ;;  %v2087_v56 = vmax.f32 %v1997_v55, 0.0 }
 0x2dd   : > { %v2003_v58 = vadd.f32 %v2002_v31, %v5604_v9  ;;  %v2088_v37 = vmax.f32 %v1999_v59, 0.0 }
 0x2de   : > { %v2095_v51 = vmax.f32 %v2001_v34, 0.0 }
 0x2df   : > { %v2096_v48 = vmax.f32 %v2003_v58, 0.0 }
 0x2e0   : > { %v2335_v41 = vpack.c.bf16 %v2095_v51, %v2087_v56 }
 0x2e1   : > { %v2336_v14 = vpack.c.bf16 %v2096_v48, %v2088_v37  ;;  %v2006_v18 = vpop.f32.mrb[104].mxu1 }
 0x2e2   : > { %v2007_v20 = vadd.f32 %v2006_v18, %v5602_v4  ;;  %v2008_v23 = vpop.f32.mrb[105].mxu1 }
 0x2e3   : > { %v2009_v2 = vadd.f32 %v2008_v23, %v5604_v9  ;;  %v2010_v25 = vpop.f32.mrb[106].mxu1  ;;  %3418 = vmatprep.mubr.bf16.mxu0 %v2336_v14 }
 0x2e4   : > { %v2011_v32 = vadd.f32 %v2010_v25, %v5602_v4  ;;  %v2012_v62 = vpop.f32.mrb[107].mxu1  ;;  %3419 = vmatmul.mubr.bf16.gmra.mrb[4].mxu0 %v2335_v41  ;;  %v2103_v1 = vmax.f32 %v2007_v20, 0.0 }
 0x2e5   : > { %v2013_v29 = vadd.f32 %v2012_v62, %v5604_v9  ;;  %v2104_v52 = vmax.f32 %v2009_v2, 0.0 }
 0x2e6   : > { %v2111_v17 = vmax.f32 %v2011_v32, 0.0 }
 0x2e7   : > { %v2112_v27 = vmax.f32 %v2013_v29, 0.0 }
 0x2e8   : > { %v2343_v50 = vpack.c.bf16 %v2111_v17, %v2103_v1 }
 0x2e9   : > { %v2344_v63 = vpack.c.bf16 %v2112_v27, %v2104_v52  ;;  %v2016_v8 = vpop.f32.mrb[108].mxu1 }
 0x2ea   : > { %v2017_v57 = vadd.f32 %v2016_v8, %v5602_v4  ;;  %v2018_v16 = vpop.f32.mrb[109].mxu1 }
 0x2eb   : > { %v2019_v26 = vadd.f32 %v2018_v16, %v5604_v9  ;;  %v2020_v28 = vpop.f32.mrb[110].mxu1  ;;  %3428 = vmatprep.mubr.bf16.mxu0 %v2344_v63 }
 0x2ec   : > { %v2021_v47 = vadd.f32 %v2020_v28, %v5602_v4  ;;  %v2022_v53 = vpop.f32.mrb[111].mxu1  ;;  %3429 = vmatmul.mubr.bf16.gmra.mrb[8].mxu0 %v2343_v50  ;;  %v2119_v42 = vmax.f32 %v2017_v57, 0.0 }
 0x2ed   : > { %v2023_v7 = vadd.f32 %v2022_v53, %v5604_v9  ;;  %v2120_v11 = vmax.f32 %v2019_v26, 0.0 }
 0x2ee   : > { %v2127_v39 = vmax.f32 %v2021_v47, 0.0 }
 0x2ef   : > { %v2128_v12 = vmax.f32 %v2023_v7, 0.0 }
 0x2f0   : > { %v2351_v10 = vpack.c.bf16 %v2127_v39, %v2119_v42 }
 0x2f1   : > { %v2352_v38 = vpack.c.bf16 %v2128_v12, %v2120_v11  ;;  %v2026_v43 = vpop.f32.mrb[112].mxu1  ;;  %v2385_v11 = vld [vmem:[%s5767_s6] sm:$0x3] }
 0x2f2   : > { %v2027_v6 = vadd.f32 %v2026_v43, %v5602_v4  ;;  %v2028_v33 = vpop.f32.mrb[113].mxu1  ;;  %v5642_v12 = vrot.slane %v2385_v11, %v5860_v46 }
 0x2f3   : > { %v2029_v22 = vadd.f32 %v2028_v33, %v5604_v9  ;;  %v2030_v5 = vpop.f32.mrb[114].mxu1  ;;  %3438 = vmatprep.mubr.bf16.mxu0 %v2352_v38 }
 0x2f4   : > { %v2031_v60 = vadd.f32 %v2030_v5, %v5602_v4  ;;  %v2032_v49 = vpop.f32.mrb[115].mxu1  ;;  %3439 = vmatmul.mubr.bf16.gmra.mrb[12].mxu0 %v2351_v10  ;;  %v2135_v15 = vmax.f32 %v2027_v6, 0.0 }
 0x2f5   : > { %v2033_v13 = vadd.f32 %v2032_v49, %v5604_v9  ;;  %v2136_v30 = vmax.f32 %v2029_v22, 0.0 }
 0x2f6   : > { %v2143_v35 = vmax.f32 %v2031_v60, 0.0 }
 0x2f7   : > { %v2144_v40 = vmax.f32 %v2033_v13, 0.0 }
 0x2f8   : > { %v2359_v44 = vpack.c.bf16 %v2143_v35, %v2135_v15 }
 0x2f9   : > { %v2360_v54 = vpack.c.bf16 %v2144_v40, %v2136_v30  ;;  %v2036_v61 = vpop.f32.mrb[116].mxu1 }
 0x2fa   : > { %v2037_v24 = vadd.f32 %v2036_v61, %v5602_v4  ;;  %v2038_v0 = vpop.f32.mrb[117].mxu1 }
 0x2fb   : > { %v2039_v36 = vadd.f32 %v2038_v0, %v5604_v9  ;;  %v2040_v45 = vpop.f32.mrb[118].mxu1  ;;  %3448 = vmatprep.mubr.bf16.mxu0 %v2360_v54 }
 0x2fc   : > { %v2041_v55 = vadd.f32 %v2040_v45, %v5602_v4  ;;  %v2042_v3 = vpop.f32.mrb[119].mxu1  ;;  %3449 = vmatmul.mubr.bf16.gmra.mrb[16].mxu0 %v2359_v44  ;;  %v2151_v19 = vmax.f32 %v2037_v24, 0.0 }
 0x2fd   : > { %v2043_v59 = vadd.f32 %v2042_v3, %v5604_v9  ;;  %v2152_v31 = vmax.f32 %v2039_v36, 0.0 }
 0x2fe   : > { %v2159_v34 = vmax.f32 %v2041_v55, 0.0 }
 0x2ff   : > { %v2160_v58 = vmax.f32 %v2043_v59, 0.0 }
 0x300   : > { %v2367_v56 = vpack.c.bf16 %v2159_v34, %v2151_v19 }
 0x301   : > { %v2368_v51 = vpack.c.bf16 %v2160_v58, %v2152_v31  ;;  %v2046_v37 = vpop.f32.mrb[120].mxu1 }
 0x302   : > { %v2047_v48 = vadd.f32 %v2046_v37, %v5602_v4  ;;  %v2048_v41 = vpop.f32.mrb[121].mxu1 }
 0x303   : > { %v2049_v14 = vadd.f32 %v2048_v41, %v5604_v9  ;;  %v2050_v18 = vpop.f32.mrb[122].mxu1  ;;  %3458 = vmatprep.mubr.bf16.mxu0 %v2368_v51 }
 0x304   : > { %v2051_v20 = vadd.f32 %v2050_v18, %v5602_v4  ;;  %v2052_v23 = vpop.f32.mrb[123].mxu1  ;;  %3459 = vmatmul.mubr.bf16.gmra.mrb[20].mxu0 %v2367_v56  ;;  %v2167_v25 = vmax.f32 %v2047_v48, 0.0 }
 0x305   : > { %v2053_v2 = vadd.f32 %v2052_v23, %v5604_v9  ;;  %v2168_v62 = vmax.f32 %v2049_v14, 0.0 }
 0x306   : > { %v2175_v32 = vmax.f32 %v2051_v20, 0.0 }
 0x307   : > { %v2176_v29 = vmax.f32 %v2053_v2, 0.0 }
 0x308   : > { %v2375_v1 = vpack.c.bf16 %v2175_v32, %v2167_v25 }
 0x309   : > { %v2376_v17 = vpack.c.bf16 %v2176_v29, %v2168_v62  ;;  %v2056_v52 = vpop.f32.mrb[124].mxu1 }
 0x30a   : > { %v2057_v27 = vadd.f32 %v2056_v52, %v5602_v4  ;;  %v2058_v50 = vpop.f32.mrb[125].mxu1 }
 0x30b   : > { %v2059_v63 = vadd.f32 %v2058_v50, %v5604_v9  ;;  %v2060_v8 = vpop.f32.mrb[126].mxu1  ;;  %3468 = vmatprep.mubr.bf16.mxu0 %v2376_v17 }
 0x30c   : > { %v2061_v57 = vadd.f32 %v2060_v8, %v5602_v4  ;;  %v2062_v16 = vpop.f32.mrb[127].mxu1  ;;  %3469 = vmatmul.mubr.bf16.gmra.mrb[24].mxu0 %v2375_v1  ;;  %v2183_v28 = vmax.f32 %v2057_v27, 0.0  ;;  %v5645_v4 = vrot.slane %v2385_v11, %v5861_v21 }
 0x30d   : > { %v2063_v26 = vadd.f32 %v2062_v16, %v5604_v9  ;;  %v2184_v53 = vmax.f32 %v2059_v63, 0.0 }
 0x30e   : > { %v2191_v47 = vmax.f32 %v2061_v57, 0.0 }
 0x30f   : > { %v2192_v7 = vmax.f32 %v2063_v26, 0.0 }
 0x310   : > { %v2383_v42 = vpack.c.bf16 %v2191_v47, %v2183_v28 }
 0x311   : > { %v2384_v39 = vpack.c.bf16 %v2192_v7, %v2184_v53 }
 0x313   : > { %3478 = vmatprep.mubr.bf16.mxu0 %v2384_v39 }
 0x314   : > { %3479 = vmatmul.mubr.bf16.gmra.mrb[28].mxu0 %v2383_v42 }
 0x3af   : > { %v3410_v9 = vpop.f32.mrb[0].mxu0 }
 0x3b0   : > { %v4039_v10 = vadd.f32 %v3410_v9, %v5642_v12  ;;  %v3412_v38 = vpop.f32.mrb[1].mxu0 }
 0x3b1   : > { %v4040_v43 = vadd.f32 %v3412_v38, %v5645_v4  ;;  %v3414_v6 = vpop.f32.mrb[2].mxu0 }
 0x3b2   : > { %v4041_v33 = vadd.f32 %v3414_v6, %v5642_v12  ;;  %v3416_v22 = vpop.f32.mrb[3].mxu0 }
 0x3b3   : > { %v4020_v5 = vpack.c.bf16 %v4040_v43, %v4039_v10  ;;  %v4042_v60 = vadd.f32 %v3416_v22, %v5645_v4 }
 0x3b5   : > { %3585 = vst [vmem:[%s5653_s19] sm:$0xff] %v4020_v5  ;;  %v4021_v46 = vpack.c.bf16 %v4042_v60, %v4041_v33 }
 0x3b7   : > { %3586 = vst [vmem:[%s5653_s19 + $0x8] sm:$0xff] %v4021_v46  ;;  %v3420_v21 = vpop.f32.mrb[4].mxu0 }
 0x3b8   : > { %v4043_v49 = vadd.f32 %v3420_v21, %v5642_v12  ;;  %v3422_v13 = vpop.f32.mrb[5].mxu0 }
 0x3b9   : > { %v4044_v15 = vadd.f32 %v3422_v13, %v5645_v4  ;;  %v3424_v35 = vpop.f32.mrb[6].mxu0 }
 0x3ba   : > { %v4045_v30 = vadd.f32 %v3424_v35, %v5642_v12  ;;  %v3426_v40 = vpop.f32.mrb[7].mxu0 }
 0x3bb   : > { %v4022_v44 = vpack.c.bf16 %v4044_v15, %v4043_v49  ;;  %v4046_v54 = vadd.f32 %v3426_v40, %v5645_v4 }
 0x3bd   : > { %3587 = vst [vmem:[%s5653_s19 + $0x10] sm:$0xff] %v4022_v44  ;;  %v4023_v61 = vpack.c.bf16 %v4046_v54, %v4045_v30 }
 0x3bf   : > { %3588 = vst [vmem:[%s5653_s19 + $0x18] sm:$0xff] %v4023_v61  ;;  %v3430_v24 = vpop.f32.mrb[8].mxu0 }
 0x3c0   : > { %v4047_v0 = vadd.f32 %v3430_v24, %v5642_v12  ;;  %v3432_v36 = vpop.f32.mrb[9].mxu0 }
 0x3c1   : > { %v4048_v45 = vadd.f32 %v3432_v36, %v5645_v4  ;;  %v3434_v55 = vpop.f32.mrb[10].mxu0 }
 0x3c2   : > { %v4049_v3 = vadd.f32 %v3434_v55, %v5642_v12  ;;  %v3436_v59 = vpop.f32.mrb[11].mxu0 }
 0x3c3   : > { %v4024_v19 = vpack.c.bf16 %v4048_v45, %v4047_v0  ;;  %v4050_v34 = vadd.f32 %v3436_v59, %v5645_v4 }
 0x3c5   : > { %3589 = vst [vmem:[%s5653_s19 + $0x20] sm:$0xff] %v4024_v19  ;;  %v4025_v31 = vpack.c.bf16 %v4050_v34, %v4049_v3 }
 0x3c7   : > { %3590 = vst [vmem:[%s5653_s19 + $0x28] sm:$0xff] %v4025_v31  ;;  %v3440_v58 = vpop.f32.mrb[12].mxu0 }
 0x3c8   : > { %v4051_v56 = vadd.f32 %v3440_v58, %v5642_v12  ;;  %v3442_v51 = vpop.f32.mrb[13].mxu0 }
 0x3c9   : > { %v4052_v37 = vadd.f32 %v3442_v51, %v5645_v4  ;;  %v3444_v48 = vpop.f32.mrb[14].mxu0 }
 0x3ca   : > { %v4053_v41 = vadd.f32 %v3444_v48, %v5642_v12  ;;  %v3446_v14 = vpop.f32.mrb[15].mxu0 }
 0x3cb   : > { %v4026_v18 = vpack.c.bf16 %v4052_v37, %v4051_v56  ;;  %v4054_v20 = vadd.f32 %v3446_v14, %v5645_v4 }
 0x3cd   : > { %3591 = vst [vmem:[%s5653_s19 + $0x30] sm:$0xff] %v4026_v18  ;;  %v4027_v23 = vpack.c.bf16 %v4054_v20, %v4053_v41 }
 0x3cf   : > { %3592 = vst [vmem:[%s5653_s19 + $0x38] sm:$0xff] %v4027_v23  ;;  %v3450_v2 = vpop.f32.mrb[16].mxu0 }
 0x3d0   : > { %v4055_v25 = vadd.f32 %v3450_v2, %v5642_v12  ;;  %v3452_v32 = vpop.f32.mrb[17].mxu0 }
 0x3d1   : > { %v4056_v62 = vadd.f32 %v3452_v32, %v5645_v4  ;;  %v3454_v29 = vpop.f32.mrb[18].mxu0 }
 0x3d2   : > { %v4057_v1 = vadd.f32 %v3454_v29, %v5642_v12  ;;  %v3456_v17 = vpop.f32.mrb[19].mxu0 }
 0x3d3   : > { %v4028_v52 = vpack.c.bf16 %v4056_v62, %v4055_v25  ;;  %v4058_v27 = vadd.f32 %v3456_v17, %v5645_v4 }
 0x3d5   : > { %3593 = vst [vmem:[%s5653_s19 + $0x40] sm:$0xff] %v4028_v52  ;;  %v4029_v50 = vpack.c.bf16 %v4058_v27, %v4057_v1 }
 0x3d7   : > { %3594 = vst [vmem:[%s5653_s19 + $0x48] sm:$0xff] %v4029_v50  ;;  %v3460_v63 = vpop.f32.mrb[20].mxu0 }
 0x3d8   : > { %v4059_v8 = vadd.f32 %v3460_v63, %v5642_v12  ;;  %v3462_v57 = vpop.f32.mrb[21].mxu0 }
 0x3d9   : > { %v4060_v16 = vadd.f32 %v3462_v57, %v5645_v4  ;;  %v3464_v26 = vpop.f32.mrb[22].mxu0 }
 0x3da   : > { %v4061_v28 = vadd.f32 %v3464_v26, %v5642_v12  ;;  %v3466_v47 = vpop.f32.mrb[23].mxu0 }
 0x3db   : > { %v4030_v53 = vpack.c.bf16 %v4060_v16, %v4059_v8  ;;  %v4062_v7 = vadd.f32 %v3466_v47, %v5645_v4 }
 0x3dd   : > { %3595 = vst [vmem:[%s5653_s19 + $0x50] sm:$0xff] %v4030_v53  ;;  %v4031_v42 = vpack.c.bf16 %v4062_v7, %v4061_v28 }
 0x3df   : > { %3596 = vst [vmem:[%s5653_s19 + $0x58] sm:$0xff] %v4031_v42  ;;  %v3470_v39 = vpop.f32.mrb[24].mxu0 }
 0x3e0   : > { %v4063_v11 = vadd.f32 %v3470_v39, %v5642_v12  ;;  %v3472_v9 = vpop.f32.mrb[25].mxu0 }
 0x3e1   : > { %v4064_v10 = vadd.f32 %v3472_v9, %v5645_v4  ;;  %v3474_v38 = vpop.f32.mrb[26].mxu0 }
 0x3e2   : > { %v4065_v43 = vadd.f32 %v3474_v38, %v5642_v12  ;;  %v3476_v6 = vpop.f32.mrb[27].mxu0 }
 0x3e3   : > { %v4032_v33 = vpack.c.bf16 %v4064_v10, %v4063_v11  ;;  %v4066_v22 = vadd.f32 %v3476_v6, %v5645_v4 }
 0x3e5   : > { %3597 = vst [vmem:[%s5653_s19 + $0x60] sm:$0xff] %v4032_v33  ;;  %v4033_v5 = vpack.c.bf16 %v4066_v22, %v4065_v43 }
 0x3e7   : > { %3598 = vst [vmem:[%s5653_s19 + $0x68] sm:$0xff] %v4033_v5  ;;  %v3480_v60 = vpop.f32.mrb[28].mxu0 }
 0x3e8   : > { %v4067_v46 = vadd.f32 %v3480_v60, %v5642_v12  ;;  %v3482_v21 = vpop.f32.mrb[29].mxu0 }
 0x3e9   : > { %v4068_v49 = vadd.f32 %v3482_v21, %v5645_v4  ;;  %v3484_v13 = vpop.f32.mrb[30].mxu0  ;;  %3608 = sbr.rel (!%p5863_p8) target bundleno = 1036 (0x40c), region = 64 }
 0x3ea   : > { %v4069_v15 = vadd.f32 %v3484_v13, %v5642_v12  ;;  %v3486_v35 = vpop.f32.mrb[31].mxu0 }
 0x3eb   : > { %v4034_v30 = vpack.c.bf16 %v4068_v49, %v4067_v46  ;;  %v4070_v40 = vadd.f32 %v3486_v35, %v5645_v4 }
 0x3ed   : > { %3599 = vst [vmem:[%s5653_s19 + $0x70] sm:$0xff] %v4034_v30  ;;  %v4035_v44 = vpack.c.bf16 %v4070_v40, %v4069_v15 }
 0x3ef   : > { %3600 = vst [vmem:[%s5653_s19 + $0x78] sm:$0xff] %v4035_v44 }
 0x3f0   : > { %s5874_s22 = smov (!%p3611_p9, %s3610_s22), 16 }
 0x3f1   : > { %s5703_s23 = sshll.u32 %s5874_s22, 7 }
 0x3f2   : > { %s3616_s29 = ssub.s32 2048, %s5703_s23 }
 0x3f3   : > { %3617 = vsyncadd %s3602_s17, %s3616_s29  ;;  %p4010_p10 = scmp.ne.s32.totalorder %s5703_s23, 0  ;;  %s4038_s13 = sshll.u32 %s4689_s28, 11 }
 0x3f4   : > { %s5713_s9 = scalar_lea.hbm %s5768_s7, %s4038_s13  ;;  %s3623_s16 = sshll.u32 %s5653_s19, 4  ;;  %s5716_s16 = int_to_ptr.vmem [resolvable:$true] %s3623_s16 }
 0x3f5   : > { %s4544_s30 = scalar_lea.vmem %s5716_s16, %s5703_s23  ;;  %s4625_s10 = smov [#allocation8]  }
 0x3f6   : > { %p4545_p1 = scmp.ne.s32.totalorder %s5716_s16, %s4544_s30  ;;  %s4548_s8 = sshll.u32 %s4625_s10, 4  ;;  %s4549_s8 = int_to_ptr.vmem [resolvable:$false] %s4548_s8 }
 0x3f7   : > { %s4550_s28 = scalar_lea.vmem %s4549_s8, 4096  ;;  %p4551_p5 = scmp.lt.s32.totalorder %s5716_s16, %s4549_s8 }
 0x3f8   : > { %p4546_p4 = pnand %p4545_p1, %p4010_p10  ;;  %p4552_p6 = scmp.lt.s32.totalorder %s4550_s28, %s4544_s30 }
 0x3fa   : > { %p4547_p3 = pneg %p4546_p4  ;;  %p4553_p11 = por %p4552_p6, %p4551_p5 }
 0x3fc   : > { %p4554_p13 = pnand %p4553_p11, %p4547_p3 }
 0x3fe   : > { %4557 = shalt.err (!%p4554_p13)
}
 0x3ff   : > { %s4558_s18 = scalar_lea.hbm %s5713_s9, %s5703_s23  ;;  %s4562_s19 = scalar_lea.hbm %s5768_s7, 6400 }
 0x400   : > { %p4559_p12 = scmp.ne.s32.totalorder %s5713_s9, %s4558_s18  ;;  %p4563_p7 = scmp.lt.u32.totalorder %s5713_s9, %s5768_s7 }
 0x401   : > { %p4564_p8 = scmp.lt.u32.totalorder %s4562_s19, %s4558_s18  ;;  %p4566_p1 = scmp.lt.u32.totalorder %s4558_s18, %s5713_s9 }
 0x402   : > { %p4560_p0 = pnand %p4559_p12, %p4010_p10 }
 0x403   : > { %p4565_p9 = por %p4564_p8, %p4563_p7 }
 0x404   : > { %p4561_p2 = pneg %p4560_p0 }
 0x405   : > { %p4567_p4 = por %p4566_p1, %p4565_p9 }
 0x407   : > { %p4568_p3 = pnand %p4567_p4, %p4561_p2 }
 0x409   : > { %4571 = shalt.err (!%p4568_p3)
}
 0x40a   : > { %s4626_s29 = smov 128   ;;  %s4627_s13 = smov 8  }
 0x40b   : > { %3629 = dma.vmem_to_hbm [thread:$0]  (%p4010_p10), %s5716_s16, %s5703_s23, %s5713_s9, %s3602_s17, %s4626_s29, %s4626_s29, %s4627_s13  }
 0x40c PF: > { %s5864_s12 = sld [smem:[#allocation14_spill]]  ;;  %p4192_p5 = scmp.ge.s32.totalorder %s4614_s27, 2 }
 0x40d   : > { %s3638_s15 = sand.u32 1, %s4602_s24  }
 0x40e   : > { %s3639_s30 = scalar_lea.sflag [#allocation4], %s3638_s15 }
 0x412   : > { %p5865_p6 = scmp.ne.s32.totalorder %s5864_s12, 0 }
 0x414   : > { %p4185_p11 = pnand %p4192_p5, %p5865_p6 }
 0x416   : > { %4597 = dma.done.wait (!%p4185_p11), %s3639_s30, 2048  }
 0x417   : > { %4599 = vsyncadd (!%p4185_p11), %s3639_s30, 4294965248  ;;  %s5866_s27 = sld [smem:[#allocation12_spill]]  ;;  %s5867_s10 = sld [smem:[#allocation13_spill]] }
 0x418   : > { %s5868_s24 = smov %s4606_s25  ;;  %s5869_s25 = smov %s4610_s26 }
 0x41d   : > { %p21_p13 = scmp.ge.s32.totalorder %s5866_s27, 6   ;;  %s5870_s26 = smov %s5867_s10 }
 0x41f   :  { %23 = sbr.rel (!%p21_p13) target bundleno = 6 (0x6), region = 101 }
 0x426   :  { %3644 = vsyncpa [#allocation3], 1 }
 0x427   :  { %3646 = vsyncpa [#allocation3 + $0x1], 1 }
 0x428   :  { %3647 = vsyncpa [#allocation6], 1 }
 0x429   :  { %3648 = vsyncpa [#allocation4], 1 }
 0x42a   :  { %3650 = vsyncpa [#allocation4 + $0x1], 1 }

</bundles_post_ra>
